<compile_context>
chip_gen: v5e
topology: v5e:2x2
jax: 0.10.0
libtpu: 0.0.40
codegen_flags: <defaults>
</compile_context>

<pallas_src>
import functools
import math

import numpy as np
import jax
import jax.numpy as jnp
from jax import lax
from jax.experimental import pallas as pl
from jax.experimental.pallas import tpu as pltpu

NHEAD = 8
POS_PAD = 8           # positions (3 or 6 channels) zero-padded to 8 lanes for the PE matmul
NEG_MASK = -1e30      # finite "-inf": robust if an attention row is ever fully masked

_PE_NAMES = ("w1", "b1", "w2", "b2")
_LAYER_NAMES = ("sa_wqkv", "sa_bqkv", "sa_wo", "sa_bo",
                "ca_wq", "ca_bq", "ca_wkv", "ca_bkv", "ca_wo", "ca_bo",
                "ln1_g", "ln1_b", "ln2_g", "ln2_b", "ln3_g", "ln3_b",
                "ff_w1", "ff_b1", "ff_w2", "ff_b2")


# ------------------------------------------------------------------ fused WindowFusion kernel

def _window_fusion_kernel(*refs, nhead, proposal_num):
    """Whole WindowFusion forward (2 decoder layers) for one batch element."""
    xq_ref, xk_ref, qpos_ref, kpos_ref, smask_ref, cmask_ref = refs[:6]
    out_ref = refs[-1]
    wrefs = refs[6:-1]
    peq = dict(zip(_PE_NAMES, wrefs[0:4]))          # self pos-embed (shared by both layers)
    pek = dict(zip(_PE_NAMES, wrefs[4:8]))          # cross pos-embed (shared by both layers)
    l1 = dict(zip(_LAYER_NAMES, wrefs[8:28]))       # fusion_layer_1
    l2 = dict(zip(_LAYER_NAMES, wrefs[28:48]))      # fusion_layer_2

    f32 = jnp.float32
    C = xq_ref.shape[-1]
    dh = C // nhead
    Pq = proposal_num

    def layer_norm(x, g_ref, b_ref, eps=1e-5):
        mu = jnp.mean(x, axis=-1, keepdims=True)
        var = jnp.mean(jnp.square(x - mu), axis=-1, keepdims=True)
        return (x - mu) * lax.rsqrt(var + eps) * g_ref[...] + b_ref[...]

    def pe_mlp(pos, w):
        # Conv1d(k=1) + folded BN(eval) + ReLU + Conv1d(k=1)
        h = jnp.maximum(jnp.dot(pos, w["w1"][...], preferred_element_type=f32) + w["b1"][...], 0.0)
        return jnp.dot(h, w["w2"][...], preferred_element_type=f32) + w["b2"][...]

    def mha(q_rows, k_rows, v_rows, mask, wo_ref, bo_ref):
        # q_rows already carries the 1/sqrt(dh) scale (folded into the Q projection at init).
        out = None
        for h in range(nhead):                                    # static unroll, 8 heads
            lo, hi = h * dh, (h + 1) * dh
            qh = q_rows[:, lo:hi]                                 # (L, dh)
            kh = k_rows[:, lo:hi]                                 # (S, dh)
            vh = v_rows[:, lo:hi]                                 # (S, dh)
            s = lax.dot_general(qh, kh, (((1,), (1,)), ((), ())),
                                preferred_element_type=f32) + mask   # (L, S)
            s = s - jnp.max(s, axis=-1, keepdims=True)
            p = jnp.exp(s)
            p = p * pl.reciprocal(jnp.sum(p, axis=-1, keepdims=True), approx=True)
            oh = jnp.dot(p, vh, preferred_element_type=f32)       # (L, dh)
            contrib = jnp.dot(oh, wo_ref[h], preferred_element_type=f32)   # (L, C)
            out = contrib if out is None else out + contrib
        return out + bo_ref[...]

    def decoder_layer(w, xq, qpe, kv_in, smask, cmask):
        # ---- self-attention ----
        t = xq + qpe
        qkv = jnp.dot(t, w["sa_wqkv"][...], preferred_element_type=f32) + w["sa_bqkv"][...]
        attn = mha(qkv[:, :C], qkv[:, C:2 * C], qkv[:, 2 * C:], smask, w["sa_wo"], w["sa_bo"])
        x = layer_norm(xq + attn, w["ln1_g"], w["ln1_b"])
        # ---- cross-attention ----
        q = jnp.dot(x + qpe, w["ca_wq"][...], preferred_element_type=f32) + w["ca_bq"][...]
        kv = jnp.dot(kv_in, w["ca_wkv"][...], preferred_element_type=f32) + w["ca_bkv"][...]
        attn = mha(q, kv[:, :C], kv[:, C:], cmask, w["ca_wo"], w["ca_bo"])
        x = layer_norm(x + attn, w["ln2_g"], w["ln2_b"])
        # ---- feed-forward (relu) ----
        h = jnp.maximum(jnp.dot(x, w["ff_w1"][...], preferred_element_type=f32) + w["ff_b1"][...],
                        0.0)
        h = jnp.dot(h, w["ff_w2"][...], preferred_element_type=f32) + w["ff_b2"][...]
        return layer_norm(x + h, w["ln3_g"], w["ln3_b"])

    xq = xq_ref[...].astype(f32)                                  # (L1, C)
    xk = xk_ref[...].astype(f32)                                  # (S, C)
    smask1 = smask_ref[...].astype(f32)                           # (L1, L1)
    cmask1 = cmask_ref[...].astype(f32)                           # (L1, S)

    # shared across both layers
    qpe = pe_mlp(qpos_ref[...].astype(f32), peq)                  # (L1, C)
    kpe = pe_mlp(kpos_ref[...].astype(f32), pek)                  # (S, C)
    kv_in = xk + kpe                                              # key + key pos-embed

    # ---- fusion_layer_1 ----
    x1 = decoder_layer(l1, xq, qpe, kv_in, smask1, cmask1)        # (L1, C)

    # inter-layer: keep proposals, mean-pool the lang tokens into one token
    xq2 = jnp.concatenate([x1[:Pq], jnp.mean(x1[Pq:], axis=0, keepdims=True)], axis=0)  # (Pq+1, C)
    qpe2 = qpe[:Pq + 1]
    smask2 = smask1[:Pq + 1, :Pq + 1]
    cmask2 = cmask1[:Pq + 1, :]

    # ---- fusion_layer_2 ----
    x2 = decoder_layer(l2, xq2, qpe2, kv_in, smask2, cmask2)      # (Pq+1, C)

    out_ref[...] = x2[:Pq].astype(out_ref.dtype)                  # (Pq, C)


def window_fusion_pallas(p, xq, xk, qpos, kpos, smask, cmask, proposal_num, nhead=NHEAD):
    """Both decoder layers fused into one pallas_call with grid=(B,)."""
    B, L, C = xq.shape
    S = xk.shape[1]
    P = qpos.shape[-1]

    weights = ([p["self_pe"][n] for n in _PE_NAMES] +
               [p["cross_pe"][n] for n in _PE_NAMES] +
               [p["layer1"][n] for n in _LAYER_NAMES] +
               [p["layer2"][n] for n in _LAYER_NAMES])

    def bmap(b):
        return (b, 0, 0)

    data_specs = [
        pl.BlockSpec((None, L, C), bmap),        # xq  (query feats + lang feats, row-major)
        pl.BlockSpec((None, S, C), bmap),        # xk  (key feats, row-major)
        pl.BlockSpec((None, L, P), bmap),        # query positions (padded to 8 lanes)
        pl.BlockSpec((None, S, P), bmap),        # key positions (padded to 8 lanes)
        pl.BlockSpec((None, L, L), bmap),        # self-attention additive mask
        pl.BlockSpec((None, L, S), bmap),        # cross-attention additive mask
    ]
    # weights: full-array blocks, constant index_map -> DMA'd once, resident for all grid steps
    w_specs = [pl.BlockSpec(tuple(w.shape), lambda b, n=w.ndim: (0,) * n) for w in weights]

    return pl.pallas_call(
        functools.partial(_window_fusion_kernel, nhead=nhead, proposal_num=proposal_num),
        out_shape=jax.ShapeDtypeStruct((B, proposal_num, C), jnp.float32),
        grid=(B,),
        in_specs=data_specs + w_specs,
        out_specs=pl.BlockSpec((None, proposal_num, C), bmap),
        compiler_params=pltpu.CompilerParams(
            dimension_semantics=("parallel",),           # B=2 -> both TCs on v7x
            vmem_limit_bytes=64 * 1024 * 1024),
    )(xq, xk, qpos, kpos, smask, cmask, *weights)


# ------------------------------------------------------------------ model glue (plain JAX, tiny)

def get_sinusoid_table(n_position, d_hid):
    """PositionalEncoding buffer, exactly as in the PyTorch module."""
    def angle_vec(position):
        return [position / np.power(10000, 2 * (j // 2) / d_hid) for j in range(d_hid)]
    table = np.array([angle_vec(pos / n_position) for pos in range(n_position)])
    table[:, 0::2] = np.sin(table[:, 0::2] * 2 * math.pi)
    table[:, 1::2] = np.cos(table[:, 1::2] * 2 * math.pi)
    return jnp.asarray(table, dtype=jnp.float32)[None]            # (1, n_position, d_hid)


def construct_batch_grids(xyz, side_length):
    B = xyz.shape[0]
    mins = jnp.min(xyz, axis=1)                                   # (B, 3)
    maxs = jnp.max(xyz, axis=1)
    t = jnp.linspace(0.0, 1.0, side_length + 1)                   # (S+1,)
    lines = mins[:, :, None] + (maxs - mins)[:, :, None] * t      # (B, 3, S+1)
    sx, sy, sz = lines[:, 0], lines[:, 1], lines[:, 2]
    Sp = side_length + 1
    gx = jnp.broadcast_to(sx[:, :, None, None], (B, Sp, Sp, Sp))
    gy = jnp.broadcast_to(sy[:, None, :, None], (B, Sp, Sp, Sp))
    gz = jnp.broadcast_to(sz[:, None, None, :], (B, Sp, Sp, Sp))
    return jnp.stack([gx, gy, gz], axis=-1)                       # (B, S+1, S+1, S+1, 3)


def get_point_pos_index(xyz, batch_grid, side_length):
    B, N, _ = xyz.shape
    lb = (batch_grid[:, :side_length, :side_length, :side_length] - 1.1e-6).reshape(B, 1, -1, 3)
    rt = (batch_grid[:, -side_length:, -side_length:, -side_length:] + 1.1e-6).reshape(B, 1, -1, 3)
    inside = (xyz[:, :, None, :] < rt) & (xyz[:, :, None, :] > lb)   # (B, N, S^3, 3)
    count = jnp.sum(inside, axis=-1)
    return jnp.argmax(count, axis=-1)                                # first max, like torch.max


def window_fusion_forward(p, query_proposals, key_points, query_proposals_pos,
                          key_points_pos, lang_features, sentence_feature, side_length):
    """WindowFusion forward with fuse_with_query=True, fuse_with_key=False (eval mode)."""
    del sentence_feature                                          # unused when fuse_with_key=False
    B = key_points.shape[0]
    Pq = query_proposals_pos.shape[1]
    Pk = key_points_pos.shape[1]
    Wn = lang_features.shape[-1]

    # spatial-window indices + additive masks (tiny, plain JAX; fed once per batch to the kernel)
    points_xyz = key_points_pos
    proposal_xyz = query_proposals_pos[:, :, :3]
    batch_grid = construct_batch_grids(points_xyz, side_length)
    key_idx = get_point_pos_index(points_xyz, batch_grid, side_length)
    qry_idx = get_point_pos_index(proposal_xyz, batch_grid, side_length)

    self_mask = jnp.where(qry_idx[:, :, None] != qry_idx[:, None, :], NEG_MASK, 0.0)
    cross_mask = jnp.where(qry_idx[:, :, None] != key_idx[:, None, :], NEG_MASK, 0.0)

    # fuse_with_query branch: append lang tokens with sinusoid positions; layer-2 masks are
    # row/col slices of the layer-1 masks, taken inside the fused kernel.
    query_lang_pos = jnp.broadcast_to(p["pos_table"][:, :Wn], (B, Wn, p["pos_table"].shape[-1]))
    query_pos = jnp.concatenate([query_proposals_pos, query_lang_pos], axis=1)      # (B, Pq+Wn, 6)
    self_mask_1 = jnp.zeros((B, Pq + Wn, Pq + Wn), jnp.float32).at[:, :Pq, :Pq].set(self_mask)
    cross_mask_1 = jnp.zeros((B, Pq + Wn, Pk), jnp.float32).at[:, :Pq, :].set(cross_mask)

    # row-major (tokens, channels) slabs at the kernel boundary
    xq1 = jnp.concatenate([query_proposals, lang_features], axis=-1).transpose(0, 2, 1)  # (B, Pq+Wn, C)
    xk = key_points.transpose(0, 2, 1)                                                   # (B, Pk, C)
    qpos1 = jnp.pad(query_pos, ((0, 0), (0, 0), (0, POS_PAD - query_pos.shape[-1])))
    kpos = jnp.pad(key_points_pos, ((0, 0), (0, 0), (0, POS_PAD - key_points_pos.shape[-1])))

    out = window_fusion_pallas(p, xq1, xk, qpos1, kpos, self_mask_1, cross_mask_1, Pq)   # (B, Pq, C)
    return out.transpose(0, 2, 1)                                                        # (B, C, Pq)


# ------------------------------------------------------------------ parameter init

def _lin_init(key, din, dout, scale=0.05):
    kw, kb = jax.random.split(key)
    w = jax.random.normal(kw, (din, dout), jnp.float32) * scale
    b = jax.random.normal(kb, (dout,), jnp.float32) * scale
    return w, b


def init_pos_embed(key, cin, C):
    k1, k2 = jax.random.split(key)
    w1, b1 = _lin_init(k1, cin, C)
    w2, b2 = _lin_init(k2, C, C)
    bn = 1.0 / math.sqrt(1.0 + 1e-5)   # eval-mode BatchNorm1d (mean=0, var=1, gamma=1, beta=0)
    w1 = jnp.pad(w1 * bn, ((0, POS_PAD - cin), (0, 0)))            # hoisted input-channel padding
    return {"w1": w1, "b1": (b1 * bn).reshape(1, C), "w2": w2, "b2": b2.reshape(1, C)}


def init_decoder_layer(key, C, FF, nhead=NHEAD):
    dh = C // nhead
    scale = 1.0 / math.sqrt(dh)        # attention scale folded into the Q projection
    ks = jax.random.split(key, 10)
    wq, bq = _lin_init(ks[0], C, C)
    wk, bk = _lin_init(ks[1], C, C)
    wv, bv = _lin_init(ks[2], C, C)
    wo, bo = _lin_init(ks[3], C, C)
    cwq, cbq = _lin_init(ks[4], C, C)
    cwk, cbk = _lin_init(ks[5], C, C)
    cwv, cbv = _lin_init(ks[6], C, C)
    cwo, cbo = _lin_init(ks[7], C, C)
    fw1, fb1 = _lin_init(ks[8], C, FF)
    fw2, fb2 = _lin_init(ks[9], FF, C)
    p = {
        "sa_wqkv": jnp.concatenate([wq * scale, wk, wv], axis=1),              # (C, 3C)
        "sa_bqkv": jnp.concatenate([bq * scale, bk, bv]).reshape(1, 3 * C),
        "sa_wo": wo.reshape(nhead, dh, C),                                     # per-head out proj
        "sa_bo": bo.reshape(1, C),
        "ca_wq": cwq * scale, "ca_bq": (cbq * scale).reshape(1, C),
        "ca_wkv": jnp.concatenate([cwk, cwv], axis=1),                         # (C, 2C)
        "ca_bkv": jnp.concatenate([cbk, cbv]).reshape(1, 2 * C),
        "ca_wo": cwo.reshape(nhead, dh, C),
        "ca_bo": cbo.reshape(1, C),
        "ff_w1": fw1, "ff_b1": fb1.reshape(1, FF),
        "ff_w2": fw2, "ff_b2": fb2.reshape(1, C),
    }
    for n in ("ln1", "ln2", "ln3"):
        p[n + "_g"] = jnp.ones((1, C), jnp.float32)
        p[n + "_b"] = jnp.zeros((1, C), jnp.float32)
    return p


def init_window_fusion(key, C, FF, sent_len_max):
    ks = jax.random.split(key, 4)
    return {
        "self_pe": init_pos_embed(ks[0], 6, C),     # shared by both decoder layers (as in PyTorch)
        "cross_pe": init_pos_embed(ks[1], 3, C),
        "layer1": init_decoder_layer(ks[2], C, FF),
        "layer2": init_decoder_layer(ks[3], C, FF),
        "pos_table": get_sinusoid_table(sent_len_max, 6),
    }


# ------------------------------------------------------------------ main

if __name__ == "__main__":
    B, Pq, Pk, Wn, C, FF = 2, 8, 16, 4, 288, 256
    SIDE_LENGTH = 2       # 2x2x2 = 8 spatial window cells
    SENT_LEN_MAX = Wn     # PositionalEncoding requires word_num == sent_len_max

    key = jax.random.PRNGKey(0)
    k_in = jax.random.split(key, 8)

    query_proposals = jax.random.normal(k_in[0], (B, C, Pq), jnp.float32)
    key_points = jax.random.normal(k_in[1], (B, C, Pk), jnp.float32)

    # Key-point positions: octant centers + cube corners guarantee every spatial window cell
    # (side_length=2 -> 8 cells) contains at least one key point -> no fully-masked rows.
    centers = jnp.array([[x, y, z] for x in (0.25, 0.75) for y in (0.25, 0.75) for z in (0.25, 0.75)],
                        jnp.float32)
    corners = jnp.array([[0.0, 0.0, 0.0], [1.0, 1.0, 1.0]], jnp.float32)
    base = jnp.concatenate([centers, corners], axis=0)                    # (10, 3)
    extra = jax.random.uniform(k_in[2], (B, Pk - base.shape[0], 3), jnp.float32)
    key_points_pos = jnp.concatenate(
        [jnp.broadcast_to(base[None], (B, base.shape[0], 3)), extra], axis=1)      # (B, Pk, 3)

    query_proposals_pos = jnp.concatenate(
        [jax.random.uniform(k_in[3], (B, Pq, 3), jnp.float32),
         jax.random.normal(k_in[4], (B, Pq, 3), jnp.float32) * 0.1], axis=-1)      # (B, Pq, 6)

    lang_features = jax.random.normal(k_in[5], (B, C, Wn), jnp.float32)
    sentence_feature = jax.random.normal(k_in[6], (B, C), jnp.float32)   # unused (fuse_with_key=False)

    params = init_window_fusion(k_in[7], C, FF, SENT_LEN_MAX)

    fwd = jax.jit(functools.partial(window_fusion_forward, side_length=SIDE_LENGTH))
    out = fwd(params, query_proposals, key_points, query_proposals_pos,
              key_points_pos, lang_features, sentence_feature)
    out = jax.block_until_ready(out)

    assert out.shape == (B, C, Pq), out.shape
    assert bool(jnp.all(jnp.isfinite(out)))
    print("KERNEL_OK")
</pallas_src>

<mosaic_0001>
module attributes {stable_mosaic.version = 11 : i64} {
  func.func @_window_fusion_kernel(%arg0: i32, %arg1: memref<1x12x288xf32, #tpu.memory_space<vmem>>, %arg2: memref<1x16x288xf32, #tpu.memory_space<vmem>>, %arg3: memref<1x12x8xf32, #tpu.memory_space<vmem>>, %arg4: memref<1x16x8xf32, #tpu.memory_space<vmem>>, %arg5: memref<1x12x12xf32, #tpu.memory_space<vmem>>, %arg6: memref<1x12x16xf32, #tpu.memory_space<vmem>>, %arg7: memref<8x288xf32, #tpu.memory_space<vmem>>, %arg8: memref<1x288xf32, #tpu.memory_space<vmem>>, %arg9: memref<288x288xf32, #tpu.memory_space<vmem>>, %arg10: memref<1x288xf32, #tpu.memory_space<vmem>>, %arg11: memref<8x288xf32, #tpu.memory_space<vmem>>, %arg12: memref<1x288xf32, #tpu.memory_space<vmem>>, %arg13: memref<288x288xf32, #tpu.memory_space<vmem>>, %arg14: memref<1x288xf32, #tpu.memory_space<vmem>>, %arg15: memref<288x864xf32, #tpu.memory_space<vmem>>, %arg16: memref<1x864xf32, #tpu.memory_space<vmem>>, %arg17: memref<8x36x288xf32, #tpu.memory_space<vmem>>, %arg18: memref<1x288xf32, #tpu.memory_space<vmem>>, %arg19: memref<288x288xf32, #tpu.memory_space<vmem>>, %arg20: memref<1x288xf32, #tpu.memory_space<vmem>>, %arg21: memref<288x576xf32, #tpu.memory_space<vmem>>, %arg22: memref<1x576xf32, #tpu.memory_space<vmem>>, %arg23: memref<8x36x288xf32, #tpu.memory_space<vmem>>, %arg24: memref<1x288xf32, #tpu.memory_space<vmem>>, %arg25: memref<1x288xf32, #tpu.memory_space<vmem>>, %arg26: memref<1x288xf32, #tpu.memory_space<vmem>>, %arg27: memref<1x288xf32, #tpu.memory_space<vmem>>, %arg28: memref<1x288xf32, #tpu.memory_space<vmem>>, %arg29: memref<1x288xf32, #tpu.memory_space<vmem>>, %arg30: memref<1x288xf32, #tpu.memory_space<vmem>>, %arg31: memref<288x256xf32, #tpu.memory_space<vmem>>, %arg32: memref<1x256xf32, #tpu.memory_space<vmem>>, %arg33: memref<256x288xf32, #tpu.memory_space<vmem>>, %arg34: memref<1x288xf32, #tpu.memory_space<vmem>>, %arg35: memref<288x864xf32, #tpu.memory_space<vmem>>, %arg36: memref<1x864xf32, #tpu.memory_space<vmem>>, %arg37: memref<8x36x288xf32, #tpu.memory_space<vmem>>, %arg38: memref<1x288xf32, #tpu.memory_space<vmem>>, %arg39: memref<288x288xf32, #tpu.memory_space<vmem>>, %arg40: memref<1x288xf32, #tpu.memory_space<vmem>>, %arg41: memref<288x576xf32, #tpu.memory_space<vmem>>, %arg42: memref<1x576xf32, #tpu.memory_space<vmem>>, %arg43: memref<8x36x288xf32, #tpu.memory_space<vmem>>, %arg44: memref<1x288xf32, #tpu.memory_space<vmem>>, %arg45: memref<1x288xf32, #tpu.memory_space<vmem>>, %arg46: memref<1x288xf32, #tpu.memory_space<vmem>>, %arg47: memref<1x288xf32, #tpu.memory_space<vmem>>, %arg48: memref<1x288xf32, #tpu.memory_space<vmem>>, %arg49: memref<1x288xf32, #tpu.memory_space<vmem>>, %arg50: memref<1x288xf32, #tpu.memory_space<vmem>>, %arg51: memref<288x256xf32, #tpu.memory_space<vmem>>, %arg52: memref<1x256xf32, #tpu.memory_space<vmem>>, %arg53: memref<256x288xf32, #tpu.memory_space<vmem>>, %arg54: memref<1x288xf32, #tpu.memory_space<vmem>>, %arg55: memref<1x8x288xf32, #tpu.memory_space<vmem>>) attributes {dimension_semantics = [#tpu.dimension_semantics<parallel>], iteration_bounds = array<i64: 2>, scalar_prefetch = 0 : i64, scratch_operands = 0 : i64, tpu.core_type = #tpu.core_type<tc>, window_params = [{transform_indices = @transform_0, window_bounds = array<i64: 1, 12, 288>}, {transform_indices = @transform_1, window_bounds = array<i64: 1, 16, 288>}, {transform_indices = @transform_2, window_bounds = array<i64: 1, 12, 8>}, {transform_indices = @transform_3, window_bounds = array<i64: 1, 16, 8>}, {transform_indices = @transform_4, window_bounds = array<i64: 1, 12, 12>}, {transform_indices = @transform_5, window_bounds = array<i64: 1, 12, 16>}, {pipeline_mode = #tpu.pipeline_mode<synchronous>, transform_indices = @transform_6, window_bounds = array<i64: 8, 288>}, {pipeline_mode = #tpu.pipeline_mode<synchronous>, transform_indices = @transform_7, window_bounds = array<i64: 1, 288>}, {pipeline_mode = #tpu.pipeline_mode<synchronous>, transform_indices = @transform_8, window_bounds = array<i64: 288, 288>}, {pipeline_mode = #tpu.pipeline_mode<synchronous>, transform_indices = @transform_9, window_bounds = array<i64: 1, 288>}, {pipeline_mode = #tpu.pipeline_mode<synchronous>, transform_indices = @transform_10, window_bounds = array<i64: 8, 288>}, {pipeline_mode = #tpu.pipeline_mode<synchronous>, transform_indices = @transform_11, window_bounds = array<i64: 1, 288>}, {pipeline_mode = #tpu.pipeline_mode<synchronous>, transform_indices = @transform_12, window_bounds = array<i64: 288, 288>}, {pipeline_mode = #tpu.pipeline_mode<synchronous>, transform_indices = @transform_13, window_bounds = array<i64: 1, 288>}, {pipeline_mode = #tpu.pipeline_mode<synchronous>, transform_indices = @transform_14, window_bounds = array<i64: 288, 864>}, {pipeline_mode = #tpu.pipeline_mode<synchronous>, transform_indices = @transform_15, window_bounds = array<i64: 1, 864>}, {pipeline_mode = #tpu.pipeline_mode<synchronous>, transform_indices = @transform_16, window_bounds = array<i64: 8, 36, 288>}, {pipeline_mode = #tpu.pipeline_mode<synchronous>, transform_indices = @transform_17, window_bounds = array<i64: 1, 288>}, {pipeline_mode = #tpu.pipeline_mode<synchronous>, transform_indices = @transform_18, window_bounds = array<i64: 288, 288>}, {pipeline_mode = #tpu.pipeline_mode<synchronous>, transform_indices = @transform_19, window_bounds = array<i64: 1, 288>}, {pipeline_mode = #tpu.pipeline_mode<synchronous>, transform_indices = @transform_20, window_bounds = array<i64: 288, 576>}, {pipeline_mode = #tpu.pipeline_mode<synchronous>, transform_indices = @transform_21, window_bounds = array<i64: 1, 576>}, {pipeline_mode = #tpu.pipeline_mode<synchronous>, transform_indices = @transform_22, window_bounds = array<i64: 8, 36, 288>}, {pipeline_mode = #tpu.pipeline_mode<synchronous>, transform_indices = @transform_23, window_bounds = array<i64: 1, 288>}, {pipeline_mode = #tpu.pipeline_mode<synchronous>, transform_indices = @transform_24, window_bounds = array<i64: 1, 288>}, {pipeline_mode = #tpu.pipeline_mode<synchronous>, transform_indices = @transform_25, window_bounds = array<i64: 1, 288>}, {pipeline_mode = #tpu.pipeline_mode<synchronous>, transform_indices = @transform_26, window_bounds = array<i64: 1, 288>}, {pipeline_mode = #tpu.pipeline_mode<synchronous>, transform_indices = @transform_27, window_bounds = array<i64: 1, 288>}, {pipeline_mode = #tpu.pipeline_mode<synchronous>, transform_indices = @transform_28, window_bounds = array<i64: 1, 288>}, {pipeline_mode = #tpu.pipeline_mode<synchronous>, transform_indices = @transform_29, window_bounds = array<i64: 1, 288>}, {pipeline_mode = #tpu.pipeline_mode<synchronous>, transform_indices = @transform_30, window_bounds = array<i64: 288, 256>}, {pipeline_mode = #tpu.pipeline_mode<synchronous>, transform_indices = @transform_31, window_bounds = array<i64: 1, 256>}, {pipeline_mode = #tpu.pipeline_mode<synchronous>, transform_indices = @transform_32, window_bounds = array<i64: 256, 288>}, {pipeline_mode = #tpu.pipeline_mode<synchronous>, transform_indices = @transform_33, window_bounds = array<i64: 1, 288>}, {pipeline_mode = #tpu.pipeline_mode<synchronous>, transform_indices = @transform_34, window_bounds = array<i64: 288, 864>}, {pipeline_mode = #tpu.pipeline_mode<synchronous>, transform_indices = @transform_35, window_bounds = array<i64: 1, 864>}, {pipeline_mode = #tpu.pipeline_mode<synchronous>, transform_indices = @transform_36, window_bounds = array<i64: 8, 36, 288>}, {pipeline_mode = #tpu.pipeline_mode<synchronous>, transform_indices = @transform_37, window_bounds = array<i64: 1, 288>}, {pipeline_mode = #tpu.pipeline_mode<synchronous>, transform_indices = @transform_38, window_bounds = array<i64: 288, 288>}, {pipeline_mode = #tpu.pipeline_mode<synchronous>, transform_indices = @transform_39, window_bounds = array<i64: 1, 288>}, {pipeline_mode = #tpu.pipeline_mode<synchronous>, transform_indices = @transform_40, window_bounds = array<i64: 288, 576>}, {pipeline_mode = #tpu.pipeline_mode<synchronous>, transform_indices = @transform_41, window_bounds = array<i64: 1, 576>}, {pipeline_mode = #tpu.pipeline_mode<synchronous>, transform_indices = @transform_42, window_bounds = array<i64: 8, 36, 288>}, {pipeline_mode = #tpu.pipeline_mode<synchronous>, transform_indices = @transform_43, window_bounds = array<i64: 1, 288>}, {pipeline_mode = #tpu.pipeline_mode<synchronous>, transform_indices = @transform_44, window_bounds = array<i64: 1, 288>}, {pipeline_mode = #tpu.pipeline_mode<synchronous>, transform_indices = @transform_45, window_bounds = array<i64: 1, 288>}, {pipeline_mode = #tpu.pipeline_mode<synchronous>, transform_indices = @transform_46, window_bounds = array<i64: 1, 288>}, {pipeline_mode = #tpu.pipeline_mode<synchronous>, transform_indices = @transform_47, window_bounds = array<i64: 1, 288>}, {pipeline_mode = #tpu.pipeline_mode<synchronous>, transform_indices = @transform_48, window_bounds = array<i64: 1, 288>}, {pipeline_mode = #tpu.pipeline_mode<synchronous>, transform_indices = @transform_49, window_bounds = array<i64: 1, 288>}, {pipeline_mode = #tpu.pipeline_mode<synchronous>, transform_indices = @transform_50, window_bounds = array<i64: 288, 256>}, {pipeline_mode = #tpu.pipeline_mode<synchronous>, transform_indices = @transform_51, window_bounds = array<i64: 1, 256>}, {pipeline_mode = #tpu.pipeline_mode<synchronous>, transform_indices = @transform_52, window_bounds = array<i64: 256, 288>}, {pipeline_mode = #tpu.pipeline_mode<synchronous>, transform_indices = @transform_53, window_bounds = array<i64: 1, 288>}, {transform_indices = @transform_54, window_bounds = array<i64: 1, 8, 288>}]} {
    %c0 = arith.constant 0 : index
    %c0_0 = arith.constant 0 : index
    %c0_1 = arith.constant 0 : index
    %0 = vector.load %arg1[%c0, %c0_0, %c0_1] : memref<1x12x288xf32, #tpu.memory_space<vmem>>, vector<1x12x288xf32>
    %1 = vector.shape_cast %0 : vector<1x12x288xf32> to vector<12x288xf32>
    %c0_2 = arith.constant 0 : index
    %c0_3 = arith.constant 0 : index
    %c0_4 = arith.constant 0 : index
    %2 = vector.load %arg2[%c0_2, %c0_3, %c0_4] : memref<1x16x288xf32, #tpu.memory_space<vmem>>, vector<1x16x288xf32>
    %3 = vector.shape_cast %2 : vector<1x16x288xf32> to vector<16x288xf32>
    %c0_5 = arith.constant 0 : index
    %c0_6 = arith.constant 0 : index
    %c0_7 = arith.constant 0 : index
    %4 = vector.load %arg5[%c0_5, %c0_6, %c0_7] : memref<1x12x12xf32, #tpu.memory_space<vmem>>, vector<1x12x12xf32>
    %5 = vector.shape_cast %4 : vector<1x12x12xf32> to vector<12x12xf32>
    %c0_8 = arith.constant 0 : index
    %c0_9 = arith.constant 0 : index
    %c0_10 = arith.constant 0 : index
    %6 = vector.load %arg6[%c0_8, %c0_9, %c0_10] : memref<1x12x16xf32, #tpu.memory_space<vmem>>, vector<1x12x16xf32>
    %7 = vector.shape_cast %6 : vector<1x12x16xf32> to vector<12x16xf32>
    %c0_11 = arith.constant 0 : index
    %c0_12 = arith.constant 0 : index
    %c0_13 = arith.constant 0 : index
    %8 = vector.load %arg3[%c0_11, %c0_12, %c0_13] : memref<1x12x8xf32, #tpu.memory_space<vmem>>, vector<1x12x8xf32>
    %9 = vector.shape_cast %8 : vector<1x12x8xf32> to vector<12x8xf32>
    %c0_14 = arith.constant 0 : index
    %c0_15 = arith.constant 0 : index
    %10 = vector.load %arg7[%c0_14, %c0_15] : memref<8x288xf32, #tpu.memory_space<vmem>>, vector<8x288xf32>
    %cst = arith.constant dense<0.000000e+00> : vector<12x288xf32>
    %11 = tpu.matmul %9, %10, %cst {dimension_numbers = #tpu.dot_dimension_numbers<[1], [0], [0], [1], [0, 0, 1, 1], [], []>} : vector<12x8xf32>, vector<8x288xf32>, vector<12x288xf32> -> vector<12x288xf32>
    %c0_16 = arith.constant 0 : index
    %c0_17 = arith.constant 0 : index
    %12 = vector.load %arg8[%c0_16, %c0_17] : memref<1x288xf32, #tpu.memory_space<vmem>>, vector<1x288xf32>
    %13 = vector.broadcast %12 : vector<1x288xf32> to vector<12x288xf32>
    %14 = arith.addf %11, %13 : vector<12x288xf32>
    %cst_18 = arith.constant 0.000000e+00 : f32
    %15 = vector.broadcast %cst_18 : f32 to vector<12x288xf32>
    %16 = arith.maximumf %14, %15 : vector<12x288xf32>
    %c0_19 = arith.constant 0 : index
    %c0_20 = arith.constant 0 : index
    %17 = vector.load %arg9[%c0_19, %c0_20] : memref<288x288xf32, #tpu.memory_space<vmem>>, vector<288x288xf32>
    %cst_21 = arith.constant dense<0.000000e+00> : vector<12x288xf32>
    %18 = tpu.matmul %16, %17, %cst_21 {dimension_numbers = #tpu.dot_dimension_numbers<[1], [0], [0], [1], [0, 0, 1, 1], [], []>} : vector<12x288xf32>, vector<288x288xf32>, vector<12x288xf32> -> vector<12x288xf32>
    %c0_22 = arith.constant 0 : index
    %c0_23 = arith.constant 0 : index
    %19 = vector.load %arg10[%c0_22, %c0_23] : memref<1x288xf32, #tpu.memory_space<vmem>>, vector<1x288xf32>
    %20 = vector.broadcast %19 : vector<1x288xf32> to vector<12x288xf32>
    %21 = arith.addf %18, %20 : vector<12x288xf32>
    %c0_24 = arith.constant 0 : index
    %c0_25 = arith.constant 0 : index
    %c0_26 = arith.constant 0 : index
    %22 = vector.load %arg4[%c0_24, %c0_25, %c0_26] : memref<1x16x8xf32, #tpu.memory_space<vmem>>, vector<1x16x8xf32>
    %23 = vector.shape_cast %22 : vector<1x16x8xf32> to vector<16x8xf32>
    %c0_27 = arith.constant 0 : index
    %c0_28 = arith.constant 0 : index
    %24 = vector.load %arg11[%c0_27, %c0_28] : memref<8x288xf32, #tpu.memory_space<vmem>>, vector<8x288xf32>
    %cst_29 = arith.constant dense<0.000000e+00> : vector<16x288xf32>
    %25 = tpu.matmul %23, %24, %cst_29 {dimension_numbers = #tpu.dot_dimension_numbers<[1], [0], [0], [1], [0, 0, 1, 1], [], []>} : vector<16x8xf32>, vector<8x288xf32>, vector<16x288xf32> -> vector<16x288xf32>
    %c0_30 = arith.constant 0 : index
    %c0_31 = arith.constant 0 : index
    %26 = vector.load %arg12[%c0_30, %c0_31] : memref<1x288xf32, #tpu.memory_space<vmem>>, vector<1x288xf32>
    %27 = vector.broadcast %26 : vector<1x288xf32> to vector<16x288xf32>
    %28 = arith.addf %25, %27 : vector<16x288xf32>
    %cst_32 = arith.constant 0.000000e+00 : f32
    %29 = vector.broadcast %cst_32 : f32 to vector<16x288xf32>
    %30 = arith.maximumf %28, %29 : vector<16x288xf32>
    %c0_33 = arith.constant 0 : index
    %c0_34 = arith.constant 0 : index
    %31 = vector.load %arg13[%c0_33, %c0_34] : memref<288x288xf32, #tpu.memory_space<vmem>>, vector<288x288xf32>
    %cst_35 = arith.constant dense<0.000000e+00> : vector<16x288xf32>
    %32 = tpu.matmul %30, %31, %cst_35 {dimension_numbers = #tpu.dot_dimension_numbers<[1], [0], [0], [1], [0, 0, 1, 1], [], []>} : vector<16x288xf32>, vector<288x288xf32>, vector<16x288xf32> -> vector<16x288xf32>
    %c0_36 = arith.constant 0 : index
    %c0_37 = arith.constant 0 : index
    %33 = vector.load %arg14[%c0_36, %c0_37] : memref<1x288xf32, #tpu.memory_space<vmem>>, vector<1x288xf32>
    %34 = vector.broadcast %33 : vector<1x288xf32> to vector<16x288xf32>
    %35 = arith.addf %32, %34 : vector<16x288xf32>
    %36 = arith.addf %3, %35 : vector<16x288xf32>
    %37 = arith.addf %1, %21 : vector<12x288xf32>
    %c0_38 = arith.constant 0 : index
    %c0_39 = arith.constant 0 : index
    %38 = vector.load %arg15[%c0_38, %c0_39] : memref<288x864xf32, #tpu.memory_space<vmem>>, vector<288x864xf32>
    %cst_40 = arith.constant dense<0.000000e+00> : vector<12x864xf32>
    %39 = tpu.matmul %37, %38, %cst_40 {dimension_numbers = #tpu.dot_dimension_numbers<[1], [0], [0], [1], [0, 0, 1, 1], [], []>} : vector<12x288xf32>, vector<288x864xf32>, vector<12x864xf32> -> vector<12x864xf32>
    %c0_41 = arith.constant 0 : index
    %c0_42 = arith.constant 0 : index
    %40 = vector.load %arg16[%c0_41, %c0_42] : memref<1x864xf32, #tpu.memory_space<vmem>>, vector<1x864xf32>
    %41 = vector.broadcast %40 : vector<1x864xf32> to vector<12x864xf32>
    %42 = arith.addf %39, %41 : vector<12x864xf32>
    %43 = vector.extract_strided_slice %42 {offsets = [0, 0], sizes = [12, 288], strides = [1, 1]} : vector<12x864xf32> to vector<12x288xf32>
    %44 = vector.extract_strided_slice %42 {offsets = [0, 288], sizes = [12, 288], strides = [1, 1]} : vector<12x864xf32> to vector<12x288xf32>
    %45 = vector.extract_strided_slice %42 {offsets = [0, 576], sizes = [12, 288], strides = [1, 1]} : vector<12x864xf32> to vector<12x288xf32>
    %46 = vector.extract_strided_slice %43 {offsets = [0, 0], sizes = [12, 36], strides = [1, 1]} : vector<12x288xf32> to vector<12x36xf32>
    %47 = vector.extract_strided_slice %44 {offsets = [0, 0], sizes = [12, 36], strides = [1, 1]} : vector<12x288xf32> to vector<12x36xf32>
    %48 = vector.extract_strided_slice %45 {offsets = [0, 0], sizes = [12, 36], strides = [1, 1]} : vector<12x288xf32> to vector<12x36xf32>
    %cst_43 = arith.constant dense<0.000000e+00> : vector<12x12xf32>
    %49 = tpu.matmul %46, %47, %cst_43 {dimension_numbers = #tpu.dot_dimension_numbers<[1], [1], [0], [0], [0, 0, 1, 0], [], []>} : vector<12x36xf32>, vector<12x36xf32>, vector<12x12xf32> -> vector<12x12xf32>
    %50 = arith.addf %49, %5 : vector<12x12xf32>
    %cst_44 = arith.constant dense<0xFF800000> : vector<12xf32>
    %51 = vector.multi_reduction <maximumf>, %50, %cst_44 [1] : vector<12x12xf32> to vector<12xf32>
    %52 = vector.shape_cast %51 : vector<12xf32> to vector<12x1xf32>
    %53 = vector.broadcast %52 : vector<12x1xf32> to vector<12x12xf32>
    %54 = arith.subf %50, %53 : vector<12x12xf32>
    %55 = math.exp %54 : vector<12x12xf32>
    %cst_45 = arith.constant dense<0.000000e+00> : vector<12xf32>
    %56 = vector.multi_reduction <add>, %55, %cst_45 [1] : vector<12x12xf32> to vector<12xf32>
    %57 = vector.shape_cast %56 : vector<12xf32> to vector<12x1xf32>
    %58 = tpu.reciprocal %57 {approx = true} : vector<12x1xf32> -> vector<12x1xf32>
    %59 = vector.broadcast %58 : vector<12x1xf32> to vector<12x12xf32>
    %60 = arith.mulf %55, %59 : vector<12x12xf32>
    %cst_46 = arith.constant dense<0.000000e+00> : vector<12x36xf32>
    %61 = tpu.matmul %60, %48, %cst_46 {dimension_numbers = #tpu.dot_dimension_numbers<[1], [0], [0], [1], [0, 0, 1, 1], [], []>} : vector<12x12xf32>, vector<12x36xf32>, vector<12x36xf32> -> vector<12x36xf32>
    %c0_47 = arith.constant 0 : index
    %c0_48 = arith.constant 0 : index
    %c0_49 = arith.constant 0 : index
    %62 = vector.load %arg17[%c0_47, %c0_48, %c0_49] : memref<8x36x288xf32, #tpu.memory_space<vmem>>, vector<1x36x288xf32>
    %63 = vector.shape_cast %62 : vector<1x36x288xf32> to vector<36x288xf32>
    %cst_50 = arith.constant dense<0.000000e+00> : vector<12x288xf32>
    %64 = tpu.matmul %61, %63, %cst_50 {dimension_numbers = #tpu.dot_dimension_numbers<[1], [0], [0], [1], [0, 0, 1, 1], [], []>} : vector<12x36xf32>, vector<36x288xf32>, vector<12x288xf32> -> vector<12x288xf32>
    %65 = vector.extract_strided_slice %43 {offsets = [0, 36], sizes = [12, 36], strides = [1, 1]} : vector<12x288xf32> to vector<12x36xf32>
    %66 = vector.extract_strided_slice %44 {offsets = [0, 36], sizes = [12, 36], strides = [1, 1]} : vector<12x288xf32> to vector<12x36xf32>
    %67 = vector.extract_strided_slice %45 {offsets = [0, 36], sizes = [12, 36], strides = [1, 1]} : vector<12x288xf32> to vector<12x36xf32>
    %cst_51 = arith.constant dense<0.000000e+00> : vector<12x12xf32>
    %68 = tpu.matmul %65, %66, %cst_51 {dimension_numbers = #tpu.dot_dimension_numbers<[1], [1], [0], [0], [0, 0, 1, 0], [], []>} : vector<12x36xf32>, vector<12x36xf32>, vector<12x12xf32> -> vector<12x12xf32>
    %69 = arith.addf %68, %5 : vector<12x12xf32>
    %cst_52 = arith.constant dense<0xFF800000> : vector<12xf32>
    %70 = vector.multi_reduction <maximumf>, %69, %cst_52 [1] : vector<12x12xf32> to vector<12xf32>
    %71 = vector.shape_cast %70 : vector<12xf32> to vector<12x1xf32>
    %72 = vector.broadcast %71 : vector<12x1xf32> to vector<12x12xf32>
    %73 = arith.subf %69, %72 : vector<12x12xf32>
    %74 = math.exp %73 : vector<12x12xf32>
    %cst_53 = arith.constant dense<0.000000e+00> : vector<12xf32>
    %75 = vector.multi_reduction <add>, %74, %cst_53 [1] : vector<12x12xf32> to vector<12xf32>
    %76 = vector.shape_cast %75 : vector<12xf32> to vector<12x1xf32>
    %77 = tpu.reciprocal %76 {approx = true} : vector<12x1xf32> -> vector<12x1xf32>
    %78 = vector.broadcast %77 : vector<12x1xf32> to vector<12x12xf32>
    %79 = arith.mulf %74, %78 : vector<12x12xf32>
    %cst_54 = arith.constant dense<0.000000e+00> : vector<12x36xf32>
    %80 = tpu.matmul %79, %67, %cst_54 {dimension_numbers = #tpu.dot_dimension_numbers<[1], [0], [0], [1], [0, 0, 1, 1], [], []>} : vector<12x12xf32>, vector<12x36xf32>, vector<12x36xf32> -> vector<12x36xf32>
    %c1 = arith.constant 1 : index
    %c0_55 = arith.constant 0 : index
    %c0_56 = arith.constant 0 : index
    %81 = vector.load %arg17[%c1, %c0_55, %c0_56] : memref<8x36x288xf32, #tpu.memory_space<vmem>>, vector<1x36x288xf32>
    %82 = vector.shape_cast %81 : vector<1x36x288xf32> to vector<36x288xf32>
    %cst_57 = arith.constant dense<0.000000e+00> : vector<12x288xf32>
    %83 = tpu.matmul %80, %82, %cst_57 {dimension_numbers = #tpu.dot_dimension_numbers<[1], [0], [0], [1], [0, 0, 1, 1], [], []>} : vector<12x36xf32>, vector<36x288xf32>, vector<12x288xf32> -> vector<12x288xf32>
    %84 = arith.addf %64, %83 : vector<12x288xf32>
    %85 = vector.extract_strided_slice %43 {offsets = [0, 72], sizes = [12, 36], strides = [1, 1]} : vector<12x288xf32> to vector<12x36xf32>
    %86 = vector.extract_strided_slice %44 {offsets = [0, 72], sizes = [12, 36], strides = [1, 1]} : vector<12x288xf32> to vector<12x36xf32>
    %87 = vector.extract_strided_slice %45 {offsets = [0, 72], sizes = [12, 36], strides = [1, 1]} : vector<12x288xf32> to vector<12x36xf32>
    %cst_58 = arith.constant dense<0.000000e+00> : vector<12x12xf32>
    %88 = tpu.matmul %85, %86, %cst_58 {dimension_numbers = #tpu.dot_dimension_numbers<[1], [1], [0], [0], [0, 0, 1, 0], [], []>} : vector<12x36xf32>, vector<12x36xf32>, vector<12x12xf32> -> vector<12x12xf32>
    %89 = arith.addf %88, %5 : vector<12x12xf32>
    %cst_59 = arith.constant dense<0xFF800000> : vector<12xf32>
    %90 = vector.multi_reduction <maximumf>, %89, %cst_59 [1] : vector<12x12xf32> to vector<12xf32>
    %91 = vector.shape_cast %90 : vector<12xf32> to vector<12x1xf32>
    %92 = vector.broadcast %91 : vector<12x1xf32> to vector<12x12xf32>
    %93 = arith.subf %89, %92 : vector<12x12xf32>
    %94 = math.exp %93 : vector<12x12xf32>
    %cst_60 = arith.constant dense<0.000000e+00> : vector<12xf32>
    %95 = vector.multi_reduction <add>, %94, %cst_60 [1] : vector<12x12xf32> to vector<12xf32>
    %96 = vector.shape_cast %95 : vector<12xf32> to vector<12x1xf32>
    %97 = tpu.reciprocal %96 {approx = true} : vector<12x1xf32> -> vector<12x1xf32>
    %98 = vector.broadcast %97 : vector<12x1xf32> to vector<12x12xf32>
    %99 = arith.mulf %94, %98 : vector<12x12xf32>
    %cst_61 = arith.constant dense<0.000000e+00> : vector<12x36xf32>
    %100 = tpu.matmul %99, %87, %cst_61 {dimension_numbers = #tpu.dot_dimension_numbers<[1], [0], [0], [1], [0, 0, 1, 1], [], []>} : vector<12x12xf32>, vector<12x36xf32>, vector<12x36xf32> -> vector<12x36xf32>
    %c2 = arith.constant 2 : index
    %c0_62 = arith.constant 0 : index
    %c0_63 = arith.constant 0 : index
    %101 = vector.load %arg17[%c2, %c0_62, %c0_63] : memref<8x36x288xf32, #tpu.memory_space<vmem>>, vector<1x36x288xf32>
    %102 = vector.shape_cast %101 : vector<1x36x288xf32> to vector<36x288xf32>
    %cst_64 = arith.constant dense<0.000000e+00> : vector<12x288xf32>
    %103 = tpu.matmul %100, %102, %cst_64 {dimension_numbers = #tpu.dot_dimension_numbers<[1], [0], [0], [1], [0, 0, 1, 1], [], []>} : vector<12x36xf32>, vector<36x288xf32>, vector<12x288xf32> -> vector<12x288xf32>
    %104 = arith.addf %84, %103 : vector<12x288xf32>
    %105 = vector.extract_strided_slice %43 {offsets = [0, 108], sizes = [12, 36], strides = [1, 1]} : vector<12x288xf32> to vector<12x36xf32>
    %106 = vector.extract_strided_slice %44 {offsets = [0, 108], sizes = [12, 36], strides = [1, 1]} : vector<12x288xf32> to vector<12x36xf32>
    %107 = vector.extract_strided_slice %45 {offsets = [0, 108], sizes = [12, 36], strides = [1, 1]} : vector<12x288xf32> to vector<12x36xf32>
    %cst_65 = arith.constant dense<0.000000e+00> : vector<12x12xf32>
    %108 = tpu.matmul %105, %106, %cst_65 {dimension_numbers = #tpu.dot_dimension_numbers<[1], [1], [0], [0], [0, 0, 1, 0], [], []>} : vector<12x36xf32>, vector<12x36xf32>, vector<12x12xf32> -> vector<12x12xf32>
    %109 = arith.addf %108, %5 : vector<12x12xf32>
    %cst_66 = arith.constant dense<0xFF800000> : vector<12xf32>
    %110 = vector.multi_reduction <maximumf>, %109, %cst_66 [1] : vector<12x12xf32> to vector<12xf32>
    %111 = vector.shape_cast %110 : vector<12xf32> to vector<12x1xf32>
    %112 = vector.broadcast %111 : vector<12x1xf32> to vector<12x12xf32>
    %113 = arith.subf %109, %112 : vector<12x12xf32>
    %114 = math.exp %113 : vector<12x12xf32>
    %cst_67 = arith.constant dense<0.000000e+00> : vector<12xf32>
    %115 = vector.multi_reduction <add>, %114, %cst_67 [1] : vector<12x12xf32> to vector<12xf32>
    %116 = vector.shape_cast %115 : vector<12xf32> to vector<12x1xf32>
    %117 = tpu.reciprocal %116 {approx = true} : vector<12x1xf32> -> vector<12x1xf32>
    %118 = vector.broadcast %117 : vector<12x1xf32> to vector<12x12xf32>
    %119 = arith.mulf %114, %118 : vector<12x12xf32>
    %cst_68 = arith.constant dense<0.000000e+00> : vector<12x36xf32>
    %120 = tpu.matmul %119, %107, %cst_68 {dimension_numbers = #tpu.dot_dimension_numbers<[1], [0], [0], [1], [0, 0, 1, 1], [], []>} : vector<12x12xf32>, vector<12x36xf32>, vector<12x36xf32> -> vector<12x36xf32>
    %c3 = arith.constant 3 : index
    %c0_69 = arith.constant 0 : index
    %c0_70 = arith.constant 0 : index
    %121 = vector.load %arg17[%c3, %c0_69, %c0_70] : memref<8x36x288xf32, #tpu.memory_space<vmem>>, vector<1x36x288xf32>
    %122 = vector.shape_cast %121 : vector<1x36x288xf32> to vector<36x288xf32>
    %cst_71 = arith.constant dense<0.000000e+00> : vector<12x288xf32>
    %123 = tpu.matmul %120, %122, %cst_71 {dimension_numbers = #tpu.dot_dimension_numbers<[1], [0], [0], [1], [0, 0, 1, 1], [], []>} : vector<12x36xf32>, vector<36x288xf32>, vector<12x288xf32> -> vector<12x288xf32>
    %124 = arith.addf %104, %123 : vector<12x288xf32>
    %125 = vector.extract_strided_slice %43 {offsets = [0, 144], sizes = [12, 36], strides = [1, 1]} : vector<12x288xf32> to vector<12x36xf32>
    %126 = vector.extract_strided_slice %44 {offsets = [0, 144], sizes = [12, 36], strides = [1, 1]} : vector<12x288xf32> to vector<12x36xf32>
    %127 = vector.extract_strided_slice %45 {offsets = [0, 144], sizes = [12, 36], strides = [1, 1]} : vector<12x288xf32> to vector<12x36xf32>
    %cst_72 = arith.constant dense<0.000000e+00> : vector<12x12xf32>
    %128 = tpu.matmul %125, %126, %cst_72 {dimension_numbers = #tpu.dot_dimension_numbers<[1], [1], [0], [0], [0, 0, 1, 0], [], []>} : vector<12x36xf32>, vector<12x36xf32>, vector<12x12xf32> -> vector<12x12xf32>
    %129 = arith.addf %128, %5 : vector<12x12xf32>
    %cst_73 = arith.constant dense<0xFF800000> : vector<12xf32>
    %130 = vector.multi_reduction <maximumf>, %129, %cst_73 [1] : vector<12x12xf32> to vector<12xf32>
    %131 = vector.shape_cast %130 : vector<12xf32> to vector<12x1xf32>
    %132 = vector.broadcast %131 : vector<12x1xf32> to vector<12x12xf32>
    %133 = arith.subf %129, %132 : vector<12x12xf32>
    %134 = math.exp %133 : vector<12x12xf32>
    %cst_74 = arith.constant dense<0.000000e+00> : vector<12xf32>
    %135 = vector.multi_reduction <add>, %134, %cst_74 [1] : vector<12x12xf32> to vector<12xf32>
    %136 = vector.shape_cast %135 : vector<12xf32> to vector<12x1xf32>
    %137 = tpu.reciprocal %136 {approx = true} : vector<12x1xf32> -> vector<12x1xf32>
    %138 = vector.broadcast %137 : vector<12x1xf32> to vector<12x12xf32>
    %139 = arith.mulf %134, %138 : vector<12x12xf32>
    %cst_75 = arith.constant dense<0.000000e+00> : vector<12x36xf32>
    %140 = tpu.matmul %139, %127, %cst_75 {dimension_numbers = #tpu.dot_dimension_numbers<[1], [0], [0], [1], [0, 0, 1, 1], [], []>} : vector<12x12xf32>, vector<12x36xf32>, vector<12x36xf32> -> vector<12x36xf32>
    %c4 = arith.constant 4 : index
    %c0_76 = arith.constant 0 : index
    %c0_77 = arith.constant 0 : index
    %141 = vector.load %arg17[%c4, %c0_76, %c0_77] : memref<8x36x288xf32, #tpu.memory_space<vmem>>, vector<1x36x288xf32>
    %142 = vector.shape_cast %141 : vector<1x36x288xf32> to vector<36x288xf32>
    %cst_78 = arith.constant dense<0.000000e+00> : vector<12x288xf32>
    %143 = tpu.matmul %140, %142, %cst_78 {dimension_numbers = #tpu.dot_dimension_numbers<[1], [0], [0], [1], [0, 0, 1, 1], [], []>} : vector<12x36xf32>, vector<36x288xf32>, vector<12x288xf32> -> vector<12x288xf32>
    %144 = arith.addf %124, %143 : vector<12x288xf32>
    %145 = vector.extract_strided_slice %43 {offsets = [0, 180], sizes = [12, 36], strides = [1, 1]} : vector<12x288xf32> to vector<12x36xf32>
    %146 = vector.extract_strided_slice %44 {offsets = [0, 180], sizes = [12, 36], strides = [1, 1]} : vector<12x288xf32> to vector<12x36xf32>
    %147 = vector.extract_strided_slice %45 {offsets = [0, 180], sizes = [12, 36], strides = [1, 1]} : vector<12x288xf32> to vector<12x36xf32>
    %cst_79 = arith.constant dense<0.000000e+00> : vector<12x12xf32>
    %148 = tpu.matmul %145, %146, %cst_79 {dimension_numbers = #tpu.dot_dimension_numbers<[1], [1], [0], [0], [0, 0, 1, 0], [], []>} : vector<12x36xf32>, vector<12x36xf32>, vector<12x12xf32> -> vector<12x12xf32>
    %149 = arith.addf %148, %5 : vector<12x12xf32>
    %cst_80 = arith.constant dense<0xFF800000> : vector<12xf32>
    %150 = vector.multi_reduction <maximumf>, %149, %cst_80 [1] : vector<12x12xf32> to vector<12xf32>
    %151 = vector.shape_cast %150 : vector<12xf32> to vector<12x1xf32>
    %152 = vector.broadcast %151 : vector<12x1xf32> to vector<12x12xf32>
    %153 = arith.subf %149, %152 : vector<12x12xf32>
    %154 = math.exp %153 : vector<12x12xf32>
    %cst_81 = arith.constant dense<0.000000e+00> : vector<12xf32>
    %155 = vector.multi_reduction <add>, %154, %cst_81 [1] : vector<12x12xf32> to vector<12xf32>
    %156 = vector.shape_cast %155 : vector<12xf32> to vector<12x1xf32>
    %157 = tpu.reciprocal %156 {approx = true} : vector<12x1xf32> -> vector<12x1xf32>
    %158 = vector.broadcast %157 : vector<12x1xf32> to vector<12x12xf32>
    %159 = arith.mulf %154, %158 : vector<12x12xf32>
    %cst_82 = arith.constant dense<0.000000e+00> : vector<12x36xf32>
    %160 = tpu.matmul %159, %147, %cst_82 {dimension_numbers = #tpu.dot_dimension_numbers<[1], [0], [0], [1], [0, 0, 1, 1], [], []>} : vector<12x12xf32>, vector<12x36xf32>, vector<12x36xf32> -> vector<12x36xf32>
    %c5 = arith.constant 5 : index
    %c0_83 = arith.constant 0 : index
    %c0_84 = arith.constant 0 : index
    %161 = vector.load %arg17[%c5, %c0_83, %c0_84] : memref<8x36x288xf32, #tpu.memory_space<vmem>>, vector<1x36x288xf32>
    %162 = vector.shape_cast %161 : vector<1x36x288xf32> to vector<36x288xf32>
    %cst_85 = arith.constant dense<0.000000e+00> : vector<12x288xf32>
    %163 = tpu.matmul %160, %162, %cst_85 {dimension_numbers = #tpu.dot_dimension_numbers<[1], [0], [0], [1], [0, 0, 1, 1], [], []>} : vector<12x36xf32>, vector<36x288xf32>, vector<12x288xf32> -> vector<12x288xf32>
    %164 = arith.addf %144, %163 : vector<12x288xf32>
    %165 = vector.extract_strided_slice %43 {offsets = [0, 216], sizes = [12, 36], strides = [1, 1]} : vector<12x288xf32> to vector<12x36xf32>
    %166 = vector.extract_strided_slice %44 {offsets = [0, 216], sizes = [12, 36], strides = [1, 1]} : vector<12x288xf32> to vector<12x36xf32>
    %167 = vector.extract_strided_slice %45 {offsets = [0, 216], sizes = [12, 36], strides = [1, 1]} : vector<12x288xf32> to vector<12x36xf32>
    %cst_86 = arith.constant dense<0.000000e+00> : vector<12x12xf32>
    %168 = tpu.matmul %165, %166, %cst_86 {dimension_numbers = #tpu.dot_dimension_numbers<[1], [1], [0], [0], [0, 0, 1, 0], [], []>} : vector<12x36xf32>, vector<12x36xf32>, vector<12x12xf32> -> vector<12x12xf32>
    %169 = arith.addf %168, %5 : vector<12x12xf32>
    %cst_87 = arith.constant dense<0xFF800000> : vector<12xf32>
    %170 = vector.multi_reduction <maximumf>, %169, %cst_87 [1] : vector<12x12xf32> to vector<12xf32>
    %171 = vector.shape_cast %170 : vector<12xf32> to vector<12x1xf32>
    %172 = vector.broadcast %171 : vector<12x1xf32> to vector<12x12xf32>
    %173 = arith.subf %169, %172 : vector<12x12xf32>
    %174 = math.exp %173 : vector<12x12xf32>
    %cst_88 = arith.constant dense<0.000000e+00> : vector<12xf32>
    %175 = vector.multi_reduction <add>, %174, %cst_88 [1] : vector<12x12xf32> to vector<12xf32>
    %176 = vector.shape_cast %175 : vector<12xf32> to vector<12x1xf32>
    %177 = tpu.reciprocal %176 {approx = true} : vector<12x1xf32> -> vector<12x1xf32>
    %178 = vector.broadcast %177 : vector<12x1xf32> to vector<12x12xf32>
    %179 = arith.mulf %174, %178 : vector<12x12xf32>
    %cst_89 = arith.constant dense<0.000000e+00> : vector<12x36xf32>
    %180 = tpu.matmul %179, %167, %cst_89 {dimension_numbers = #tpu.dot_dimension_numbers<[1], [0], [0], [1], [0, 0, 1, 1], [], []>} : vector<12x12xf32>, vector<12x36xf32>, vector<12x36xf32> -> vector<12x36xf32>
    %c6 = arith.constant 6 : index
    %c0_90 = arith.constant 0 : index
    %c0_91 = arith.constant 0 : index
    %181 = vector.load %arg17[%c6, %c0_90, %c0_91] : memref<8x36x288xf32, #tpu.memory_space<vmem>>, vector<1x36x288xf32>
    %182 = vector.shape_cast %181 : vector<1x36x288xf32> to vector<36x288xf32>
    %cst_92 = arith.constant dense<0.000000e+00> : vector<12x288xf32>
    %183 = tpu.matmul %180, %182, %cst_92 {dimension_numbers = #tpu.dot_dimension_numbers<[1], [0], [0], [1], [0, 0, 1, 1], [], []>} : vector<12x36xf32>, vector<36x288xf32>, vector<12x288xf32> -> vector<12x288xf32>
    %184 = arith.addf %164, %183 : vector<12x288xf32>
    %185 = vector.extract_strided_slice %43 {offsets = [0, 252], sizes = [12, 36], strides = [1, 1]} : vector<12x288xf32> to vector<12x36xf32>
    %186 = vector.extract_strided_slice %44 {offsets = [0, 252], sizes = [12, 36], strides = [1, 1]} : vector<12x288xf32> to vector<12x36xf32>
    %187 = vector.extract_strided_slice %45 {offsets = [0, 252], sizes = [12, 36], strides = [1, 1]} : vector<12x288xf32> to vector<12x36xf32>
    %cst_93 = arith.constant dense<0.000000e+00> : vector<12x12xf32>
    %188 = tpu.matmul %185, %186, %cst_93 {dimension_numbers = #tpu.dot_dimension_numbers<[1], [1], [0], [0], [0, 0, 1, 0], [], []>} : vector<12x36xf32>, vector<12x36xf32>, vector<12x12xf32> -> vector<12x12xf32>
    %189 = arith.addf %188, %5 : vector<12x12xf32>
    %cst_94 = arith.constant dense<0xFF800000> : vector<12xf32>
    %190 = vector.multi_reduction <maximumf>, %189, %cst_94 [1] : vector<12x12xf32> to vector<12xf32>
    %191 = vector.shape_cast %190 : vector<12xf32> to vector<12x1xf32>
    %192 = vector.broadcast %191 : vector<12x1xf32> to vector<12x12xf32>
    %193 = arith.subf %189, %192 : vector<12x12xf32>
    %194 = math.exp %193 : vector<12x12xf32>
    %cst_95 = arith.constant dense<0.000000e+00> : vector<12xf32>
    %195 = vector.multi_reduction <add>, %194, %cst_95 [1] : vector<12x12xf32> to vector<12xf32>
    %196 = vector.shape_cast %195 : vector<12xf32> to vector<12x1xf32>
    %197 = tpu.reciprocal %196 {approx = true} : vector<12x1xf32> -> vector<12x1xf32>
    %198 = vector.broadcast %197 : vector<12x1xf32> to vector<12x12xf32>
    %199 = arith.mulf %194, %198 : vector<12x12xf32>
    %cst_96 = arith.constant dense<0.000000e+00> : vector<12x36xf32>
    %200 = tpu.matmul %199, %187, %cst_96 {dimension_numbers = #tpu.dot_dimension_numbers<[1], [0], [0], [1], [0, 0, 1, 1], [], []>} : vector<12x12xf32>, vector<12x36xf32>, vector<12x36xf32> -> vector<12x36xf32>
    %c7 = arith.constant 7 : index
    %c0_97 = arith.constant 0 : index
    %c0_98 = arith.constant 0 : index
    %201 = vector.load %arg17[%c7, %c0_97, %c0_98] : memref<8x36x288xf32, #tpu.memory_space<vmem>>, vector<1x36x288xf32>
    %202 = vector.shape_cast %201 : vector<1x36x288xf32> to vector<36x288xf32>
    %cst_99 = arith.constant dense<0.000000e+00> : vector<12x288xf32>
    %203 = tpu.matmul %200, %202, %cst_99 {dimension_numbers = #tpu.dot_dimension_numbers<[1], [0], [0], [1], [0, 0, 1, 1], [], []>} : vector<12x36xf32>, vector<36x288xf32>, vector<12x288xf32> -> vector<12x288xf32>
    %204 = arith.addf %184, %203 : vector<12x288xf32>
    %c0_100 = arith.constant 0 : index
    %c0_101 = arith.constant 0 : index
    %205 = vector.load %arg18[%c0_100, %c0_101] : memref<1x288xf32, #tpu.memory_space<vmem>>, vector<1x288xf32>
    %206 = vector.broadcast %205 : vector<1x288xf32> to vector<12x288xf32>
    %207 = arith.addf %204, %206 : vector<12x288xf32>
    %208 = arith.addf %1, %207 : vector<12x288xf32>
    %cst_102 = arith.constant dense<0.000000e+00> : vector<12xf32>
    %209 = vector.multi_reduction <add>, %208, %cst_102 [1] : vector<12x288xf32> to vector<12xf32>
    %210 = vector.shape_cast %209 : vector<12xf32> to vector<12x1xf32>
    %cst_103 = arith.constant 2.880000e+02 : f32
    %211 = vector.broadcast %cst_103 : f32 to vector<12x1xf32>
    %212 = arith.divf %210, %211 : vector<12x1xf32>
    %213 = vector.broadcast %212 : vector<12x1xf32> to vector<12x288xf32>
    %214 = arith.subf %208, %213 : vector<12x288xf32>
    %215 = arith.mulf %214, %214 : vector<12x288xf32>
    %cst_104 = arith.constant dense<0.000000e+00> : vector<12xf32>
    %216 = vector.multi_reduction <add>, %215, %cst_104 [1] : vector<12x288xf32> to vector<12xf32>
    %217 = vector.shape_cast %216 : vector<12xf32> to vector<12x1xf32>
    %cst_105 = arith.constant 2.880000e+02 : f32
    %218 = vector.broadcast %cst_105 : f32 to vector<12x1xf32>
    %219 = arith.divf %217, %218 : vector<12x1xf32>
    %220 = vector.broadcast %212 : vector<12x1xf32> to vector<12x288xf32>
    %221 = arith.subf %208, %220 : vector<12x288xf32>
    %cst_106 = arith.constant 9.99999974E-6 : f32
    %222 = vector.broadcast %cst_106 : f32 to vector<12x1xf32>
    %223 = arith.addf %219, %222 : vector<12x1xf32>
    %224 = math.rsqrt %223 : vector<12x1xf32>
    %225 = vector.broadcast %224 : vector<12x1xf32> to vector<12x288xf32>
    %226 = arith.mulf %221, %225 : vector<12x288xf32>
    %c0_107 = arith.constant 0 : index
    %c0_108 = arith.constant 0 : index
    %227 = vector.load %arg25[%c0_107, %c0_108] : memref<1x288xf32, #tpu.memory_space<vmem>>, vector<1x288xf32>
    %228 = vector.broadcast %227 : vector<1x288xf32> to vector<12x288xf32>
    %229 = arith.mulf %226, %228 : vector<12x288xf32>
    %c0_109 = arith.constant 0 : index
    %c0_110 = arith.constant 0 : index
    %230 = vector.load %arg26[%c0_109, %c0_110] : memref<1x288xf32, #tpu.memory_space<vmem>>, vector<1x288xf32>
    %231 = vector.broadcast %230 : vector<1x288xf32> to vector<12x288xf32>
    %232 = arith.addf %229, %231 : vector<12x288xf32>
    %233 = arith.addf %232, %21 : vector<12x288xf32>
    %c0_111 = arith.constant 0 : index
    %c0_112 = arith.constant 0 : index
    %234 = vector.load %arg19[%c0_111, %c0_112] : memref<288x288xf32, #tpu.memory_space<vmem>>, vector<288x288xf32>
    %cst_113 = arith.constant dense<0.000000e+00> : vector<12x288xf32>
    %235 = tpu.matmul %233, %234, %cst_113 {dimension_numbers = #tpu.dot_dimension_numbers<[1], [0], [0], [1], [0, 0, 1, 1], [], []>} : vector<12x288xf32>, vector<288x288xf32>, vector<12x288xf32> -> vector<12x288xf32>
    %c0_114 = arith.constant 0 : index
    %c0_115 = arith.constant 0 : index
    %236 = vector.load %arg20[%c0_114, %c0_115] : memref<1x288xf32, #tpu.memory_space<vmem>>, vector<1x288xf32>
    %237 = vector.broadcast %236 : vector<1x288xf32> to vector<12x288xf32>
    %238 = arith.addf %235, %237 : vector<12x288xf32>
    %c0_116 = arith.constant 0 : index
    %c0_117 = arith.constant 0 : index
    %239 = vector.load %arg21[%c0_116, %c0_117] : memref<288x576xf32, #tpu.memory_space<vmem>>, vector<288x576xf32>
    %cst_118 = arith.constant dense<0.000000e+00> : vector<16x576xf32>
    %240 = tpu.matmul %36, %239, %cst_118 {dimension_numbers = #tpu.dot_dimension_numbers<[1], [0], [0], [1], [0, 0, 1, 1], [], []>} : vector<16x288xf32>, vector<288x576xf32>, vector<16x576xf32> -> vector<16x576xf32>
    %c0_119 = arith.constant 0 : index
    %c0_120 = arith.constant 0 : index
    %241 = vector.load %arg22[%c0_119, %c0_120] : memref<1x576xf32, #tpu.memory_space<vmem>>, vector<1x576xf32>
    %242 = vector.broadcast %241 : vector<1x576xf32> to vector<16x576xf32>
    %243 = arith.addf %240, %242 : vector<16x576xf32>
    %244 = vector.extract_strided_slice %243 {offsets = [0, 0], sizes = [16, 288], strides = [1, 1]} : vector<16x576xf32> to vector<16x288xf32>
    %245 = vector.extract_strided_slice %243 {offsets = [0, 288], sizes = [16, 288], strides = [1, 1]} : vector<16x576xf32> to vector<16x288xf32>
    %246 = vector.extract_strided_slice %238 {offsets = [0, 0], sizes = [12, 36], strides = [1, 1]} : vector<12x288xf32> to vector<12x36xf32>
    %247 = vector.extract_strided_slice %244 {offsets = [0, 0], sizes = [16, 36], strides = [1, 1]} : vector<16x288xf32> to vector<16x36xf32>
    %248 = vector.extract_strided_slice %245 {offsets = [0, 0], sizes = [16, 36], strides = [1, 1]} : vector<16x288xf32> to vector<16x36xf32>
    %cst_121 = arith.constant dense<0.000000e+00> : vector<12x16xf32>
    %249 = tpu.matmul %246, %247, %cst_121 {dimension_numbers = #tpu.dot_dimension_numbers<[1], [1], [0], [0], [0, 0, 1, 0], [], []>} : vector<12x36xf32>, vector<16x36xf32>, vector<12x16xf32> -> vector<12x16xf32>
    %250 = arith.addf %249, %7 : vector<12x16xf32>
    %cst_122 = arith.constant dense<0xFF800000> : vector<12xf32>
    %251 = vector.multi_reduction <maximumf>, %250, %cst_122 [1] : vector<12x16xf32> to vector<12xf32>
    %252 = vector.shape_cast %251 : vector<12xf32> to vector<12x1xf32>
    %253 = vector.broadcast %252 : vector<12x1xf32> to vector<12x16xf32>
    %254 = arith.subf %250, %253 : vector<12x16xf32>
    %255 = math.exp %254 : vector<12x16xf32>
    %cst_123 = arith.constant dense<0.000000e+00> : vector<12xf32>
    %256 = vector.multi_reduction <add>, %255, %cst_123 [1] : vector<12x16xf32> to vector<12xf32>
    %257 = vector.shape_cast %256 : vector<12xf32> to vector<12x1xf32>
    %258 = tpu.reciprocal %257 {approx = true} : vector<12x1xf32> -> vector<12x1xf32>
    %259 = vector.broadcast %258 : vector<12x1xf32> to vector<12x16xf32>
    %260 = arith.mulf %255, %259 : vector<12x16xf32>
    %cst_124 = arith.constant dense<0.000000e+00> : vector<12x36xf32>
    %261 = tpu.matmul %260, %248, %cst_124 {dimension_numbers = #tpu.dot_dimension_numbers<[1], [0], [0], [1], [0, 0, 1, 1], [], []>} : vector<12x16xf32>, vector<16x36xf32>, vector<12x36xf32> -> vector<12x36xf32>
    %c0_125 = arith.constant 0 : index
    %c0_126 = arith.constant 0 : index
    %c0_127 = arith.constant 0 : index
    %262 = vector.load %arg23[%c0_125, %c0_126, %c0_127] : memref<8x36x288xf32, #tpu.memory_space<vmem>>, vector<1x36x288xf32>
    %263 = vector.shape_cast %262 : vector<1x36x288xf32> to vector<36x288xf32>
    %cst_128 = arith.constant dense<0.000000e+00> : vector<12x288xf32>
    %264 = tpu.matmul %261, %263, %cst_128 {dimension_numbers = #tpu.dot_dimension_numbers<[1], [0], [0], [1], [0, 0, 1, 1], [], []>} : vector<12x36xf32>, vector<36x288xf32>, vector<12x288xf32> -> vector<12x288xf32>
    %265 = vector.extract_strided_slice %238 {offsets = [0, 36], sizes = [12, 36], strides = [1, 1]} : vector<12x288xf32> to vector<12x36xf32>
    %266 = vector.extract_strided_slice %244 {offsets = [0, 36], sizes = [16, 36], strides = [1, 1]} : vector<16x288xf32> to vector<16x36xf32>
    %267 = vector.extract_strided_slice %245 {offsets = [0, 36], sizes = [16, 36], strides = [1, 1]} : vector<16x288xf32> to vector<16x36xf32>
    %cst_129 = arith.constant dense<0.000000e+00> : vector<12x16xf32>
    %268 = tpu.matmul %265, %266, %cst_129 {dimension_numbers = #tpu.dot_dimension_numbers<[1], [1], [0], [0], [0, 0, 1, 0], [], []>} : vector<12x36xf32>, vector<16x36xf32>, vector<12x16xf32> -> vector<12x16xf32>
    %269 = arith.addf %268, %7 : vector<12x16xf32>
    %cst_130 = arith.constant dense<0xFF800000> : vector<12xf32>
    %270 = vector.multi_reduction <maximumf>, %269, %cst_130 [1] : vector<12x16xf32> to vector<12xf32>
    %271 = vector.shape_cast %270 : vector<12xf32> to vector<12x1xf32>
    %272 = vector.broadcast %271 : vector<12x1xf32> to vector<12x16xf32>
    %273 = arith.subf %269, %272 : vector<12x16xf32>
    %274 = math.exp %273 : vector<12x16xf32>
    %cst_131 = arith.constant dense<0.000000e+00> : vector<12xf32>
    %275 = vector.multi_reduction <add>, %274, %cst_131 [1] : vector<12x16xf32> to vector<12xf32>
    %276 = vector.shape_cast %275 : vector<12xf32> to vector<12x1xf32>
    %277 = tpu.reciprocal %276 {approx = true} : vector<12x1xf32> -> vector<12x1xf32>
    %278 = vector.broadcast %277 : vector<12x1xf32> to vector<12x16xf32>
    %279 = arith.mulf %274, %278 : vector<12x16xf32>
    %cst_132 = arith.constant dense<0.000000e+00> : vector<12x36xf32>
    %280 = tpu.matmul %279, %267, %cst_132 {dimension_numbers = #tpu.dot_dimension_numbers<[1], [0], [0], [1], [0, 0, 1, 1], [], []>} : vector<12x16xf32>, vector<16x36xf32>, vector<12x36xf32> -> vector<12x36xf32>
    %c1_133 = arith.constant 1 : index
    %c0_134 = arith.constant 0 : index
    %c0_135 = arith.constant 0 : index
    %281 = vector.load %arg23[%c1_133, %c0_134, %c0_135] : memref<8x36x288xf32, #tpu.memory_space<vmem>>, vector<1x36x288xf32>
    %282 = vector.shape_cast %281 : vector<1x36x288xf32> to vector<36x288xf32>
    %cst_136 = arith.constant dense<0.000000e+00> : vector<12x288xf32>
    %283 = tpu.matmul %280, %282, %cst_136 {dimension_numbers = #tpu.dot_dimension_numbers<[1], [0], [0], [1], [0, 0, 1, 1], [], []>} : vector<12x36xf32>, vector<36x288xf32>, vector<12x288xf32> -> vector<12x288xf32>
    %284 = arith.addf %264, %283 : vector<12x288xf32>
    %285 = vector.extract_strided_slice %238 {offsets = [0, 72], sizes = [12, 36], strides = [1, 1]} : vector<12x288xf32> to vector<12x36xf32>
    %286 = vector.extract_strided_slice %244 {offsets = [0, 72], sizes = [16, 36], strides = [1, 1]} : vector<16x288xf32> to vector<16x36xf32>
    %287 = vector.extract_strided_slice %245 {offsets = [0, 72], sizes = [16, 36], strides = [1, 1]} : vector<16x288xf32> to vector<16x36xf32>
    %cst_137 = arith.constant dense<0.000000e+00> : vector<12x16xf32>
    %288 = tpu.matmul %285, %286, %cst_137 {dimension_numbers = #tpu.dot_dimension_numbers<[1], [1], [0], [0], [0, 0, 1, 0], [], []>} : vector<12x36xf32>, vector<16x36xf32>, vector<12x16xf32> -> vector<12x16xf32>
    %289 = arith.addf %288, %7 : vector<12x16xf32>
    %cst_138 = arith.constant dense<0xFF800000> : vector<12xf32>
    %290 = vector.multi_reduction <maximumf>, %289, %cst_138 [1] : vector<12x16xf32> to vector<12xf32>
    %291 = vector.shape_cast %290 : vector<12xf32> to vector<12x1xf32>
    %292 = vector.broadcast %291 : vector<12x1xf32> to vector<12x16xf32>
    %293 = arith.subf %289, %292 : vector<12x16xf32>
    %294 = math.exp %293 : vector<12x16xf32>
    %cst_139 = arith.constant dense<0.000000e+00> : vector<12xf32>
    %295 = vector.multi_reduction <add>, %294, %cst_139 [1] : vector<12x16xf32> to vector<12xf32>
    %296 = vector.shape_cast %295 : vector<12xf32> to vector<12x1xf32>
    %297 = tpu.reciprocal %296 {approx = true} : vector<12x1xf32> -> vector<12x1xf32>
    %298 = vector.broadcast %297 : vector<12x1xf32> to vector<12x16xf32>
    %299 = arith.mulf %294, %298 : vector<12x16xf32>
    %cst_140 = arith.constant dense<0.000000e+00> : vector<12x36xf32>
    %300 = tpu.matmul %299, %287, %cst_140 {dimension_numbers = #tpu.dot_dimension_numbers<[1], [0], [0], [1], [0, 0, 1, 1], [], []>} : vector<12x16xf32>, vector<16x36xf32>, vector<12x36xf32> -> vector<12x36xf32>
    %c2_141 = arith.constant 2 : index
    %c0_142 = arith.constant 0 : index
    %c0_143 = arith.constant 0 : index
    %301 = vector.load %arg23[%c2_141, %c0_142, %c0_143] : memref<8x36x288xf32, #tpu.memory_space<vmem>>, vector<1x36x288xf32>
    %302 = vector.shape_cast %301 : vector<1x36x288xf32> to vector<36x288xf32>
    %cst_144 = arith.constant dense<0.000000e+00> : vector<12x288xf32>
    %303 = tpu.matmul %300, %302, %cst_144 {dimension_numbers = #tpu.dot_dimension_numbers<[1], [0], [0], [1], [0, 0, 1, 1], [], []>} : vector<12x36xf32>, vector<36x288xf32>, vector<12x288xf32> -> vector<12x288xf32>
    %304 = arith.addf %284, %303 : vector<12x288xf32>
    %305 = vector.extract_strided_slice %238 {offsets = [0, 108], sizes = [12, 36], strides = [1, 1]} : vector<12x288xf32> to vector<12x36xf32>
    %306 = vector.extract_strided_slice %244 {offsets = [0, 108], sizes = [16, 36], strides = [1, 1]} : vector<16x288xf32> to vector<16x36xf32>
    %307 = vector.extract_strided_slice %245 {offsets = [0, 108], sizes = [16, 36], strides = [1, 1]} : vector<16x288xf32> to vector<16x36xf32>
    %cst_145 = arith.constant dense<0.000000e+00> : vector<12x16xf32>
    %308 = tpu.matmul %305, %306, %cst_145 {dimension_numbers = #tpu.dot_dimension_numbers<[1], [1], [0], [0], [0, 0, 1, 0], [], []>} : vector<12x36xf32>, vector<16x36xf32>, vector<12x16xf32> -> vector<12x16xf32>
    %309 = arith.addf %308, %7 : vector<12x16xf32>
    %cst_146 = arith.constant dense<0xFF800000> : vector<12xf32>
    %310 = vector.multi_reduction <maximumf>, %309, %cst_146 [1] : vector<12x16xf32> to vector<12xf32>
    %311 = vector.shape_cast %310 : vector<12xf32> to vector<12x1xf32>
    %312 = vector.broadcast %311 : vector<12x1xf32> to vector<12x16xf32>
    %313 = arith.subf %309, %312 : vector<12x16xf32>
    %314 = math.exp %313 : vector<12x16xf32>
    %cst_147 = arith.constant dense<0.000000e+00> : vector<12xf32>
    %315 = vector.multi_reduction <add>, %314, %cst_147 [1] : vector<12x16xf32> to vector<12xf32>
    %316 = vector.shape_cast %315 : vector<12xf32> to vector<12x1xf32>
    %317 = tpu.reciprocal %316 {approx = true} : vector<12x1xf32> -> vector<12x1xf32>
    %318 = vector.broadcast %317 : vector<12x1xf32> to vector<12x16xf32>
    %319 = arith.mulf %314, %318 : vector<12x16xf32>
    %cst_148 = arith.constant dense<0.000000e+00> : vector<12x36xf32>
    %320 = tpu.matmul %319, %307, %cst_148 {dimension_numbers = #tpu.dot_dimension_numbers<[1], [0], [0], [1], [0, 0, 1, 1], [], []>} : vector<12x16xf32>, vector<16x36xf32>, vector<12x36xf32> -> vector<12x36xf32>
    %c3_149 = arith.constant 3 : index
    %c0_150 = arith.constant 0 : index
    %c0_151 = arith.constant 0 : index
    %321 = vector.load %arg23[%c3_149, %c0_150, %c0_151] : memref<8x36x288xf32, #tpu.memory_space<vmem>>, vector<1x36x288xf32>
    %322 = vector.shape_cast %321 : vector<1x36x288xf32> to vector<36x288xf32>
    %cst_152 = arith.constant dense<0.000000e+00> : vector<12x288xf32>
    %323 = tpu.matmul %320, %322, %cst_152 {dimension_numbers = #tpu.dot_dimension_numbers<[1], [0], [0], [1], [0, 0, 1, 1], [], []>} : vector<12x36xf32>, vector<36x288xf32>, vector<12x288xf32> -> vector<12x288xf32>
    %324 = arith.addf %304, %323 : vector<12x288xf32>
    %325 = vector.extract_strided_slice %238 {offsets = [0, 144], sizes = [12, 36], strides = [1, 1]} : vector<12x288xf32> to vector<12x36xf32>
    %326 = vector.extract_strided_slice %244 {offsets = [0, 144], sizes = [16, 36], strides = [1, 1]} : vector<16x288xf32> to vector<16x36xf32>
    %327 = vector.extract_strided_slice %245 {offsets = [0, 144], sizes = [16, 36], strides = [1, 1]} : vector<16x288xf32> to vector<16x36xf32>
    %cst_153 = arith.constant dense<0.000000e+00> : vector<12x16xf32>
    %328 = tpu.matmul %325, %326, %cst_153 {dimension_numbers = #tpu.dot_dimension_numbers<[1], [1], [0], [0], [0, 0, 1, 0], [], []>} : vector<12x36xf32>, vector<16x36xf32>, vector<12x16xf32> -> vector<12x16xf32>
    %329 = arith.addf %328, %7 : vector<12x16xf32>
    %cst_154 = arith.constant dense<0xFF800000> : vector<12xf32>
    %330 = vector.multi_reduction <maximumf>, %329, %cst_154 [1] : vector<12x16xf32> to vector<12xf32>
    %331 = vector.shape_cast %330 : vector<12xf32> to vector<12x1xf32>
    %332 = vector.broadcast %331 : vector<12x1xf32> to vector<12x16xf32>
    %333 = arith.subf %329, %332 : vector<12x16xf32>
    %334 = math.exp %333 : vector<12x16xf32>
    %cst_155 = arith.constant dense<0.000000e+00> : vector<12xf32>
    %335 = vector.multi_reduction <add>, %334, %cst_155 [1] : vector<12x16xf32> to vector<12xf32>
    %336 = vector.shape_cast %335 : vector<12xf32> to vector<12x1xf32>
    %337 = tpu.reciprocal %336 {approx = true} : vector<12x1xf32> -> vector<12x1xf32>
    %338 = vector.broadcast %337 : vector<12x1xf32> to vector<12x16xf32>
    %339 = arith.mulf %334, %338 : vector<12x16xf32>
    %cst_156 = arith.constant dense<0.000000e+00> : vector<12x36xf32>
    %340 = tpu.matmul %339, %327, %cst_156 {dimension_numbers = #tpu.dot_dimension_numbers<[1], [0], [0], [1], [0, 0, 1, 1], [], []>} : vector<12x16xf32>, vector<16x36xf32>, vector<12x36xf32> -> vector<12x36xf32>
    %c4_157 = arith.constant 4 : index
    %c0_158 = arith.constant 0 : index
    %c0_159 = arith.constant 0 : index
    %341 = vector.load %arg23[%c4_157, %c0_158, %c0_159] : memref<8x36x288xf32, #tpu.memory_space<vmem>>, vector<1x36x288xf32>
    %342 = vector.shape_cast %341 : vector<1x36x288xf32> to vector<36x288xf32>
    %cst_160 = arith.constant dense<0.000000e+00> : vector<12x288xf32>
    %343 = tpu.matmul %340, %342, %cst_160 {dimension_numbers = #tpu.dot_dimension_numbers<[1], [0], [0], [1], [0, 0, 1, 1], [], []>} : vector<12x36xf32>, vector<36x288xf32>, vector<12x288xf32> -> vector<12x288xf32>
    %344 = arith.addf %324, %343 : vector<12x288xf32>
    %345 = vector.extract_strided_slice %238 {offsets = [0, 180], sizes = [12, 36], strides = [1, 1]} : vector<12x288xf32> to vector<12x36xf32>
    %346 = vector.extract_strided_slice %244 {offsets = [0, 180], sizes = [16, 36], strides = [1, 1]} : vector<16x288xf32> to vector<16x36xf32>
    %347 = vector.extract_strided_slice %245 {offsets = [0, 180], sizes = [16, 36], strides = [1, 1]} : vector<16x288xf32> to vector<16x36xf32>
    %cst_161 = arith.constant dense<0.000000e+00> : vector<12x16xf32>
    %348 = tpu.matmul %345, %346, %cst_161 {dimension_numbers = #tpu.dot_dimension_numbers<[1], [1], [0], [0], [0, 0, 1, 0], [], []>} : vector<12x36xf32>, vector<16x36xf32>, vector<12x16xf32> -> vector<12x16xf32>
    %349 = arith.addf %348, %7 : vector<12x16xf32>
    %cst_162 = arith.constant dense<0xFF800000> : vector<12xf32>
    %350 = vector.multi_reduction <maximumf>, %349, %cst_162 [1] : vector<12x16xf32> to vector<12xf32>
    %351 = vector.shape_cast %350 : vector<12xf32> to vector<12x1xf32>
    %352 = vector.broadcast %351 : vector<12x1xf32> to vector<12x16xf32>
    %353 = arith.subf %349, %352 : vector<12x16xf32>
    %354 = math.exp %353 : vector<12x16xf32>
    %cst_163 = arith.constant dense<0.000000e+00> : vector<12xf32>
    %355 = vector.multi_reduction <add>, %354, %cst_163 [1] : vector<12x16xf32> to vector<12xf32>
    %356 = vector.shape_cast %355 : vector<12xf32> to vector<12x1xf32>
    %357 = tpu.reciprocal %356 {approx = true} : vector<12x1xf32> -> vector<12x1xf32>
    %358 = vector.broadcast %357 : vector<12x1xf32> to vector<12x16xf32>
    %359 = arith.mulf %354, %358 : vector<12x16xf32>
    %cst_164 = arith.constant dense<0.000000e+00> : vector<12x36xf32>
    %360 = tpu.matmul %359, %347, %cst_164 {dimension_numbers = #tpu.dot_dimension_numbers<[1], [0], [0], [1], [0, 0, 1, 1], [], []>} : vector<12x16xf32>, vector<16x36xf32>, vector<12x36xf32> -> vector<12x36xf32>
    %c5_165 = arith.constant 5 : index
    %c0_166 = arith.constant 0 : index
    %c0_167 = arith.constant 0 : index
    %361 = vector.load %arg23[%c5_165, %c0_166, %c0_167] : memref<8x36x288xf32, #tpu.memory_space<vmem>>, vector<1x36x288xf32>
    %362 = vector.shape_cast %361 : vector<1x36x288xf32> to vector<36x288xf32>
    %cst_168 = arith.constant dense<0.000000e+00> : vector<12x288xf32>
    %363 = tpu.matmul %360, %362, %cst_168 {dimension_numbers = #tpu.dot_dimension_numbers<[1], [0], [0], [1], [0, 0, 1, 1], [], []>} : vector<12x36xf32>, vector<36x288xf32>, vector<12x288xf32> -> vector<12x288xf32>
    %364 = arith.addf %344, %363 : vector<12x288xf32>
    %365 = vector.extract_strided_slice %238 {offsets = [0, 216], sizes = [12, 36], strides = [1, 1]} : vector<12x288xf32> to vector<12x36xf32>
    %366 = vector.extract_strided_slice %244 {offsets = [0, 216], sizes = [16, 36], strides = [1, 1]} : vector<16x288xf32> to vector<16x36xf32>
    %367 = vector.extract_strided_slice %245 {offsets = [0, 216], sizes = [16, 36], strides = [1, 1]} : vector<16x288xf32> to vector<16x36xf32>
    %cst_169 = arith.constant dense<0.000000e+00> : vector<12x16xf32>
    %368 = tpu.matmul %365, %366, %cst_169 {dimension_numbers = #tpu.dot_dimension_numbers<[1], [1], [0], [0], [0, 0, 1, 0], [], []>} : vector<12x36xf32>, vector<16x36xf32>, vector<12x16xf32> -> vector<12x16xf32>
    %369 = arith.addf %368, %7 : vector<12x16xf32>
    %cst_170 = arith.constant dense<0xFF800000> : vector<12xf32>
    %370 = vector.multi_reduction <maximumf>, %369, %cst_170 [1] : vector<12x16xf32> to vector<12xf32>
    %371 = vector.shape_cast %370 : vector<12xf32> to vector<12x1xf32>
    %372 = vector.broadcast %371 : vector<12x1xf32> to vector<12x16xf32>
    %373 = arith.subf %369, %372 : vector<12x16xf32>
    %374 = math.exp %373 : vector<12x16xf32>
    %cst_171 = arith.constant dense<0.000000e+00> : vector<12xf32>
    %375 = vector.multi_reduction <add>, %374, %cst_171 [1] : vector<12x16xf32> to vector<12xf32>
    %376 = vector.shape_cast %375 : vector<12xf32> to vector<12x1xf32>
    %377 = tpu.reciprocal %376 {approx = true} : vector<12x1xf32> -> vector<12x1xf32>
    %378 = vector.broadcast %377 : vector<12x1xf32> to vector<12x16xf32>
    %379 = arith.mulf %374, %378 : vector<12x16xf32>
    %cst_172 = arith.constant dense<0.000000e+00> : vector<12x36xf32>
    %380 = tpu.matmul %379, %367, %cst_172 {dimension_numbers = #tpu.dot_dimension_numbers<[1], [0], [0], [1], [0, 0, 1, 1], [], []>} : vector<12x16xf32>, vector<16x36xf32>, vector<12x36xf32> -> vector<12x36xf32>
    %c6_173 = arith.constant 6 : index
    %c0_174 = arith.constant 0 : index
    %c0_175 = arith.constant 0 : index
    %381 = vector.load %arg23[%c6_173, %c0_174, %c0_175] : memref<8x36x288xf32, #tpu.memory_space<vmem>>, vector<1x36x288xf32>
    %382 = vector.shape_cast %381 : vector<1x36x288xf32> to vector<36x288xf32>
    %cst_176 = arith.constant dense<0.000000e+00> : vector<12x288xf32>
    %383 = tpu.matmul %380, %382, %cst_176 {dimension_numbers = #tpu.dot_dimension_numbers<[1], [0], [0], [1], [0, 0, 1, 1], [], []>} : vector<12x36xf32>, vector<36x288xf32>, vector<12x288xf32> -> vector<12x288xf32>
    %384 = arith.addf %364, %383 : vector<12x288xf32>
    %385 = vector.extract_strided_slice %238 {offsets = [0, 252], sizes = [12, 36], strides = [1, 1]} : vector<12x288xf32> to vector<12x36xf32>
    %386 = vector.extract_strided_slice %244 {offsets = [0, 252], sizes = [16, 36], strides = [1, 1]} : vector<16x288xf32> to vector<16x36xf32>
    %387 = vector.extract_strided_slice %245 {offsets = [0, 252], sizes = [16, 36], strides = [1, 1]} : vector<16x288xf32> to vector<16x36xf32>
    %cst_177 = arith.constant dense<0.000000e+00> : vector<12x16xf32>
    %388 = tpu.matmul %385, %386, %cst_177 {dimension_numbers = #tpu.dot_dimension_numbers<[1], [1], [0], [0], [0, 0, 1, 0], [], []>} : vector<12x36xf32>, vector<16x36xf32>, vector<12x16xf32> -> vector<12x16xf32>
    %389 = arith.addf %388, %7 : vector<12x16xf32>
    %cst_178 = arith.constant dense<0xFF800000> : vector<12xf32>
    %390 = vector.multi_reduction <maximumf>, %389, %cst_178 [1] : vector<12x16xf32> to vector<12xf32>
    %391 = vector.shape_cast %390 : vector<12xf32> to vector<12x1xf32>
    %392 = vector.broadcast %391 : vector<12x1xf32> to vector<12x16xf32>
    %393 = arith.subf %389, %392 : vector<12x16xf32>
    %394 = math.exp %393 : vector<12x16xf32>
    %cst_179 = arith.constant dense<0.000000e+00> : vector<12xf32>
    %395 = vector.multi_reduction <add>, %394, %cst_179 [1] : vector<12x16xf32> to vector<12xf32>
    %396 = vector.shape_cast %395 : vector<12xf32> to vector<12x1xf32>
    %397 = tpu.reciprocal %396 {approx = true} : vector<12x1xf32> -> vector<12x1xf32>
    %398 = vector.broadcast %397 : vector<12x1xf32> to vector<12x16xf32>
    %399 = arith.mulf %394, %398 : vector<12x16xf32>
    %cst_180 = arith.constant dense<0.000000e+00> : vector<12x36xf32>
    %400 = tpu.matmul %399, %387, %cst_180 {dimension_numbers = #tpu.dot_dimension_numbers<[1], [0], [0], [1], [0, 0, 1, 1], [], []>} : vector<12x16xf32>, vector<16x36xf32>, vector<12x36xf32> -> vector<12x36xf32>
    %c7_181 = arith.constant 7 : index
    %c0_182 = arith.constant 0 : index
    %c0_183 = arith.constant 0 : index
    %401 = vector.load %arg23[%c7_181, %c0_182, %c0_183] : memref<8x36x288xf32, #tpu.memory_space<vmem>>, vector<1x36x288xf32>
    %402 = vector.shape_cast %401 : vector<1x36x288xf32> to vector<36x288xf32>
    %cst_184 = arith.constant dense<0.000000e+00> : vector<12x288xf32>
    %403 = tpu.matmul %400, %402, %cst_184 {dimension_numbers = #tpu.dot_dimension_numbers<[1], [0], [0], [1], [0, 0, 1, 1], [], []>} : vector<12x36xf32>, vector<36x288xf32>, vector<12x288xf32> -> vector<12x288xf32>
    %404 = arith.addf %384, %403 : vector<12x288xf32>
    %c0_185 = arith.constant 0 : index
    %c0_186 = arith.constant 0 : index
    %405 = vector.load %arg24[%c0_185, %c0_186] : memref<1x288xf32, #tpu.memory_space<vmem>>, vector<1x288xf32>
    %406 = vector.broadcast %405 : vector<1x288xf32> to vector<12x288xf32>
    %407 = arith.addf %404, %406 : vector<12x288xf32>
    %408 = arith.addf %232, %407 : vector<12x288xf32>
    %cst_187 = arith.constant dense<0.000000e+00> : vector<12xf32>
    %409 = vector.multi_reduction <add>, %408, %cst_187 [1] : vector<12x288xf32> to vector<12xf32>
    %410 = vector.shape_cast %409 : vector<12xf32> to vector<12x1xf32>
    %cst_188 = arith.constant 2.880000e+02 : f32
    %411 = vector.broadcast %cst_188 : f32 to vector<12x1xf32>
    %412 = arith.divf %410, %411 : vector<12x1xf32>
    %413 = vector.broadcast %412 : vector<12x1xf32> to vector<12x288xf32>
    %414 = arith.subf %408, %413 : vector<12x288xf32>
    %415 = arith.mulf %414, %414 : vector<12x288xf32>
    %cst_189 = arith.constant dense<0.000000e+00> : vector<12xf32>
    %416 = vector.multi_reduction <add>, %415, %cst_189 [1] : vector<12x288xf32> to vector<12xf32>
    %417 = vector.shape_cast %416 : vector<12xf32> to vector<12x1xf32>
    %cst_190 = arith.constant 2.880000e+02 : f32
    %418 = vector.broadcast %cst_190 : f32 to vector<12x1xf32>
    %419 = arith.divf %417, %418 : vector<12x1xf32>
    %420 = vector.broadcast %412 : vector<12x1xf32> to vector<12x288xf32>
    %421 = arith.subf %408, %420 : vector<12x288xf32>
    %cst_191 = arith.constant 9.99999974E-6 : f32
    %422 = vector.broadcast %cst_191 : f32 to vector<12x1xf32>
    %423 = arith.addf %419, %422 : vector<12x1xf32>
    %424 = math.rsqrt %423 : vector<12x1xf32>
    %425 = vector.broadcast %424 : vector<12x1xf32> to vector<12x288xf32>
    %426 = arith.mulf %421, %425 : vector<12x288xf32>
    %c0_192 = arith.constant 0 : index
    %c0_193 = arith.constant 0 : index
    %427 = vector.load %arg27[%c0_192, %c0_193] : memref<1x288xf32, #tpu.memory_space<vmem>>, vector<1x288xf32>
    %428 = vector.broadcast %427 : vector<1x288xf32> to vector<12x288xf32>
    %429 = arith.mulf %426, %428 : vector<12x288xf32>
    %c0_194 = arith.constant 0 : index
    %c0_195 = arith.constant 0 : index
    %430 = vector.load %arg28[%c0_194, %c0_195] : memref<1x288xf32, #tpu.memory_space<vmem>>, vector<1x288xf32>
    %431 = vector.broadcast %430 : vector<1x288xf32> to vector<12x288xf32>
    %432 = arith.addf %429, %431 : vector<12x288xf32>
    %c0_196 = arith.constant 0 : index
    %c0_197 = arith.constant 0 : index
    %433 = vector.load %arg31[%c0_196, %c0_197] : memref<288x256xf32, #tpu.memory_space<vmem>>, vector<288x256xf32>
    %cst_198 = arith.constant dense<0.000000e+00> : vector<12x256xf32>
    %434 = tpu.matmul %432, %433, %cst_198 {dimension_numbers = #tpu.dot_dimension_numbers<[1], [0], [0], [1], [0, 0, 1, 1], [], []>} : vector<12x288xf32>, vector<288x256xf32>, vector<12x256xf32> -> vector<12x256xf32>
    %c0_199 = arith.constant 0 : index
    %c0_200 = arith.constant 0 : index
    %435 = vector.load %arg32[%c0_199, %c0_200] : memref<1x256xf32, #tpu.memory_space<vmem>>, vector<1x256xf32>
    %436 = vector.broadcast %435 : vector<1x256xf32> to vector<12x256xf32>
    %437 = arith.addf %434, %436 : vector<12x256xf32>
    %cst_201 = arith.constant 0.000000e+00 : f32
    %438 = vector.broadcast %cst_201 : f32 to vector<12x256xf32>
    %439 = arith.maximumf %437, %438 : vector<12x256xf32>
    %c0_202 = arith.constant 0 : index
    %c0_203 = arith.constant 0 : index
    %440 = vector.load %arg33[%c0_202, %c0_203] : memref<256x288xf32, #tpu.memory_space<vmem>>, vector<256x288xf32>
    %cst_204 = arith.constant dense<0.000000e+00> : vector<12x288xf32>
    %441 = tpu.matmul %439, %440, %cst_204 {dimension_numbers = #tpu.dot_dimension_numbers<[1], [0], [0], [1], [0, 0, 1, 1], [], []>} : vector<12x256xf32>, vector<256x288xf32>, vector<12x288xf32> -> vector<12x288xf32>
    %c0_205 = arith.constant 0 : index
    %c0_206 = arith.constant 0 : index
    %442 = vector.load %arg34[%c0_205, %c0_206] : memref<1x288xf32, #tpu.memory_space<vmem>>, vector<1x288xf32>
    %443 = vector.broadcast %442 : vector<1x288xf32> to vector<12x288xf32>
    %444 = arith.addf %441, %443 : vector<12x288xf32>
    %445 = arith.addf %432, %444 : vector<12x288xf32>
    %cst_207 = arith.constant dense<0.000000e+00> : vector<12xf32>
    %446 = vector.multi_reduction <add>, %445, %cst_207 [1] : vector<12x288xf32> to vector<12xf32>
    %447 = vector.shape_cast %446 : vector<12xf32> to vector<12x1xf32>
    %cst_208 = arith.constant 2.880000e+02 : f32
    %448 = vector.broadcast %cst_208 : f32 to vector<12x1xf32>
    %449 = arith.divf %447, %448 : vector<12x1xf32>
    %450 = vector.broadcast %449 : vector<12x1xf32> to vector<12x288xf32>
    %451 = arith.subf %445, %450 : vector<12x288xf32>
    %452 = arith.mulf %451, %451 : vector<12x288xf32>
    %cst_209 = arith.constant dense<0.000000e+00> : vector<12xf32>
    %453 = vector.multi_reduction <add>, %452, %cst_209 [1] : vector<12x288xf32> to vector<12xf32>
    %454 = vector.shape_cast %453 : vector<12xf32> to vector<12x1xf32>
    %cst_210 = arith.constant 2.880000e+02 : f32
    %455 = vector.broadcast %cst_210 : f32 to vector<12x1xf32>
    %456 = arith.divf %454, %455 : vector<12x1xf32>
    %457 = vector.broadcast %449 : vector<12x1xf32> to vector<12x288xf32>
    %458 = arith.subf %445, %457 : vector<12x288xf32>
    %cst_211 = arith.constant 9.99999974E-6 : f32
    %459 = vector.broadcast %cst_211 : f32 to vector<12x1xf32>
    %460 = arith.addf %456, %459 : vector<12x1xf32>
    %461 = math.rsqrt %460 : vector<12x1xf32>
    %462 = vector.broadcast %461 : vector<12x1xf32> to vector<12x288xf32>
    %463 = arith.mulf %458, %462 : vector<12x288xf32>
    %c0_212 = arith.constant 0 : index
    %c0_213 = arith.constant 0 : index
    %464 = vector.load %arg29[%c0_212, %c0_213] : memref<1x288xf32, #tpu.memory_space<vmem>>, vector<1x288xf32>
    %465 = vector.broadcast %464 : vector<1x288xf32> to vector<12x288xf32>
    %466 = arith.mulf %463, %465 : vector<12x288xf32>
    %c0_214 = arith.constant 0 : index
    %c0_215 = arith.constant 0 : index
    %467 = vector.load %arg30[%c0_214, %c0_215] : memref<1x288xf32, #tpu.memory_space<vmem>>, vector<1x288xf32>
    %468 = vector.broadcast %467 : vector<1x288xf32> to vector<12x288xf32>
    %469 = arith.addf %466, %468 : vector<12x288xf32>
    %470 = vector.extract_strided_slice %469 {offsets = [0, 0], sizes = [8, 288], strides = [1, 1]} : vector<12x288xf32> to vector<8x288xf32>
    %471 = vector.extract_strided_slice %469 {offsets = [8, 0], sizes = [4, 288], strides = [1, 1]} : vector<12x288xf32> to vector<4x288xf32>
    %cst_216 = arith.constant dense<0.000000e+00> : vector<288xf32>
    %472 = vector.multi_reduction <add>, %471, %cst_216 [0] : vector<4x288xf32> to vector<288xf32>
    %473 = vector.shape_cast %472 : vector<288xf32> to vector<1x288xf32>
    %cst_217 = arith.constant 4.000000e+00 : f32
    %474 = vector.broadcast %cst_217 : f32 to vector<1x288xf32>
    %475 = arith.divf %473, %474 : vector<1x288xf32>
    %476 = tpu.concatenate %470, %475 in 0 : vector<8x288xf32>, vector<1x288xf32> -> vector<9x288xf32>
    %477 = vector.extract_strided_slice %21 {offsets = [0, 0], sizes = [9, 288], strides = [1, 1]} : vector<12x288xf32> to vector<9x288xf32>
    %478 = vector.extract_strided_slice %5 {offsets = [0, 0], sizes = [9, 9], strides = [1, 1]} : vector<12x12xf32> to vector<9x9xf32>
    %479 = vector.extract_strided_slice %7 {offsets = [0, 0], sizes = [9, 16], strides = [1, 1]} : vector<12x16xf32> to vector<9x16xf32>
    %480 = arith.addf %476, %477 : vector<9x288xf32>
    %c0_218 = arith.constant 0 : index
    %c0_219 = arith.constant 0 : index
    %481 = vector.load %arg35[%c0_218, %c0_219] : memref<288x864xf32, #tpu.memory_space<vmem>>, vector<288x864xf32>
    %cst_220 = arith.constant dense<0.000000e+00> : vector<9x864xf32>
    %482 = tpu.matmul %480, %481, %cst_220 {dimension_numbers = #tpu.dot_dimension_numbers<[1], [0], [0], [1], [0, 0, 1, 1], [], []>} : vector<9x288xf32>, vector<288x864xf32>, vector<9x864xf32> -> vector<9x864xf32>
    %c0_221 = arith.constant 0 : index
    %c0_222 = arith.constant 0 : index
    %483 = vector.load %arg36[%c0_221, %c0_222] : memref<1x864xf32, #tpu.memory_space<vmem>>, vector<1x864xf32>
    %484 = vector.broadcast %483 : vector<1x864xf32> to vector<9x864xf32>
    %485 = arith.addf %482, %484 : vector<9x864xf32>
    %486 = vector.extract_strided_slice %485 {offsets = [0, 0], sizes = [9, 288], strides = [1, 1]} : vector<9x864xf32> to vector<9x288xf32>
    %487 = vector.extract_strided_slice %485 {offsets = [0, 288], sizes = [9, 288], strides = [1, 1]} : vector<9x864xf32> to vector<9x288xf32>
    %488 = vector.extract_strided_slice %485 {offsets = [0, 576], sizes = [9, 288], strides = [1, 1]} : vector<9x864xf32> to vector<9x288xf32>
    %489 = vector.extract_strided_slice %486 {offsets = [0, 0], sizes = [9, 36], strides = [1, 1]} : vector<9x288xf32> to vector<9x36xf32>
    %490 = vector.extract_strided_slice %487 {offsets = [0, 0], sizes = [9, 36], strides = [1, 1]} : vector<9x288xf32> to vector<9x36xf32>
    %491 = vector.extract_strided_slice %488 {offsets = [0, 0], sizes = [9, 36], strides = [1, 1]} : vector<9x288xf32> to vector<9x36xf32>
    %cst_223 = arith.constant dense<0.000000e+00> : vector<9x9xf32>
    %492 = tpu.matmul %489, %490, %cst_223 {dimension_numbers = #tpu.dot_dimension_numbers<[1], [1], [0], [0], [0, 0, 1, 0], [], []>} : vector<9x36xf32>, vector<9x36xf32>, vector<9x9xf32> -> vector<9x9xf32>
    %493 = arith.addf %492, %478 : vector<9x9xf32>
    %cst_224 = arith.constant dense<0xFF800000> : vector<9xf32>
    %494 = vector.multi_reduction <maximumf>, %493, %cst_224 [1] : vector<9x9xf32> to vector<9xf32>
    %495 = vector.shape_cast %494 : vector<9xf32> to vector<9x1xf32>
    %496 = vector.broadcast %495 : vector<9x1xf32> to vector<9x9xf32>
    %497 = arith.subf %493, %496 : vector<9x9xf32>
    %498 = math.exp %497 : vector<9x9xf32>
    %cst_225 = arith.constant dense<0.000000e+00> : vector<9xf32>
    %499 = vector.multi_reduction <add>, %498, %cst_225 [1] : vector<9x9xf32> to vector<9xf32>
    %500 = vector.shape_cast %499 : vector<9xf32> to vector<9x1xf32>
    %501 = tpu.reciprocal %500 {approx = true} : vector<9x1xf32> -> vector<9x1xf32>
    %502 = vector.broadcast %501 : vector<9x1xf32> to vector<9x9xf32>
    %503 = arith.mulf %498, %502 : vector<9x9xf32>
    %cst_226 = arith.constant dense<0.000000e+00> : vector<9x36xf32>
    %504 = tpu.matmul %503, %491, %cst_226 {dimension_numbers = #tpu.dot_dimension_numbers<[1], [0], [0], [1], [0, 0, 1, 1], [], []>} : vector<9x9xf32>, vector<9x36xf32>, vector<9x36xf32> -> vector<9x36xf32>
    %c0_227 = arith.constant 0 : index
    %c0_228 = arith.constant 0 : index
    %c0_229 = arith.constant 0 : index
    %505 = vector.load %arg37[%c0_227, %c0_228, %c0_229] : memref<8x36x288xf32, #tpu.memory_space<vmem>>, vector<1x36x288xf32>
    %506 = vector.shape_cast %505 : vector<1x36x288xf32> to vector<36x288xf32>
    %cst_230 = arith.constant dense<0.000000e+00> : vector<9x288xf32>
    %507 = tpu.matmul %504, %506, %cst_230 {dimension_numbers = #tpu.dot_dimension_numbers<[1], [0], [0], [1], [0, 0, 1, 1], [], []>} : vector<9x36xf32>, vector<36x288xf32>, vector<9x288xf32> -> vector<9x288xf32>
    %508 = vector.extract_strided_slice %486 {offsets = [0, 36], sizes = [9, 36], strides = [1, 1]} : vector<9x288xf32> to vector<9x36xf32>
    %509 = vector.extract_strided_slice %487 {offsets = [0, 36], sizes = [9, 36], strides = [1, 1]} : vector<9x288xf32> to vector<9x36xf32>
    %510 = vector.extract_strided_slice %488 {offsets = [0, 36], sizes = [9, 36], strides = [1, 1]} : vector<9x288xf32> to vector<9x36xf32>
    %cst_231 = arith.constant dense<0.000000e+00> : vector<9x9xf32>
    %511 = tpu.matmul %508, %509, %cst_231 {dimension_numbers = #tpu.dot_dimension_numbers<[1], [1], [0], [0], [0, 0, 1, 0], [], []>} : vector<9x36xf32>, vector<9x36xf32>, vector<9x9xf32> -> vector<9x9xf32>
    %512 = arith.addf %511, %478 : vector<9x9xf32>
    %cst_232 = arith.constant dense<0xFF800000> : vector<9xf32>
    %513 = vector.multi_reduction <maximumf>, %512, %cst_232 [1] : vector<9x9xf32> to vector<9xf32>
    %514 = vector.shape_cast %513 : vector<9xf32> to vector<9x1xf32>
    %515 = vector.broadcast %514 : vector<9x1xf32> to vector<9x9xf32>
    %516 = arith.subf %512, %515 : vector<9x9xf32>
    %517 = math.exp %516 : vector<9x9xf32>
    %cst_233 = arith.constant dense<0.000000e+00> : vector<9xf32>
    %518 = vector.multi_reduction <add>, %517, %cst_233 [1] : vector<9x9xf32> to vector<9xf32>
    %519 = vector.shape_cast %518 : vector<9xf32> to vector<9x1xf32>
    %520 = tpu.reciprocal %519 {approx = true} : vector<9x1xf32> -> vector<9x1xf32>
    %521 = vector.broadcast %520 : vector<9x1xf32> to vector<9x9xf32>
    %522 = arith.mulf %517, %521 : vector<9x9xf32>
    %cst_234 = arith.constant dense<0.000000e+00> : vector<9x36xf32>
    %523 = tpu.matmul %522, %510, %cst_234 {dimension_numbers = #tpu.dot_dimension_numbers<[1], [0], [0], [1], [0, 0, 1, 1], [], []>} : vector<9x9xf32>, vector<9x36xf32>, vector<9x36xf32> -> vector<9x36xf32>
    %c1_235 = arith.constant 1 : index
    %c0_236 = arith.constant 0 : index
    %c0_237 = arith.constant 0 : index
    %524 = vector.load %arg37[%c1_235, %c0_236, %c0_237] : memref<8x36x288xf32, #tpu.memory_space<vmem>>, vector<1x36x288xf32>
    %525 = vector.shape_cast %524 : vector<1x36x288xf32> to vector<36x288xf32>
    %cst_238 = arith.constant dense<0.000000e+00> : vector<9x288xf32>
    %526 = tpu.matmul %523, %525, %cst_238 {dimension_numbers = #tpu.dot_dimension_numbers<[1], [0], [0], [1], [0, 0, 1, 1], [], []>} : vector<9x36xf32>, vector<36x288xf32>, vector<9x288xf32> -> vector<9x288xf32>
    %527 = arith.addf %507, %526 : vector<9x288xf32>
    %528 = vector.extract_strided_slice %486 {offsets = [0, 72], sizes = [9, 36], strides = [1, 1]} : vector<9x288xf32> to vector<9x36xf32>
    %529 = vector.extract_strided_slice %487 {offsets = [0, 72], sizes = [9, 36], strides = [1, 1]} : vector<9x288xf32> to vector<9x36xf32>
    %530 = vector.extract_strided_slice %488 {offsets = [0, 72], sizes = [9, 36], strides = [1, 1]} : vector<9x288xf32> to vector<9x36xf32>
    %cst_239 = arith.constant dense<0.000000e+00> : vector<9x9xf32>
    %531 = tpu.matmul %528, %529, %cst_239 {dimension_numbers = #tpu.dot_dimension_numbers<[1], [1], [0], [0], [0, 0, 1, 0], [], []>} : vector<9x36xf32>, vector<9x36xf32>, vector<9x9xf32> -> vector<9x9xf32>
    %532 = arith.addf %531, %478 : vector<9x9xf32>
    %cst_240 = arith.constant dense<0xFF800000> : vector<9xf32>
    %533 = vector.multi_reduction <maximumf>, %532, %cst_240 [1] : vector<9x9xf32> to vector<9xf32>
    %534 = vector.shape_cast %533 : vector<9xf32> to vector<9x1xf32>
    %535 = vector.broadcast %534 : vector<9x1xf32> to vector<9x9xf32>
    %536 = arith.subf %532, %535 : vector<9x9xf32>
    %537 = math.exp %536 : vector<9x9xf32>
    %cst_241 = arith.constant dense<0.000000e+00> : vector<9xf32>
    %538 = vector.multi_reduction <add>, %537, %cst_241 [1] : vector<9x9xf32> to vector<9xf32>
    %539 = vector.shape_cast %538 : vector<9xf32> to vector<9x1xf32>
    %540 = tpu.reciprocal %539 {approx = true} : vector<9x1xf32> -> vector<9x1xf32>
    %541 = vector.broadcast %540 : vector<9x1xf32> to vector<9x9xf32>
    %542 = arith.mulf %537, %541 : vector<9x9xf32>
    %cst_242 = arith.constant dense<0.000000e+00> : vector<9x36xf32>
    %543 = tpu.matmul %542, %530, %cst_242 {dimension_numbers = #tpu.dot_dimension_numbers<[1], [0], [0], [1], [0, 0, 1, 1], [], []>} : vector<9x9xf32>, vector<9x36xf32>, vector<9x36xf32> -> vector<9x36xf32>
    %c2_243 = arith.constant 2 : index
    %c0_244 = arith.constant 0 : index
    %c0_245 = arith.constant 0 : index
    %544 = vector.load %arg37[%c2_243, %c0_244, %c0_245] : memref<8x36x288xf32, #tpu.memory_space<vmem>>, vector<1x36x288xf32>
    %545 = vector.shape_cast %544 : vector<1x36x288xf32> to vector<36x288xf32>
    %cst_246 = arith.constant dense<0.000000e+00> : vector<9x288xf32>
    %546 = tpu.matmul %543, %545, %cst_246 {dimension_numbers = #tpu.dot_dimension_numbers<[1], [0], [0], [1], [0, 0, 1, 1], [], []>} : vector<9x36xf32>, vector<36x288xf32>, vector<9x288xf32> -> vector<9x288xf32>
    %547 = arith.addf %527, %546 : vector<9x288xf32>
    %548 = vector.extract_strided_slice %486 {offsets = [0, 108], sizes = [9, 36], strides = [1, 1]} : vector<9x288xf32> to vector<9x36xf32>
    %549 = vector.extract_strided_slice %487 {offsets = [0, 108], sizes = [9, 36], strides = [1, 1]} : vector<9x288xf32> to vector<9x36xf32>
    %550 = vector.extract_strided_slice %488 {offsets = [0, 108], sizes = [9, 36], strides = [1, 1]} : vector<9x288xf32> to vector<9x36xf32>
    %cst_247 = arith.constant dense<0.000000e+00> : vector<9x9xf32>
    %551 = tpu.matmul %548, %549, %cst_247 {dimension_numbers = #tpu.dot_dimension_numbers<[1], [1], [0], [0], [0, 0, 1, 0], [], []>} : vector<9x36xf32>, vector<9x36xf32>, vector<9x9xf32> -> vector<9x9xf32>
    %552 = arith.addf %551, %478 : vector<9x9xf32>
    %cst_248 = arith.constant dense<0xFF800000> : vector<9xf32>
    %553 = vector.multi_reduction <maximumf>, %552, %cst_248 [1] : vector<9x9xf32> to vector<9xf32>
    %554 = vector.shape_cast %553 : vector<9xf32> to vector<9x1xf32>
    %555 = vector.broadcast %554 : vector<9x1xf32> to vector<9x9xf32>
    %556 = arith.subf %552, %555 : vector<9x9xf32>
    %557 = math.exp %556 : vector<9x9xf32>
    %cst_249 = arith.constant dense<0.000000e+00> : vector<9xf32>
    %558 = vector.multi_reduction <add>, %557, %cst_249 [1] : vector<9x9xf32> to vector<9xf32>
    %559 = vector.shape_cast %558 : vector<9xf32> to vector<9x1xf32>
    %560 = tpu.reciprocal %559 {approx = true} : vector<9x1xf32> -> vector<9x1xf32>
    %561 = vector.broadcast %560 : vector<9x1xf32> to vector<9x9xf32>
    %562 = arith.mulf %557, %561 : vector<9x9xf32>
    %cst_250 = arith.constant dense<0.000000e+00> : vector<9x36xf32>
    %563 = tpu.matmul %562, %550, %cst_250 {dimension_numbers = #tpu.dot_dimension_numbers<[1], [0], [0], [1], [0, 0, 1, 1], [], []>} : vector<9x9xf32>, vector<9x36xf32>, vector<9x36xf32> -> vector<9x36xf32>
    %c3_251 = arith.constant 3 : index
    %c0_252 = arith.constant 0 : index
    %c0_253 = arith.constant 0 : index
    %564 = vector.load %arg37[%c3_251, %c0_252, %c0_253] : memref<8x36x288xf32, #tpu.memory_space<vmem>>, vector<1x36x288xf32>
    %565 = vector.shape_cast %564 : vector<1x36x288xf32> to vector<36x288xf32>
    %cst_254 = arith.constant dense<0.000000e+00> : vector<9x288xf32>
    %566 = tpu.matmul %563, %565, %cst_254 {dimension_numbers = #tpu.dot_dimension_numbers<[1], [0], [0], [1], [0, 0, 1, 1], [], []>} : vector<9x36xf32>, vector<36x288xf32>, vector<9x288xf32> -> vector<9x288xf32>
    %567 = arith.addf %547, %566 : vector<9x288xf32>
    %568 = vector.extract_strided_slice %486 {offsets = [0, 144], sizes = [9, 36], strides = [1, 1]} : vector<9x288xf32> to vector<9x36xf32>
    %569 = vector.extract_strided_slice %487 {offsets = [0, 144], sizes = [9, 36], strides = [1, 1]} : vector<9x288xf32> to vector<9x36xf32>
    %570 = vector.extract_strided_slice %488 {offsets = [0, 144], sizes = [9, 36], strides = [1, 1]} : vector<9x288xf32> to vector<9x36xf32>
    %cst_255 = arith.constant dense<0.000000e+00> : vector<9x9xf32>
    %571 = tpu.matmul %568, %569, %cst_255 {dimension_numbers = #tpu.dot_dimension_numbers<[1], [1], [0], [0], [0, 0, 1, 0], [], []>} : vector<9x36xf32>, vector<9x36xf32>, vector<9x9xf32> -> vector<9x9xf32>
    %572 = arith.addf %571, %478 : vector<9x9xf32>
    %cst_256 = arith.constant dense<0xFF800000> : vector<9xf32>
    %573 = vector.multi_reduction <maximumf>, %572, %cst_256 [1] : vector<9x9xf32> to vector<9xf32>
    %574 = vector.shape_cast %573 : vector<9xf32> to vector<9x1xf32>
    %575 = vector.broadcast %574 : vector<9x1xf32> to vector<9x9xf32>
    %576 = arith.subf %572, %575 : vector<9x9xf32>
    %577 = math.exp %576 : vector<9x9xf32>
    %cst_257 = arith.constant dense<0.000000e+00> : vector<9xf32>
    %578 = vector.multi_reduction <add>, %577, %cst_257 [1] : vector<9x9xf32> to vector<9xf32>
    %579 = vector.shape_cast %578 : vector<9xf32> to vector<9x1xf32>
    %580 = tpu.reciprocal %579 {approx = true} : vector<9x1xf32> -> vector<9x1xf32>
    %581 = vector.broadcast %580 : vector<9x1xf32> to vector<9x9xf32>
    %582 = arith.mulf %577, %581 : vector<9x9xf32>
    %cst_258 = arith.constant dense<0.000000e+00> : vector<9x36xf32>
    %583 = tpu.matmul %582, %570, %cst_258 {dimension_numbers = #tpu.dot_dimension_numbers<[1], [0], [0], [1], [0, 0, 1, 1], [], []>} : vector<9x9xf32>, vector<9x36xf32>, vector<9x36xf32> -> vector<9x36xf32>
    %c4_259 = arith.constant 4 : index
    %c0_260 = arith.constant 0 : index
    %c0_261 = arith.constant 0 : index
    %584 = vector.load %arg37[%c4_259, %c0_260, %c0_261] : memref<8x36x288xf32, #tpu.memory_space<vmem>>, vector<1x36x288xf32>
    %585 = vector.shape_cast %584 : vector<1x36x288xf32> to vector<36x288xf32>
    %cst_262 = arith.constant dense<0.000000e+00> : vector<9x288xf32>
    %586 = tpu.matmul %583, %585, %cst_262 {dimension_numbers = #tpu.dot_dimension_numbers<[1], [0], [0], [1], [0, 0, 1, 1], [], []>} : vector<9x36xf32>, vector<36x288xf32>, vector<9x288xf32> -> vector<9x288xf32>
    %587 = arith.addf %567, %586 : vector<9x288xf32>
    %588 = vector.extract_strided_slice %486 {offsets = [0, 180], sizes = [9, 36], strides = [1, 1]} : vector<9x288xf32> to vector<9x36xf32>
    %589 = vector.extract_strided_slice %487 {offsets = [0, 180], sizes = [9, 36], strides = [1, 1]} : vector<9x288xf32> to vector<9x36xf32>
    %590 = vector.extract_strided_slice %488 {offsets = [0, 180], sizes = [9, 36], strides = [1, 1]} : vector<9x288xf32> to vector<9x36xf32>
    %cst_263 = arith.constant dense<0.000000e+00> : vector<9x9xf32>
    %591 = tpu.matmul %588, %589, %cst_263 {dimension_numbers = #tpu.dot_dimension_numbers<[1], [1], [0], [0], [0, 0, 1, 0], [], []>} : vector<9x36xf32>, vector<9x36xf32>, vector<9x9xf32> -> vector<9x9xf32>
    %592 = arith.addf %591, %478 : vector<9x9xf32>
    %cst_264 = arith.constant dense<0xFF800000> : vector<9xf32>
    %593 = vector.multi_reduction <maximumf>, %592, %cst_264 [1] : vector<9x9xf32> to vector<9xf32>
    %594 = vector.shape_cast %593 : vector<9xf32> to vector<9x1xf32>
    %595 = vector.broadcast %594 : vector<9x1xf32> to vector<9x9xf32>
    %596 = arith.subf %592, %595 : vector<9x9xf32>
    %597 = math.exp %596 : vector<9x9xf32>
    %cst_265 = arith.constant dense<0.000000e+00> : vector<9xf32>
    %598 = vector.multi_reduction <add>, %597, %cst_265 [1] : vector<9x9xf32> to vector<9xf32>
    %599 = vector.shape_cast %598 : vector<9xf32> to vector<9x1xf32>
    %600 = tpu.reciprocal %599 {approx = true} : vector<9x1xf32> -> vector<9x1xf32>
    %601 = vector.broadcast %600 : vector<9x1xf32> to vector<9x9xf32>
    %602 = arith.mulf %597, %601 : vector<9x9xf32>
    %cst_266 = arith.constant dense<0.000000e+00> : vector<9x36xf32>
    %603 = tpu.matmul %602, %590, %cst_266 {dimension_numbers = #tpu.dot_dimension_numbers<[1], [0], [0], [1], [0, 0, 1, 1], [], []>} : vector<9x9xf32>, vector<9x36xf32>, vector<9x36xf32> -> vector<9x36xf32>
    %c5_267 = arith.constant 5 : index
    %c0_268 = arith.constant 0 : index
    %c0_269 = arith.constant 0 : index
    %604 = vector.load %arg37[%c5_267, %c0_268, %c0_269] : memref<8x36x288xf32, #tpu.memory_space<vmem>>, vector<1x36x288xf32>
    %605 = vector.shape_cast %604 : vector<1x36x288xf32> to vector<36x288xf32>
    %cst_270 = arith.constant dense<0.000000e+00> : vector<9x288xf32>
    %606 = tpu.matmul %603, %605, %cst_270 {dimension_numbers = #tpu.dot_dimension_numbers<[1], [0], [0], [1], [0, 0, 1, 1], [], []>} : vector<9x36xf32>, vector<36x288xf32>, vector<9x288xf32> -> vector<9x288xf32>
    %607 = arith.addf %587, %606 : vector<9x288xf32>
    %608 = vector.extract_strided_slice %486 {offsets = [0, 216], sizes = [9, 36], strides = [1, 1]} : vector<9x288xf32> to vector<9x36xf32>
    %609 = vector.extract_strided_slice %487 {offsets = [0, 216], sizes = [9, 36], strides = [1, 1]} : vector<9x288xf32> to vector<9x36xf32>
    %610 = vector.extract_strided_slice %488 {offsets = [0, 216], sizes = [9, 36], strides = [1, 1]} : vector<9x288xf32> to vector<9x36xf32>
    %cst_271 = arith.constant dense<0.000000e+00> : vector<9x9xf32>
    %611 = tpu.matmul %608, %609, %cst_271 {dimension_numbers = #tpu.dot_dimension_numbers<[1], [1], [0], [0], [0, 0, 1, 0], [], []>} : vector<9x36xf32>, vector<9x36xf32>, vector<9x9xf32> -> vector<9x9xf32>
    %612 = arith.addf %611, %478 : vector<9x9xf32>
    %cst_272 = arith.constant dense<0xFF800000> : vector<9xf32>
    %613 = vector.multi_reduction <maximumf>, %612, %cst_272 [1] : vector<9x9xf32> to vector<9xf32>
    %614 = vector.shape_cast %613 : vector<9xf32> to vector<9x1xf32>
    %615 = vector.broadcast %614 : vector<9x1xf32> to vector<9x9xf32>
    %616 = arith.subf %612, %615 : vector<9x9xf32>
    %617 = math.exp %616 : vector<9x9xf32>
    %cst_273 = arith.constant dense<0.000000e+00> : vector<9xf32>
    %618 = vector.multi_reduction <add>, %617, %cst_273 [1] : vector<9x9xf32> to vector<9xf32>
    %619 = vector.shape_cast %618 : vector<9xf32> to vector<9x1xf32>
    %620 = tpu.reciprocal %619 {approx = true} : vector<9x1xf32> -> vector<9x1xf32>
    %621 = vector.broadcast %620 : vector<9x1xf32> to vector<9x9xf32>
    %622 = arith.mulf %617, %621 : vector<9x9xf32>
    %cst_274 = arith.constant dense<0.000000e+00> : vector<9x36xf32>
    %623 = tpu.matmul %622, %610, %cst_274 {dimension_numbers = #tpu.dot_dimension_numbers<[1], [0], [0], [1], [0, 0, 1, 1], [], []>} : vector<9x9xf32>, vector<9x36xf32>, vector<9x36xf32> -> vector<9x36xf32>
    %c6_275 = arith.constant 6 : index
    %c0_276 = arith.constant 0 : index
    %c0_277 = arith.constant 0 : index
    %624 = vector.load %arg37[%c6_275, %c0_276, %c0_277] : memref<8x36x288xf32, #tpu.memory_space<vmem>>, vector<1x36x288xf32>
    %625 = vector.shape_cast %624 : vector<1x36x288xf32> to vector<36x288xf32>
    %cst_278 = arith.constant dense<0.000000e+00> : vector<9x288xf32>
    %626 = tpu.matmul %623, %625, %cst_278 {dimension_numbers = #tpu.dot_dimension_numbers<[1], [0], [0], [1], [0, 0, 1, 1], [], []>} : vector<9x36xf32>, vector<36x288xf32>, vector<9x288xf32> -> vector<9x288xf32>
    %627 = arith.addf %607, %626 : vector<9x288xf32>
    %628 = vector.extract_strided_slice %486 {offsets = [0, 252], sizes = [9, 36], strides = [1, 1]} : vector<9x288xf32> to vector<9x36xf32>
    %629 = vector.extract_strided_slice %487 {offsets = [0, 252], sizes = [9, 36], strides = [1, 1]} : vector<9x288xf32> to vector<9x36xf32>
    %630 = vector.extract_strided_slice %488 {offsets = [0, 252], sizes = [9, 36], strides = [1, 1]} : vector<9x288xf32> to vector<9x36xf32>
    %cst_279 = arith.constant dense<0.000000e+00> : vector<9x9xf32>
    %631 = tpu.matmul %628, %629, %cst_279 {dimension_numbers = #tpu.dot_dimension_numbers<[1], [1], [0], [0], [0, 0, 1, 0], [], []>} : vector<9x36xf32>, vector<9x36xf32>, vector<9x9xf32> -> vector<9x9xf32>
    %632 = arith.addf %631, %478 : vector<9x9xf32>
    %cst_280 = arith.constant dense<0xFF800000> : vector<9xf32>
    %633 = vector.multi_reduction <maximumf>, %632, %cst_280 [1] : vector<9x9xf32> to vector<9xf32>
    %634 = vector.shape_cast %633 : vector<9xf32> to vector<9x1xf32>
    %635 = vector.broadcast %634 : vector<9x1xf32> to vector<9x9xf32>
    %636 = arith.subf %632, %635 : vector<9x9xf32>
    %637 = math.exp %636 : vector<9x9xf32>
    %cst_281 = arith.constant dense<0.000000e+00> : vector<9xf32>
    %638 = vector.multi_reduction <add>, %637, %cst_281 [1] : vector<9x9xf32> to vector<9xf32>
    %639 = vector.shape_cast %638 : vector<9xf32> to vector<9x1xf32>
    %640 = tpu.reciprocal %639 {approx = true} : vector<9x1xf32> -> vector<9x1xf32>
    %641 = vector.broadcast %640 : vector<9x1xf32> to vector<9x9xf32>
    %642 = arith.mulf %637, %641 : vector<9x9xf32>
    %cst_282 = arith.constant dense<0.000000e+00> : vector<9x36xf32>
    %643 = tpu.matmul %642, %630, %cst_282 {dimension_numbers = #tpu.dot_dimension_numbers<[1], [0], [0], [1], [0, 0, 1, 1], [], []>} : vector<9x9xf32>, vector<9x36xf32>, vector<9x36xf32> -> vector<9x36xf32>
    %c7_283 = arith.constant 7 : index
    %c0_284 = arith.constant 0 : index
    %c0_285 = arith.constant 0 : index
    %644 = vector.load %arg37[%c7_283, %c0_284, %c0_285] : memref<8x36x288xf32, #tpu.memory_space<vmem>>, vector<1x36x288xf32>
    %645 = vector.shape_cast %644 : vector<1x36x288xf32> to vector<36x288xf32>
    %cst_286 = arith.constant dense<0.000000e+00> : vector<9x288xf32>
    %646 = tpu.matmul %643, %645, %cst_286 {dimension_numbers = #tpu.dot_dimension_numbers<[1], [0], [0], [1], [0, 0, 1, 1], [], []>} : vector<9x36xf32>, vector<36x288xf32>, vector<9x288xf32> -> vector<9x288xf32>
    %647 = arith.addf %627, %646 : vector<9x288xf32>
    %c0_287 = arith.constant 0 : index
    %c0_288 = arith.constant 0 : index
    %648 = vector.load %arg38[%c0_287, %c0_288] : memref<1x288xf32, #tpu.memory_space<vmem>>, vector<1x288xf32>
    %649 = vector.broadcast %648 : vector<1x288xf32> to vector<9x288xf32>
    %650 = arith.addf %647, %649 : vector<9x288xf32>
    %651 = arith.addf %476, %650 : vector<9x288xf32>
    %cst_289 = arith.constant dense<0.000000e+00> : vector<9xf32>
    %652 = vector.multi_reduction <add>, %651, %cst_289 [1] : vector<9x288xf32> to vector<9xf32>
    %653 = vector.shape_cast %652 : vector<9xf32> to vector<9x1xf32>
    %cst_290 = arith.constant 2.880000e+02 : f32
    %654 = vector.broadcast %cst_290 : f32 to vector<9x1xf32>
    %655 = arith.divf %653, %654 : vector<9x1xf32>
    %656 = vector.broadcast %655 : vector<9x1xf32> to vector<9x288xf32>
    %657 = arith.subf %651, %656 : vector<9x288xf32>
    %658 = arith.mulf %657, %657 : vector<9x288xf32>
    %cst_291 = arith.constant dense<0.000000e+00> : vector<9xf32>
    %659 = vector.multi_reduction <add>, %658, %cst_291 [1] : vector<9x288xf32> to vector<9xf32>
    %660 = vector.shape_cast %659 : vector<9xf32> to vector<9x1xf32>
    %cst_292 = arith.constant 2.880000e+02 : f32
    %661 = vector.broadcast %cst_292 : f32 to vector<9x1xf32>
    %662 = arith.divf %660, %661 : vector<9x1xf32>
    %663 = vector.broadcast %655 : vector<9x1xf32> to vector<9x288xf32>
    %664 = arith.subf %651, %663 : vector<9x288xf32>
    %cst_293 = arith.constant 9.99999974E-6 : f32
    %665 = vector.broadcast %cst_293 : f32 to vector<9x1xf32>
    %666 = arith.addf %662, %665 : vector<9x1xf32>
    %667 = math.rsqrt %666 : vector<9x1xf32>
    %668 = vector.broadcast %667 : vector<9x1xf32> to vector<9x288xf32>
    %669 = arith.mulf %664, %668 : vector<9x288xf32>
    %c0_294 = arith.constant 0 : index
    %c0_295 = arith.constant 0 : index
    %670 = vector.load %arg45[%c0_294, %c0_295] : memref<1x288xf32, #tpu.memory_space<vmem>>, vector<1x288xf32>
    %671 = vector.broadcast %670 : vector<1x288xf32> to vector<9x288xf32>
    %672 = arith.mulf %669, %671 : vector<9x288xf32>
    %c0_296 = arith.constant 0 : index
    %c0_297 = arith.constant 0 : index
    %673 = vector.load %arg46[%c0_296, %c0_297] : memref<1x288xf32, #tpu.memory_space<vmem>>, vector<1x288xf32>
    %674 = vector.broadcast %673 : vector<1x288xf32> to vector<9x288xf32>
    %675 = arith.addf %672, %674 : vector<9x288xf32>
    %676 = arith.addf %675, %477 : vector<9x288xf32>
    %c0_298 = arith.constant 0 : index
    %c0_299 = arith.constant 0 : index
    %677 = vector.load %arg39[%c0_298, %c0_299] : memref<288x288xf32, #tpu.memory_space<vmem>>, vector<288x288xf32>
    %cst_300 = arith.constant dense<0.000000e+00> : vector<9x288xf32>
    %678 = tpu.matmul %676, %677, %cst_300 {dimension_numbers = #tpu.dot_dimension_numbers<[1], [0], [0], [1], [0, 0, 1, 1], [], []>} : vector<9x288xf32>, vector<288x288xf32>, vector<9x288xf32> -> vector<9x288xf32>
    %c0_301 = arith.constant 0 : index
    %c0_302 = arith.constant 0 : index
    %679 = vector.load %arg40[%c0_301, %c0_302] : memref<1x288xf32, #tpu.memory_space<vmem>>, vector<1x288xf32>
    %680 = vector.broadcast %679 : vector<1x288xf32> to vector<9x288xf32>
    %681 = arith.addf %678, %680 : vector<9x288xf32>
    %c0_303 = arith.constant 0 : index
    %c0_304 = arith.constant 0 : index
    %682 = vector.load %arg41[%c0_303, %c0_304] : memref<288x576xf32, #tpu.memory_space<vmem>>, vector<288x576xf32>
    %cst_305 = arith.constant dense<0.000000e+00> : vector<16x576xf32>
    %683 = tpu.matmul %36, %682, %cst_305 {dimension_numbers = #tpu.dot_dimension_numbers<[1], [0], [0], [1], [0, 0, 1, 1], [], []>} : vector<16x288xf32>, vector<288x576xf32>, vector<16x576xf32> -> vector<16x576xf32>
    %c0_306 = arith.constant 0 : index
    %c0_307 = arith.constant 0 : index
    %684 = vector.load %arg42[%c0_306, %c0_307] : memref<1x576xf32, #tpu.memory_space<vmem>>, vector<1x576xf32>
    %685 = vector.broadcast %684 : vector<1x576xf32> to vector<16x576xf32>
    %686 = arith.addf %683, %685 : vector<16x576xf32>
    %687 = vector.extract_strided_slice %686 {offsets = [0, 0], sizes = [16, 288], strides = [1, 1]} : vector<16x576xf32> to vector<16x288xf32>
    %688 = vector.extract_strided_slice %686 {offsets = [0, 288], sizes = [16, 288], strides = [1, 1]} : vector<16x576xf32> to vector<16x288xf32>
    %689 = vector.extract_strided_slice %681 {offsets = [0, 0], sizes = [9, 36], strides = [1, 1]} : vector<9x288xf32> to vector<9x36xf32>
    %690 = vector.extract_strided_slice %687 {offsets = [0, 0], sizes = [16, 36], strides = [1, 1]} : vector<16x288xf32> to vector<16x36xf32>
    %691 = vector.extract_strided_slice %688 {offsets = [0, 0], sizes = [16, 36], strides = [1, 1]} : vector<16x288xf32> to vector<16x36xf32>
    %cst_308 = arith.constant dense<0.000000e+00> : vector<9x16xf32>
    %692 = tpu.matmul %689, %690, %cst_308 {dimension_numbers = #tpu.dot_dimension_numbers<[1], [1], [0], [0], [0, 0, 1, 0], [], []>} : vector<9x36xf32>, vector<16x36xf32>, vector<9x16xf32> -> vector<9x16xf32>
    %693 = arith.addf %692, %479 : vector<9x16xf32>
    %cst_309 = arith.constant dense<0xFF800000> : vector<9xf32>
    %694 = vector.multi_reduction <maximumf>, %693, %cst_309 [1] : vector<9x16xf32> to vector<9xf32>
    %695 = vector.shape_cast %694 : vector<9xf32> to vector<9x1xf32>
    %696 = vector.broadcast %695 : vector<9x1xf32> to vector<9x16xf32>
    %697 = arith.subf %693, %696 : vector<9x16xf32>
    %698 = math.exp %697 : vector<9x16xf32>
    %cst_310 = arith.constant dense<0.000000e+00> : vector<9xf32>
    %699 = vector.multi_reduction <add>, %698, %cst_310 [1] : vector<9x16xf32> to vector<9xf32>
    %700 = vector.shape_cast %699 : vector<9xf32> to vector<9x1xf32>
    %701 = tpu.reciprocal %700 {approx = true} : vector<9x1xf32> -> vector<9x1xf32>
    %702 = vector.broadcast %701 : vector<9x1xf32> to vector<9x16xf32>
    %703 = arith.mulf %698, %702 : vector<9x16xf32>
    %cst_311 = arith.constant dense<0.000000e+00> : vector<9x36xf32>
    %704 = tpu.matmul %703, %691, %cst_311 {dimension_numbers = #tpu.dot_dimension_numbers<[1], [0], [0], [1], [0, 0, 1, 1], [], []>} : vector<9x16xf32>, vector<16x36xf32>, vector<9x36xf32> -> vector<9x36xf32>
    %c0_312 = arith.constant 0 : index
    %c0_313 = arith.constant 0 : index
    %c0_314 = arith.constant 0 : index
    %705 = vector.load %arg43[%c0_312, %c0_313, %c0_314] : memref<8x36x288xf32, #tpu.memory_space<vmem>>, vector<1x36x288xf32>
    %706 = vector.shape_cast %705 : vector<1x36x288xf32> to vector<36x288xf32>
    %cst_315 = arith.constant dense<0.000000e+00> : vector<9x288xf32>
    %707 = tpu.matmul %704, %706, %cst_315 {dimension_numbers = #tpu.dot_dimension_numbers<[1], [0], [0], [1], [0, 0, 1, 1], [], []>} : vector<9x36xf32>, vector<36x288xf32>, vector<9x288xf32> -> vector<9x288xf32>
    %708 = vector.extract_strided_slice %681 {offsets = [0, 36], sizes = [9, 36], strides = [1, 1]} : vector<9x288xf32> to vector<9x36xf32>
    %709 = vector.extract_strided_slice %687 {offsets = [0, 36], sizes = [16, 36], strides = [1, 1]} : vector<16x288xf32> to vector<16x36xf32>
    %710 = vector.extract_strided_slice %688 {offsets = [0, 36], sizes = [16, 36], strides = [1, 1]} : vector<16x288xf32> to vector<16x36xf32>
    %cst_316 = arith.constant dense<0.000000e+00> : vector<9x16xf32>
    %711 = tpu.matmul %708, %709, %cst_316 {dimension_numbers = #tpu.dot_dimension_numbers<[1], [1], [0], [0], [0, 0, 1, 0], [], []>} : vector<9x36xf32>, vector<16x36xf32>, vector<9x16xf32> -> vector<9x16xf32>
    %712 = arith.addf %711, %479 : vector<9x16xf32>
    %cst_317 = arith.constant dense<0xFF800000> : vector<9xf32>
    %713 = vector.multi_reduction <maximumf>, %712, %cst_317 [1] : vector<9x16xf32> to vector<9xf32>
    %714 = vector.shape_cast %713 : vector<9xf32> to vector<9x1xf32>
    %715 = vector.broadcast %714 : vector<9x1xf32> to vector<9x16xf32>
    %716 = arith.subf %712, %715 : vector<9x16xf32>
    %717 = math.exp %716 : vector<9x16xf32>
    %cst_318 = arith.constant dense<0.000000e+00> : vector<9xf32>
    %718 = vector.multi_reduction <add>, %717, %cst_318 [1] : vector<9x16xf32> to vector<9xf32>
    %719 = vector.shape_cast %718 : vector<9xf32> to vector<9x1xf32>
    %720 = tpu.reciprocal %719 {approx = true} : vector<9x1xf32> -> vector<9x1xf32>
    %721 = vector.broadcast %720 : vector<9x1xf32> to vector<9x16xf32>
    %722 = arith.mulf %717, %721 : vector<9x16xf32>
    %cst_319 = arith.constant dense<0.000000e+00> : vector<9x36xf32>
    %723 = tpu.matmul %722, %710, %cst_319 {dimension_numbers = #tpu.dot_dimension_numbers<[1], [0], [0], [1], [0, 0, 1, 1], [], []>} : vector<9x16xf32>, vector<16x36xf32>, vector<9x36xf32> -> vector<9x36xf32>
    %c1_320 = arith.constant 1 : index
    %c0_321 = arith.constant 0 : index
    %c0_322 = arith.constant 0 : index
    %724 = vector.load %arg43[%c1_320, %c0_321, %c0_322] : memref<8x36x288xf32, #tpu.memory_space<vmem>>, vector<1x36x288xf32>
    %725 = vector.shape_cast %724 : vector<1x36x288xf32> to vector<36x288xf32>
    %cst_323 = arith.constant dense<0.000000e+00> : vector<9x288xf32>
    %726 = tpu.matmul %723, %725, %cst_323 {dimension_numbers = #tpu.dot_dimension_numbers<[1], [0], [0], [1], [0, 0, 1, 1], [], []>} : vector<9x36xf32>, vector<36x288xf32>, vector<9x288xf32> -> vector<9x288xf32>
    %727 = arith.addf %707, %726 : vector<9x288xf32>
    %728 = vector.extract_strided_slice %681 {offsets = [0, 72], sizes = [9, 36], strides = [1, 1]} : vector<9x288xf32> to vector<9x36xf32>
    %729 = vector.extract_strided_slice %687 {offsets = [0, 72], sizes = [16, 36], strides = [1, 1]} : vector<16x288xf32> to vector<16x36xf32>
    %730 = vector.extract_strided_slice %688 {offsets = [0, 72], sizes = [16, 36], strides = [1, 1]} : vector<16x288xf32> to vector<16x36xf32>
    %cst_324 = arith.constant dense<0.000000e+00> : vector<9x16xf32>
    %731 = tpu.matmul %728, %729, %cst_324 {dimension_numbers = #tpu.dot_dimension_numbers<[1], [1], [0], [0], [0, 0, 1, 0], [], []>} : vector<9x36xf32>, vector<16x36xf32>, vector<9x16xf32> -> vector<9x16xf32>
    %732 = arith.addf %731, %479 : vector<9x16xf32>
    %cst_325 = arith.constant dense<0xFF800000> : vector<9xf32>
    %733 = vector.multi_reduction <maximumf>, %732, %cst_325 [1] : vector<9x16xf32> to vector<9xf32>
    %734 = vector.shape_cast %733 : vector<9xf32> to vector<9x1xf32>
    %735 = vector.broadcast %734 : vector<9x1xf32> to vector<9x16xf32>
    %736 = arith.subf %732, %735 : vector<9x16xf32>
    %737 = math.exp %736 : vector<9x16xf32>
    %cst_326 = arith.constant dense<0.000000e+00> : vector<9xf32>
    %738 = vector.multi_reduction <add>, %737, %cst_326 [1] : vector<9x16xf32> to vector<9xf32>
    %739 = vector.shape_cast %738 : vector<9xf32> to vector<9x1xf32>
    %740 = tpu.reciprocal %739 {approx = true} : vector<9x1xf32> -> vector<9x1xf32>
    %741 = vector.broadcast %740 : vector<9x1xf32> to vector<9x16xf32>
    %742 = arith.mulf %737, %741 : vector<9x16xf32>
    %cst_327 = arith.constant dense<0.000000e+00> : vector<9x36xf32>
    %743 = tpu.matmul %742, %730, %cst_327 {dimension_numbers = #tpu.dot_dimension_numbers<[1], [0], [0], [1], [0, 0, 1, 1], [], []>} : vector<9x16xf32>, vector<16x36xf32>, vector<9x36xf32> -> vector<9x36xf32>
    %c2_328 = arith.constant 2 : index
    %c0_329 = arith.constant 0 : index
    %c0_330 = arith.constant 0 : index
    %744 = vector.load %arg43[%c2_328, %c0_329, %c0_330] : memref<8x36x288xf32, #tpu.memory_space<vmem>>, vector<1x36x288xf32>
    %745 = vector.shape_cast %744 : vector<1x36x288xf32> to vector<36x288xf32>
    %cst_331 = arith.constant dense<0.000000e+00> : vector<9x288xf32>
    %746 = tpu.matmul %743, %745, %cst_331 {dimension_numbers = #tpu.dot_dimension_numbers<[1], [0], [0], [1], [0, 0, 1, 1], [], []>} : vector<9x36xf32>, vector<36x288xf32>, vector<9x288xf32> -> vector<9x288xf32>
    %747 = arith.addf %727, %746 : vector<9x288xf32>
    %748 = vector.extract_strided_slice %681 {offsets = [0, 108], sizes = [9, 36], strides = [1, 1]} : vector<9x288xf32> to vector<9x36xf32>
    %749 = vector.extract_strided_slice %687 {offsets = [0, 108], sizes = [16, 36], strides = [1, 1]} : vector<16x288xf32> to vector<16x36xf32>
    %750 = vector.extract_strided_slice %688 {offsets = [0, 108], sizes = [16, 36], strides = [1, 1]} : vector<16x288xf32> to vector<16x36xf32>
    %cst_332 = arith.constant dense<0.000000e+00> : vector<9x16xf32>
    %751 = tpu.matmul %748, %749, %cst_332 {dimension_numbers = #tpu.dot_dimension_numbers<[1], [1], [0], [0], [0, 0, 1, 0], [], []>} : vector<9x36xf32>, vector<16x36xf32>, vector<9x16xf32> -> vector<9x16xf32>
    %752 = arith.addf %751, %479 : vector<9x16xf32>
    %cst_333 = arith.constant dense<0xFF800000> : vector<9xf32>
    %753 = vector.multi_reduction <maximumf>, %752, %cst_333 [1] : vector<9x16xf32> to vector<9xf32>
    %754 = vector.shape_cast %753 : vector<9xf32> to vector<9x1xf32>
    %755 = vector.broadcast %754 : vector<9x1xf32> to vector<9x16xf32>
    %756 = arith.subf %752, %755 : vector<9x16xf32>
    %757 = math.exp %756 : vector<9x16xf32>
    %cst_334 = arith.constant dense<0.000000e+00> : vector<9xf32>
    %758 = vector.multi_reduction <add>, %757, %cst_334 [1] : vector<9x16xf32> to vector<9xf32>
    %759 = vector.shape_cast %758 : vector<9xf32> to vector<9x1xf32>
    %760 = tpu.reciprocal %759 {approx = true} : vector<9x1xf32> -> vector<9x1xf32>
    %761 = vector.broadcast %760 : vector<9x1xf32> to vector<9x16xf32>
    %762 = arith.mulf %757, %761 : vector<9x16xf32>
    %cst_335 = arith.constant dense<0.000000e+00> : vector<9x36xf32>
    %763 = tpu.matmul %762, %750, %cst_335 {dimension_numbers = #tpu.dot_dimension_numbers<[1], [0], [0], [1], [0, 0, 1, 1], [], []>} : vector<9x16xf32>, vector<16x36xf32>, vector<9x36xf32> -> vector<9x36xf32>
    %c3_336 = arith.constant 3 : index
    %c0_337 = arith.constant 0 : index
    %c0_338 = arith.constant 0 : index
    %764 = vector.load %arg43[%c3_336, %c0_337, %c0_338] : memref<8x36x288xf32, #tpu.memory_space<vmem>>, vector<1x36x288xf32>
    %765 = vector.shape_cast %764 : vector<1x36x288xf32> to vector<36x288xf32>
    %cst_339 = arith.constant dense<0.000000e+00> : vector<9x288xf32>
    %766 = tpu.matmul %763, %765, %cst_339 {dimension_numbers = #tpu.dot_dimension_numbers<[1], [0], [0], [1], [0, 0, 1, 1], [], []>} : vector<9x36xf32>, vector<36x288xf32>, vector<9x288xf32> -> vector<9x288xf32>
    %767 = arith.addf %747, %766 : vector<9x288xf32>
    %768 = vector.extract_strided_slice %681 {offsets = [0, 144], sizes = [9, 36], strides = [1, 1]} : vector<9x288xf32> to vector<9x36xf32>
    %769 = vector.extract_strided_slice %687 {offsets = [0, 144], sizes = [16, 36], strides = [1, 1]} : vector<16x288xf32> to vector<16x36xf32>
    %770 = vector.extract_strided_slice %688 {offsets = [0, 144], sizes = [16, 36], strides = [1, 1]} : vector<16x288xf32> to vector<16x36xf32>
    %cst_340 = arith.constant dense<0.000000e+00> : vector<9x16xf32>
    %771 = tpu.matmul %768, %769, %cst_340 {dimension_numbers = #tpu.dot_dimension_numbers<[1], [1], [0], [0], [0, 0, 1, 0], [], []>} : vector<9x36xf32>, vector<16x36xf32>, vector<9x16xf32> -> vector<9x16xf32>
    %772 = arith.addf %771, %479 : vector<9x16xf32>
    %cst_341 = arith.constant dense<0xFF800000> : vector<9xf32>
    %773 = vector.multi_reduction <maximumf>, %772, %cst_341 [1] : vector<9x16xf32> to vector<9xf32>
    %774 = vector.shape_cast %773 : vector<9xf32> to vector<9x1xf32>
    %775 = vector.broadcast %774 : vector<9x1xf32> to vector<9x16xf32>
    %776 = arith.subf %772, %775 : vector<9x16xf32>
    %777 = math.exp %776 : vector<9x16xf32>
    %cst_342 = arith.constant dense<0.000000e+00> : vector<9xf32>
    %778 = vector.multi_reduction <add>, %777, %cst_342 [1] : vector<9x16xf32> to vector<9xf32>
    %779 = vector.shape_cast %778 : vector<9xf32> to vector<9x1xf32>
    %780 = tpu.reciprocal %779 {approx = true} : vector<9x1xf32> -> vector<9x1xf32>
    %781 = vector.broadcast %780 : vector<9x1xf32> to vector<9x16xf32>
    %782 = arith.mulf %777, %781 : vector<9x16xf32>
    %cst_343 = arith.constant dense<0.000000e+00> : vector<9x36xf32>
    %783 = tpu.matmul %782, %770, %cst_343 {dimension_numbers = #tpu.dot_dimension_numbers<[1], [0], [0], [1], [0, 0, 1, 1], [], []>} : vector<9x16xf32>, vector<16x36xf32>, vector<9x36xf32> -> vector<9x36xf32>
    %c4_344 = arith.constant 4 : index
    %c0_345 = arith.constant 0 : index
    %c0_346 = arith.constant 0 : index
    %784 = vector.load %arg43[%c4_344, %c0_345, %c0_346] : memref<8x36x288xf32, #tpu.memory_space<vmem>>, vector<1x36x288xf32>
    %785 = vector.shape_cast %784 : vector<1x36x288xf32> to vector<36x288xf32>
    %cst_347 = arith.constant dense<0.000000e+00> : vector<9x288xf32>
    %786 = tpu.matmul %783, %785, %cst_347 {dimension_numbers = #tpu.dot_dimension_numbers<[1], [0], [0], [1], [0, 0, 1, 1], [], []>} : vector<9x36xf32>, vector<36x288xf32>, vector<9x288xf32> -> vector<9x288xf32>
    %787 = arith.addf %767, %786 : vector<9x288xf32>
    %788 = vector.extract_strided_slice %681 {offsets = [0, 180], sizes = [9, 36], strides = [1, 1]} : vector<9x288xf32> to vector<9x36xf32>
    %789 = vector.extract_strided_slice %687 {offsets = [0, 180], sizes = [16, 36], strides = [1, 1]} : vector<16x288xf32> to vector<16x36xf32>
    %790 = vector.extract_strided_slice %688 {offsets = [0, 180], sizes = [16, 36], strides = [1, 1]} : vector<16x288xf32> to vector<16x36xf32>
    %cst_348 = arith.constant dense<0.000000e+00> : vector<9x16xf32>
    %791 = tpu.matmul %788, %789, %cst_348 {dimension_numbers = #tpu.dot_dimension_numbers<[1], [1], [0], [0], [0, 0, 1, 0], [], []>} : vector<9x36xf32>, vector<16x36xf32>, vector<9x16xf32> -> vector<9x16xf32>
    %792 = arith.addf %791, %479 : vector<9x16xf32>
    %cst_349 = arith.constant dense<0xFF800000> : vector<9xf32>
    %793 = vector.multi_reduction <maximumf>, %792, %cst_349 [1] : vector<9x16xf32> to vector<9xf32>
    %794 = vector.shape_cast %793 : vector<9xf32> to vector<9x1xf32>
    %795 = vector.broadcast %794 : vector<9x1xf32> to vector<9x16xf32>
    %796 = arith.subf %792, %795 : vector<9x16xf32>
    %797 = math.exp %796 : vector<9x16xf32>
    %cst_350 = arith.constant dense<0.000000e+00> : vector<9xf32>
    %798 = vector.multi_reduction <add>, %797, %cst_350 [1] : vector<9x16xf32> to vector<9xf32>
    %799 = vector.shape_cast %798 : vector<9xf32> to vector<9x1xf32>
    %800 = tpu.reciprocal %799 {approx = true} : vector<9x1xf32> -> vector<9x1xf32>
    %801 = vector.broadcast %800 : vector<9x1xf32> to vector<9x16xf32>
    %802 = arith.mulf %797, %801 : vector<9x16xf32>
    %cst_351 = arith.constant dense<0.000000e+00> : vector<9x36xf32>
    %803 = tpu.matmul %802, %790, %cst_351 {dimension_numbers = #tpu.dot_dimension_numbers<[1], [0], [0], [1], [0, 0, 1, 1], [], []>} : vector<9x16xf32>, vector<16x36xf32>, vector<9x36xf32> -> vector<9x36xf32>
    %c5_352 = arith.constant 5 : index
    %c0_353 = arith.constant 0 : index
    %c0_354 = arith.constant 0 : index
    %804 = vector.load %arg43[%c5_352, %c0_353, %c0_354] : memref<8x36x288xf32, #tpu.memory_space<vmem>>, vector<1x36x288xf32>
    %805 = vector.shape_cast %804 : vector<1x36x288xf32> to vector<36x288xf32>
    %cst_355 = arith.constant dense<0.000000e+00> : vector<9x288xf32>
    %806 = tpu.matmul %803, %805, %cst_355 {dimension_numbers = #tpu.dot_dimension_numbers<[1], [0], [0], [1], [0, 0, 1, 1], [], []>} : vector<9x36xf32>, vector<36x288xf32>, vector<9x288xf32> -> vector<9x288xf32>
    %807 = arith.addf %787, %806 : vector<9x288xf32>
    %808 = vector.extract_strided_slice %681 {offsets = [0, 216], sizes = [9, 36], strides = [1, 1]} : vector<9x288xf32> to vector<9x36xf32>
    %809 = vector.extract_strided_slice %687 {offsets = [0, 216], sizes = [16, 36], strides = [1, 1]} : vector<16x288xf32> to vector<16x36xf32>
    %810 = vector.extract_strided_slice %688 {offsets = [0, 216], sizes = [16, 36], strides = [1, 1]} : vector<16x288xf32> to vector<16x36xf32>
    %cst_356 = arith.constant dense<0.000000e+00> : vector<9x16xf32>
    %811 = tpu.matmul %808, %809, %cst_356 {dimension_numbers = #tpu.dot_dimension_numbers<[1], [1], [0], [0], [0, 0, 1, 0], [], []>} : vector<9x36xf32>, vector<16x36xf32>, vector<9x16xf32> -> vector<9x16xf32>
    %812 = arith.addf %811, %479 : vector<9x16xf32>
    %cst_357 = arith.constant dense<0xFF800000> : vector<9xf32>
    %813 = vector.multi_reduction <maximumf>, %812, %cst_357 [1] : vector<9x16xf32> to vector<9xf32>
    %814 = vector.shape_cast %813 : vector<9xf32> to vector<9x1xf32>
    %815 = vector.broadcast %814 : vector<9x1xf32> to vector<9x16xf32>
    %816 = arith.subf %812, %815 : vector<9x16xf32>
    %817 = math.exp %816 : vector<9x16xf32>
    %cst_358 = arith.constant dense<0.000000e+00> : vector<9xf32>
    %818 = vector.multi_reduction <add>, %817, %cst_358 [1] : vector<9x16xf32> to vector<9xf32>
    %819 = vector.shape_cast %818 : vector<9xf32> to vector<9x1xf32>
    %820 = tpu.reciprocal %819 {approx = true} : vector<9x1xf32> -> vector<9x1xf32>
    %821 = vector.broadcast %820 : vector<9x1xf32> to vector<9x16xf32>
    %822 = arith.mulf %817, %821 : vector<9x16xf32>
    %cst_359 = arith.constant dense<0.000000e+00> : vector<9x36xf32>
    %823 = tpu.matmul %822, %810, %cst_359 {dimension_numbers = #tpu.dot_dimension_numbers<[1], [0], [0], [1], [0, 0, 1, 1], [], []>} : vector<9x16xf32>, vector<16x36xf32>, vector<9x36xf32> -> vector<9x36xf32>
    %c6_360 = arith.constant 6 : index
    %c0_361 = arith.constant 0 : index
    %c0_362 = arith.constant 0 : index
    %824 = vector.load %arg43[%c6_360, %c0_361, %c0_362] : memref<8x36x288xf32, #tpu.memory_space<vmem>>, vector<1x36x288xf32>
    %825 = vector.shape_cast %824 : vector<1x36x288xf32> to vector<36x288xf32>
    %cst_363 = arith.constant dense<0.000000e+00> : vector<9x288xf32>
    %826 = tpu.matmul %823, %825, %cst_363 {dimension_numbers = #tpu.dot_dimension_numbers<[1], [0], [0], [1], [0, 0, 1, 1], [], []>} : vector<9x36xf32>, vector<36x288xf32>, vector<9x288xf32> -> vector<9x288xf32>
    %827 = arith.addf %807, %826 : vector<9x288xf32>
    %828 = vector.extract_strided_slice %681 {offsets = [0, 252], sizes = [9, 36], strides = [1, 1]} : vector<9x288xf32> to vector<9x36xf32>
    %829 = vector.extract_strided_slice %687 {offsets = [0, 252], sizes = [16, 36], strides = [1, 1]} : vector<16x288xf32> to vector<16x36xf32>
    %830 = vector.extract_strided_slice %688 {offsets = [0, 252], sizes = [16, 36], strides = [1, 1]} : vector<16x288xf32> to vector<16x36xf32>
    %cst_364 = arith.constant dense<0.000000e+00> : vector<9x16xf32>
    %831 = tpu.matmul %828, %829, %cst_364 {dimension_numbers = #tpu.dot_dimension_numbers<[1], [1], [0], [0], [0, 0, 1, 0], [], []>} : vector<9x36xf32>, vector<16x36xf32>, vector<9x16xf32> -> vector<9x16xf32>
    %832 = arith.addf %831, %479 : vector<9x16xf32>
    %cst_365 = arith.constant dense<0xFF800000> : vector<9xf32>
    %833 = vector.multi_reduction <maximumf>, %832, %cst_365 [1] : vector<9x16xf32> to vector<9xf32>
    %834 = vector.shape_cast %833 : vector<9xf32> to vector<9x1xf32>
    %835 = vector.broadcast %834 : vector<9x1xf32> to vector<9x16xf32>
    %836 = arith.subf %832, %835 : vector<9x16xf32>
    %837 = math.exp %836 : vector<9x16xf32>
    %cst_366 = arith.constant dense<0.000000e+00> : vector<9xf32>
    %838 = vector.multi_reduction <add>, %837, %cst_366 [1] : vector<9x16xf32> to vector<9xf32>
    %839 = vector.shape_cast %838 : vector<9xf32> to vector<9x1xf32>
    %840 = tpu.reciprocal %839 {approx = true} : vector<9x1xf32> -> vector<9x1xf32>
    %841 = vector.broadcast %840 : vector<9x1xf32> to vector<9x16xf32>
    %842 = arith.mulf %837, %841 : vector<9x16xf32>
    %cst_367 = arith.constant dense<0.000000e+00> : vector<9x36xf32>
    %843 = tpu.matmul %842, %830, %cst_367 {dimension_numbers = #tpu.dot_dimension_numbers<[1], [0], [0], [1], [0, 0, 1, 1], [], []>} : vector<9x16xf32>, vector<16x36xf32>, vector<9x36xf32> -> vector<9x36xf32>
    %c7_368 = arith.constant 7 : index
    %c0_369 = arith.constant 0 : index
    %c0_370 = arith.constant 0 : index
    %844 = vector.load %arg43[%c7_368, %c0_369, %c0_370] : memref<8x36x288xf32, #tpu.memory_space<vmem>>, vector<1x36x288xf32>
    %845 = vector.shape_cast %844 : vector<1x36x288xf32> to vector<36x288xf32>
    %cst_371 = arith.constant dense<0.000000e+00> : vector<9x288xf32>
    %846 = tpu.matmul %843, %845, %cst_371 {dimension_numbers = #tpu.dot_dimension_numbers<[1], [0], [0], [1], [0, 0, 1, 1], [], []>} : vector<9x36xf32>, vector<36x288xf32>, vector<9x288xf32> -> vector<9x288xf32>
    %847 = arith.addf %827, %846 : vector<9x288xf32>
    %c0_372 = arith.constant 0 : index
    %c0_373 = arith.constant 0 : index
    %848 = vector.load %arg44[%c0_372, %c0_373] : memref<1x288xf32, #tpu.memory_space<vmem>>, vector<1x288xf32>
    %849 = vector.broadcast %848 : vector<1x288xf32> to vector<9x288xf32>
    %850 = arith.addf %847, %849 : vector<9x288xf32>
    %851 = arith.addf %675, %850 : vector<9x288xf32>
    %cst_374 = arith.constant dense<0.000000e+00> : vector<9xf32>
    %852 = vector.multi_reduction <add>, %851, %cst_374 [1] : vector<9x288xf32> to vector<9xf32>
    %853 = vector.shape_cast %852 : vector<9xf32> to vector<9x1xf32>
    %cst_375 = arith.constant 2.880000e+02 : f32
    %854 = vector.broadcast %cst_375 : f32 to vector<9x1xf32>
    %855 = arith.divf %853, %854 : vector<9x1xf32>
    %856 = vector.broadcast %855 : vector<9x1xf32> to vector<9x288xf32>
    %857 = arith.subf %851, %856 : vector<9x288xf32>
    %858 = arith.mulf %857, %857 : vector<9x288xf32>
    %cst_376 = arith.constant dense<0.000000e+00> : vector<9xf32>
    %859 = vector.multi_reduction <add>, %858, %cst_376 [1] : vector<9x288xf32> to vector<9xf32>
    %860 = vector.shape_cast %859 : vector<9xf32> to vector<9x1xf32>
    %cst_377 = arith.constant 2.880000e+02 : f32
    %861 = vector.broadcast %cst_377 : f32 to vector<9x1xf32>
    %862 = arith.divf %860, %861 : vector<9x1xf32>
    %863 = vector.broadcast %855 : vector<9x1xf32> to vector<9x288xf32>
    %864 = arith.subf %851, %863 : vector<9x288xf32>
    %cst_378 = arith.constant 9.99999974E-6 : f32
    %865 = vector.broadcast %cst_378 : f32 to vector<9x1xf32>
    %866 = arith.addf %862, %865 : vector<9x1xf32>
    %867 = math.rsqrt %866 : vector<9x1xf32>
    %868 = vector.broadcast %867 : vector<9x1xf32> to vector<9x288xf32>
    %869 = arith.mulf %864, %868 : vector<9x288xf32>
    %c0_379 = arith.constant 0 : index
    %c0_380 = arith.constant 0 : index
    %870 = vector.load %arg47[%c0_379, %c0_380] : memref<1x288xf32, #tpu.memory_space<vmem>>, vector<1x288xf32>
    %871 = vector.broadcast %870 : vector<1x288xf32> to vector<9x288xf32>
    %872 = arith.mulf %869, %871 : vector<9x288xf32>
    %c0_381 = arith.constant 0 : index
    %c0_382 = arith.constant 0 : index
    %873 = vector.load %arg48[%c0_381, %c0_382] : memref<1x288xf32, #tpu.memory_space<vmem>>, vector<1x288xf32>
    %874 = vector.broadcast %873 : vector<1x288xf32> to vector<9x288xf32>
    %875 = arith.addf %872, %874 : vector<9x288xf32>
    %c0_383 = arith.constant 0 : index
    %c0_384 = arith.constant 0 : index
    %876 = vector.load %arg51[%c0_383, %c0_384] : memref<288x256xf32, #tpu.memory_space<vmem>>, vector<288x256xf32>
    %cst_385 = arith.constant dense<0.000000e+00> : vector<9x256xf32>
    %877 = tpu.matmul %875, %876, %cst_385 {dimension_numbers = #tpu.dot_dimension_numbers<[1], [0], [0], [1], [0, 0, 1, 1], [], []>} : vector<9x288xf32>, vector<288x256xf32>, vector<9x256xf32> -> vector<9x256xf32>
    %c0_386 = arith.constant 0 : index
    %c0_387 = arith.constant 0 : index
    %878 = vector.load %arg52[%c0_386, %c0_387] : memref<1x256xf32, #tpu.memory_space<vmem>>, vector<1x256xf32>
    %879 = vector.broadcast %878 : vector<1x256xf32> to vector<9x256xf32>
    %880 = arith.addf %877, %879 : vector<9x256xf32>
    %cst_388 = arith.constant 0.000000e+00 : f32
    %881 = vector.broadcast %cst_388 : f32 to vector<9x256xf32>
    %882 = arith.maximumf %880, %881 : vector<9x256xf32>
    %c0_389 = arith.constant 0 : index
    %c0_390 = arith.constant 0 : index
    %883 = vector.load %arg53[%c0_389, %c0_390] : memref<256x288xf32, #tpu.memory_space<vmem>>, vector<256x288xf32>
    %cst_391 = arith.constant dense<0.000000e+00> : vector<9x288xf32>
    %884 = tpu.matmul %882, %883, %cst_391 {dimension_numbers = #tpu.dot_dimension_numbers<[1], [0], [0], [1], [0, 0, 1, 1], [], []>} : vector<9x256xf32>, vector<256x288xf32>, vector<9x288xf32> -> vector<9x288xf32>
    %c0_392 = arith.constant 0 : index
    %c0_393 = arith.constant 0 : index
    %885 = vector.load %arg54[%c0_392, %c0_393] : memref<1x288xf32, #tpu.memory_space<vmem>>, vector<1x288xf32>
    %886 = vector.broadcast %885 : vector<1x288xf32> to vector<9x288xf32>
    %887 = arith.addf %884, %886 : vector<9x288xf32>
    %888 = arith.addf %875, %887 : vector<9x288xf32>
    %cst_394 = arith.constant dense<0.000000e+00> : vector<9xf32>
    %889 = vector.multi_reduction <add>, %888, %cst_394 [1] : vector<9x288xf32> to vector<9xf32>
    %890 = vector.shape_cast %889 : vector<9xf32> to vector<9x1xf32>
    %cst_395 = arith.constant 2.880000e+02 : f32
    %891 = vector.broadcast %cst_395 : f32 to vector<9x1xf32>
    %892 = arith.divf %890, %891 : vector<9x1xf32>
    %893 = vector.broadcast %892 : vector<9x1xf32> to vector<9x288xf32>
    %894 = arith.subf %888, %893 : vector<9x288xf32>
    %895 = arith.mulf %894, %894 : vector<9x288xf32>
    %cst_396 = arith.constant dense<0.000000e+00> : vector<9xf32>
    %896 = vector.multi_reduction <add>, %895, %cst_396 [1] : vector<9x288xf32> to vector<9xf32>
    %897 = vector.shape_cast %896 : vector<9xf32> to vector<9x1xf32>
    %cst_397 = arith.constant 2.880000e+02 : f32
    %898 = vector.broadcast %cst_397 : f32 to vector<9x1xf32>
    %899 = arith.divf %897, %898 : vector<9x1xf32>
    %900 = vector.broadcast %892 : vector<9x1xf32> to vector<9x288xf32>
    %901 = arith.subf %888, %900 : vector<9x288xf32>
    %cst_398 = arith.constant 9.99999974E-6 : f32
    %902 = vector.broadcast %cst_398 : f32 to vector<9x1xf32>
    %903 = arith.addf %899, %902 : vector<9x1xf32>
    %904 = math.rsqrt %903 : vector<9x1xf32>
    %905 = vector.broadcast %904 : vector<9x1xf32> to vector<9x288xf32>
    %906 = arith.mulf %901, %905 : vector<9x288xf32>
    %c0_399 = arith.constant 0 : index
    %c0_400 = arith.constant 0 : index
    %907 = vector.load %arg49[%c0_399, %c0_400] : memref<1x288xf32, #tpu.memory_space<vmem>>, vector<1x288xf32>
    %908 = vector.broadcast %907 : vector<1x288xf32> to vector<9x288xf32>
    %909 = arith.mulf %906, %908 : vector<9x288xf32>
    %c0_401 = arith.constant 0 : index
    %c0_402 = arith.constant 0 : index
    %910 = vector.load %arg50[%c0_401, %c0_402] : memref<1x288xf32, #tpu.memory_space<vmem>>, vector<1x288xf32>
    %911 = vector.broadcast %910 : vector<1x288xf32> to vector<9x288xf32>
    %912 = arith.addf %909, %911 : vector<9x288xf32>
    %913 = vector.extract_strided_slice %912 {offsets = [0, 0], sizes = [8, 288], strides = [1, 1]} : vector<9x288xf32> to vector<8x288xf32>
    %c0_403 = arith.constant 0 : index
    %c0_404 = arith.constant 0 : index
    %c0_405 = arith.constant 0 : index
    %914 = vector.load %arg55[%c0_403, %c0_404, %c0_405] : memref<1x8x288xf32, #tpu.memory_space<vmem>>, vector<1x8x288xf32>
    %915 = vector.shape_cast %914 : vector<1x8x288xf32> to vector<8x288xf32>
    %916 = vector.shape_cast %913 : vector<8x288xf32> to vector<1x8x288xf32>
    tpu.vector_store %arg55[%c0_403, %c0_404, %c0_405], %916 {strides = array<i32>} : memref<1x8x288xf32, #tpu.memory_space<vmem>>, vector<1x8x288xf32>,
    return
  }
  func.func @transform_0(%arg0: i32) -> (i32, i32, i32) {
    %c0_i32 = arith.constant 0 : i32
    %c0_i32_0 = arith.constant 0 : i32
    %c0_i32_1 = arith.constant 0 : i32
    return %arg0, %c0_i32, %c0_i32_0 : i32, i32, i32
  }
  func.func @transform_1(%arg0: i32) -> (i32, i32, i32) {
    %c0_i32 = arith.constant 0 : i32
    %c0_i32_0 = arith.constant 0 : i32
    %c0_i32_1 = arith.constant 0 : i32
    return %arg0, %c0_i32, %c0_i32_0 : i32, i32, i32
  }
  func.func @transform_2(%arg0: i32) -> (i32, i32, i32) {
    %c0_i32 = arith.constant 0 : i32
    %c0_i32_0 = arith.constant 0 : i32
    %c0_i32_1 = arith.constant 0 : i32
    return %arg0, %c0_i32, %c0_i32_0 : i32, i32, i32
  }
  func.func @transform_3(%arg0: i32) -> (i32, i32, i32) {
    %c0_i32 = arith.constant 0 : i32
    %c0_i32_0 = arith.constant 0 : i32
    %c0_i32_1 = arith.constant 0 : i32
    return %arg0, %c0_i32, %c0_i32_0 : i32, i32, i32
  }
  func.func @transform_4(%arg0: i32) -> (i32, i32, i32) {
    %c0_i32 = arith.constant 0 : i32
    %c0_i32_0 = arith.constant 0 : i32
    %c0_i32_1 = arith.constant 0 : i32
    return %arg0, %c0_i32, %c0_i32_0 : i32, i32, i32
  }
  func.func @transform_5(%arg0: i32) -> (i32, i32, i32) {
    %c0_i32 = arith.constant 0 : i32
    %c0_i32_0 = arith.constant 0 : i32
    %c0_i32_1 = arith.constant 0 : i32
    return %arg0, %c0_i32, %c0_i32_0 : i32, i32, i32
  }
  func.func @transform_6(%arg0: i32) -> (i32, i32) {
    %c0_i32 = arith.constant 0 : i32
    %c0_i32_0 = arith.constant 0 : i32
    %c0_i32_1 = arith.constant 0 : i32
    return %c0_i32, %c0_i32_0 : i32, i32
  }
  func.func @transform_7(%arg0: i32) -> (i32, i32) {
    %c0_i32 = arith.constant 0 : i32
    %c0_i32_0 = arith.constant 0 : i32
    %c0_i32_1 = arith.constant 0 : i32
    return %c0_i32, %c0_i32_0 : i32, i32
  }
  func.func @transform_8(%arg0: i32) -> (i32, i32) {
    %c0_i32 = arith.constant 0 : i32
    %c0_i32_0 = arith.constant 0 : i32
    %c0_i32_1 = arith.constant 0 : i32
    return %c0_i32, %c0_i32_0 : i32, i32
  }
  func.func @transform_9(%arg0: i32) -> (i32, i32) {
    %c0_i32 = arith.constant 0 : i32
    %c0_i32_0 = arith.constant 0 : i32
    %c0_i32_1 = arith.constant 0 : i32
    return %c0_i32, %c0_i32_0 : i32, i32
  }
  func.func @transform_10(%arg0: i32) -> (i32, i32) {
    %c0_i32 = arith.constant 0 : i32
    %c0_i32_0 = arith.constant 0 : i32
    %c0_i32_1 = arith.constant 0 : i32
    return %c0_i32, %c0_i32_0 : i32, i32
  }
  func.func @transform_11(%arg0: i32) -> (i32, i32) {
    %c0_i32 = arith.constant 0 : i32
    %c0_i32_0 = arith.constant 0 : i32
    %c0_i32_1 = arith.constant 0 : i32
    return %c0_i32, %c0_i32_0 : i32, i32
  }
  func.func @transform_12(%arg0: i32) -> (i32, i32) {
    %c0_i32 = arith.constant 0 : i32
    %c0_i32_0 = arith.constant 0 : i32
    %c0_i32_1 = arith.constant 0 : i32
    return %c0_i32, %c0_i32_0 : i32, i32
  }
  func.func @transform_13(%arg0: i32) -> (i32, i32) {
    %c0_i32 = arith.constant 0 : i32
    %c0_i32_0 = arith.constant 0 : i32
    %c0_i32_1 = arith.constant 0 : i32
    return %c0_i32, %c0_i32_0 : i32, i32
  }
  func.func @transform_14(%arg0: i32) -> (i32, i32) {
    %c0_i32 = arith.constant 0 : i32
    %c0_i32_0 = arith.constant 0 : i32
    %c0_i32_1 = arith.constant 0 : i32
    return %c0_i32, %c0_i32_0 : i32, i32
  }
  func.func @transform_15(%arg0: i32) -> (i32, i32) {
    %c0_i32 = arith.constant 0 : i32
    %c0_i32_0 = arith.constant 0 : i32
    %c0_i32_1 = arith.constant 0 : i32
    return %c0_i32, %c0_i32_0 : i32, i32
  }
  func.func @transform_16(%arg0: i32) -> (i32, i32, i32) {
    %c0_i32 = arith.constant 0 : i32
    %c0_i32_0 = arith.constant 0 : i32
    %c0_i32_1 = arith.constant 0 : i32
    %c0_i32_2 = arith.constant 0 : i32
    return %c0_i32, %c0_i32_0, %c0_i32_1 : i32, i32, i32
  }
  func.func @transform_17(%arg0: i32) -> (i32, i32) {
    %c0_i32 = arith.constant 0 : i32
    %c0_i32_0 = arith.constant 0 : i32
    %c0_i32_1 = arith.constant 0 : i32
    return %c0_i32, %c0_i32_0 : i32, i32
  }
  func.func @transform_18(%arg0: i32) -> (i32, i32) {
    %c0_i32 = arith.constant 0 : i32
    %c0_i32_0 = arith.constant 0 : i32
    %c0_i32_1 = arith.constant 0 : i32
    return %c0_i32, %c0_i32_0 : i32, i32
  }
  func.func @transform_19(%arg0: i32) -> (i32, i32) {
    %c0_i32 = arith.constant 0 : i32
    %c0_i32_0 = arith.constant 0 : i32
    %c0_i32_1 = arith.constant 0 : i32
    return %c0_i32, %c0_i32_0 : i32, i32
  }
  func.func @transform_20(%arg0: i32) -> (i32, i32) {
    %c0_i32 = arith.constant 0 : i32
    %c0_i32_0 = arith.constant 0 : i32
    %c0_i32_1 = arith.constant 0 : i32
    return %c0_i32, %c0_i32_0 : i32, i32
  }
  func.func @transform_21(%arg0: i32) -> (i32, i32) {
    %c0_i32 = arith.constant 0 : i32
    %c0_i32_0 = arith.constant 0 : i32
    %c0_i32_1 = arith.constant 0 : i32
    return %c0_i32, %c0_i32_0 : i32, i32
  }
  func.func @transform_22(%arg0: i32) -> (i32, i32, i32) {
    %c0_i32 = arith.constant 0 : i32
    %c0_i32_0 = arith.constant 0 : i32
    %c0_i32_1 = arith.constant 0 : i32
    %c0_i32_2 = arith.constant 0 : i32
    return %c0_i32, %c0_i32_0, %c0_i32_1 : i32, i32, i32
  }
  func.func @transform_23(%arg0: i32) -> (i32, i32) {
    %c0_i32 = arith.constant 0 : i32
    %c0_i32_0 = arith.constant 0 : i32
    %c0_i32_1 = arith.constant 0 : i32
    return %c0_i32, %c0_i32_0 : i32, i32
  }
  func.func @transform_24(%arg0: i32) -> (i32, i32) {
    %c0_i32 = arith.constant 0 : i32
    %c0_i32_0 = arith.constant 0 : i32
    %c0_i32_1 = arith.constant 0 : i32
    return %c0_i32, %c0_i32_0 : i32, i32
  }
  func.func @transform_25(%arg0: i32) -> (i32, i32) {
    %c0_i32 = arith.constant 0 : i32
    %c0_i32_0 = arith.constant 0 : i32
    %c0_i32_1 = arith.constant 0 : i32
    return %c0_i32, %c0_i32_0 : i32, i32
  }
  func.func @transform_26(%arg0: i32) -> (i32, i32) {
    %c0_i32 = arith.constant 0 : i32
    %c0_i32_0 = arith.constant 0 : i32
    %c0_i32_1 = arith.constant 0 : i32
    return %c0_i32, %c0_i32_0 : i32, i32
  }
  func.func @transform_27(%arg0: i32) -> (i32, i32) {
    %c0_i32 = arith.constant 0 : i32
    %c0_i32_0 = arith.constant 0 : i32
    %c0_i32_1 = arith.constant 0 : i32
    return %c0_i32, %c0_i32_0 : i32, i32
  }
  func.func @transform_28(%arg0: i32) -> (i32, i32) {
    %c0_i32 = arith.constant 0 : i32
    %c0_i32_0 = arith.constant 0 : i32
    %c0_i32_1 = arith.constant 0 : i32
    return %c0_i32, %c0_i32_0 : i32, i32
  }
  func.func @transform_29(%arg0: i32) -> (i32, i32) {
    %c0_i32 = arith.constant 0 : i32
    %c0_i32_0 = arith.constant 0 : i32
    %c0_i32_1 = arith.constant 0 : i32
    return %c0_i32, %c0_i32_0 : i32, i32
  }
  func.func @transform_30(%arg0: i32) -> (i32, i32) {
    %c0_i32 = arith.constant 0 : i32
    %c0_i32_0 = arith.constant 0 : i32
    %c0_i32_1 = arith.constant 0 : i32
    return %c0_i32, %c0_i32_0 : i32, i32
  }
  func.func @transform_31(%arg0: i32) -> (i32, i32) {
    %c0_i32 = arith.constant 0 : i32
    %c0_i32_0 = arith.constant 0 : i32
    %c0_i32_1 = arith.constant 0 : i32
    return %c0_i32, %c0_i32_0 : i32, i32
  }
  func.func @transform_32(%arg0: i32) -> (i32, i32) {
    %c0_i32 = arith.constant 0 : i32
    %c0_i32_0 = arith.constant 0 : i32
    %c0_i32_1 = arith.constant 0 : i32
    return %c0_i32, %c0_i32_0 : i32, i32
  }
  func.func @transform_33(%arg0: i32) -> (i32, i32) {
    %c0_i32 = arith.constant 0 : i32
    %c0_i32_0 = arith.constant 0 : i32
    %c0_i32_1 = arith.constant 0 : i32
    return %c0_i32, %c0_i32_0 : i32, i32
  }
  func.func @transform_34(%arg0: i32) -> (i32, i32) {
    %c0_i32 = arith.constant 0 : i32
    %c0_i32_0 = arith.constant 0 : i32
    %c0_i32_1 = arith.constant 0 : i32
    return %c0_i32, %c0_i32_0 : i32, i32
  }
  func.func @transform_35(%arg0: i32) -> (i32, i32) {
    %c0_i32 = arith.constant 0 : i32
    %c0_i32_0 = arith.constant 0 : i32
    %c0_i32_1 = arith.constant 0 : i32
    return %c0_i32, %c0_i32_0 : i32, i32
  }
  func.func @transform_36(%arg0: i32) -> (i32, i32, i32) {
    %c0_i32 = arith.constant 0 : i32
    %c0_i32_0 = arith.constant 0 : i32
    %c0_i32_1 = arith.constant 0 : i32
    %c0_i32_2 = arith.constant 0 : i32
    return %c0_i32, %c0_i32_0, %c0_i32_1 : i32, i32, i32
  }
  func.func @transform_37(%arg0: i32) -> (i32, i32) {
    %c0_i32 = arith.constant 0 : i32
    %c0_i32_0 = arith.constant 0 : i32
    %c0_i32_1 = arith.constant 0 : i32
    return %c0_i32, %c0_i32_0 : i32, i32
  }
  func.func @transform_38(%arg0: i32) -> (i32, i32) {
    %c0_i32 = arith.constant 0 : i32
    %c0_i32_0 = arith.constant 0 : i32
    %c0_i32_1 = arith.constant 0 : i32
    return %c0_i32, %c0_i32_0 : i32, i32
  }
  func.func @transform_39(%arg0: i32) -> (i32, i32) {
    %c0_i32 = arith.constant 0 : i32
    %c0_i32_0 = arith.constant 0 : i32
    %c0_i32_1 = arith.constant 0 : i32
    return %c0_i32, %c0_i32_0 : i32, i32
  }
  func.func @transform_40(%arg0: i32) -> (i32, i32) {
    %c0_i32 = arith.constant 0 : i32
    %c0_i32_0 = arith.constant 0 : i32
    %c0_i32_1 = arith.constant 0 : i32
    return %c0_i32, %c0_i32_0 : i32, i32
  }
  func.func @transform_41(%arg0: i32) -> (i32, i32) {
    %c0_i32 = arith.constant 0 : i32
    %c0_i32_0 = arith.constant 0 : i32
    %c0_i32_1 = arith.constant 0 : i32
    return %c0_i32, %c0_i32_0 : i32, i32
  }
  func.func @transform_42(%arg0: i32) -> (i32, i32, i32) {
    %c0_i32 = arith.constant 0 : i32
    %c0_i32_0 = arith.constant 0 : i32
    %c0_i32_1 = arith.constant 0 : i32
    %c0_i32_2 = arith.constant 0 : i32
    return %c0_i32, %c0_i32_0, %c0_i32_1 : i32, i32, i32
  }
  func.func @transform_43(%arg0: i32) -> (i32, i32) {
    %c0_i32 = arith.constant 0 : i32
    %c0_i32_0 = arith.constant 0 : i32
    %c0_i32_1 = arith.constant 0 : i32
    return %c0_i32, %c0_i32_0 : i32, i32
  }
  func.func @transform_44(%arg0: i32) -> (i32, i32) {
    %c0_i32 = arith.constant 0 : i32
    %c0_i32_0 = arith.constant 0 : i32
    %c0_i32_1 = arith.constant 0 : i32
    return %c0_i32, %c0_i32_0 : i32, i32
  }
  func.func @transform_45(%arg0: i32) -> (i32, i32) {
    %c0_i32 = arith.constant 0 : i32
    %c0_i32_0 = arith.constant 0 : i32
    %c0_i32_1 = arith.constant 0 : i32
    return %c0_i32, %c0_i32_0 : i32, i32
  }
  func.func @transform_46(%arg0: i32) -> (i32, i32) {
    %c0_i32 = arith.constant 0 : i32
    %c0_i32_0 = arith.constant 0 : i32
    %c0_i32_1 = arith.constant 0 : i32
    return %c0_i32, %c0_i32_0 : i32, i32
  }
  func.func @transform_47(%arg0: i32) -> (i32, i32) {
    %c0_i32 = arith.constant 0 : i32
    %c0_i32_0 = arith.constant 0 : i32
    %c0_i32_1 = arith.constant 0 : i32
    return %c0_i32, %c0_i32_0 : i32, i32
  }
  func.func @transform_48(%arg0: i32) -> (i32, i32) {
    %c0_i32 = arith.constant 0 : i32
    %c0_i32_0 = arith.constant 0 : i32
    %c0_i32_1 = arith.constant 0 : i32
    return %c0_i32, %c0_i32_0 : i32, i32
  }
  func.func @transform_49(%arg0: i32) -> (i32, i32) {
    %c0_i32 = arith.constant 0 : i32
    %c0_i32_0 = arith.constant 0 : i32
    %c0_i32_1 = arith.constant 0 : i32
    return %c0_i32, %c0_i32_0 : i32, i32
  }
  func.func @transform_50(%arg0: i32) -> (i32, i32) {
    %c0_i32 = arith.constant 0 : i32
    %c0_i32_0 = arith.constant 0 : i32
    %c0_i32_1 = arith.constant 0 : i32
    return %c0_i32, %c0_i32_0 : i32, i32
  }
  func.func @transform_51(%arg0: i32) -> (i32, i32) {
    %c0_i32 = arith.constant 0 : i32
    %c0_i32_0 = arith.constant 0 : i32
    %c0_i32_1 = arith.constant 0 : i32
    return %c0_i32, %c0_i32_0 : i32, i32
  }
  func.func @transform_52(%arg0: i32) -> (i32, i32) {
    %c0_i32 = arith.constant 0 : i32
    %c0_i32_0 = arith.constant 0 : i32
    %c0_i32_1 = arith.constant 0 : i32
    return %c0_i32, %c0_i32_0 : i32, i32
  }
  func.func @transform_53(%arg0: i32) -> (i32, i32) {
    %c0_i32 = arith.constant 0 : i32
    %c0_i32_0 = arith.constant 0 : i32
    %c0_i32_1 = arith.constant 0 : i32
    return %c0_i32, %c0_i32_0 : i32, i32
  }
  func.func @transform_54(%arg0: i32) -> (i32, i32, i32) {
    %c0_i32 = arith.constant 0 : i32
    %c0_i32_0 = arith.constant 0 : i32
    %c0_i32_1 = arith.constant 0 : i32
    return %arg0, %c0_i32, %c0_i32_0 : i32, i32, i32
  }
}

</mosaic_0001>

<bundles_post_ra>
// kernel: sub.3
= control target key start
LH: loop header
LB: loop body
LE: loop exit
PB: predicated region body
PF: predicated region fallthrough
CT: control target
= control target key end

     0   :  { %s34_s0 = inlined_call_operand.vmem [shape: f32[2,3], index: 0, kind: input, shape index: {}]   ;;  %s35_s1 = inlined_call_operand.vmem [shape: f32[2,3], index: 1, kind: input, shape index: {}]   ;;  %s36_s2 = inlined_call_operand.vmem [shape: f32[2,3], index: 2, kind: output, shape index: {}]  }
   0x1   :  { %v3_v0 = vld [vmem:[%s34_s0] sm:$0x7] }
   0x2   :  { %v4_v1 = vld [vmem:[%s35_s1] sm:$0x7] }
   0x3   :  { %v7_v2 = vsub.f32 %v3_v0, %v4_v1 }
   0x5   :  { %9 = vst [vmem:[%s36_s2] sm:$0xf] %v7_v2 }

// kernel: lt.29
= control target key start
LH: loop header
LB: loop body
LE: loop exit
PB: predicated region body
PF: predicated region fallthrough
CT: control target
= control target key end

     0   :  { %s67_s28 = smov 3  ;;  %s75_s2 = smov 48  ;;  %vm54_vm0 = vcmask 1043458   ;;  %vm58_vm1 = vcmask 1045508   ;;  %vm60_vm2 = vcmask 15360   ;;  %vm81_vm3 = vcmask 64560   ;;  %s232_s0 = inlined_call_operand.vmem [shape: f32[2,2,2,2,3], index: 0, kind: input, shape index: {}]   ;;  %s233_s1 = inlined_call_operand.vmem [shape: f32[2,8,3], index: 1, kind: output, shape index: {}]  }
   0x1   :  { %v147_v0 = vld [vmem:[%s232_s0 + $0x16] sm:$0x3]  ;;  %v149_v1 = vld [vmem:[%s232_s0 + $0x12] sm:$0x3]  ;;  %v151_v2 = vld [vmem:[%s232_s0 + $0xe] sm:$0x3] }
   0x2   :  { %7 = vst [vmem:[#allocation1 + $0x58] sm:$0x3] %v147_v0  ;;  %v153_v3 = vld [vmem:[%s232_s0 + $0xa] sm:$0x3]  ;;  %v155_v4 = vld [vmem:[%s232_s0 + $0x6] sm:$0x3] }
   0x3   :  { %15 = vst [vmem:[#allocation1 + $0x48] sm:$0x3] %v149_v1  ;;  %v157_v5 = vld [vmem:[%s232_s0 + $0x2] sm:$0x3]  ;;  %v148_v6 = vld [vmem:[%s232_s0 + $0x14] sm:$0x3] }
   0x4   :  { %23 = vst [vmem:[#allocation1 + $0x38] sm:$0x3] %v151_v2  ;;  %v150_v7 = vld [vmem:[%s232_s0 + $0x10] sm:$0x3]  ;;  %v152_v8 = vld [vmem:[%s232_s0 + $0xc] sm:$0x3] }
   0x5   :  { %31 = vst [vmem:[#allocation1 + $0x28] sm:$0x3] %v153_v3  ;;  %v154_v9 = vld [vmem:[%s232_s0 + $0x8] sm:$0x3]  ;;  %v156_v10 = vld [vmem:[%s232_s0 + $0x4] sm:$0x3] }
   0x6   :  { %39 = vst [vmem:[#allocation1 + $0x18] sm:$0x3] %v155_v4  ;;  %v48_v11 = vld [vmem:[%s232_s0] sm:$0x3]  ;;  %s70_s0 = smov 12  ;;  %s88_s3 = smov 3 }
   0x7   :  { %47 = vst [vmem:[#allocation1 + $0x8] sm:$0x3] %v157_v5  ;;  %s91_s4 = smov 12  ;;  %s96_s5 = smov 48  ;;  %vm102_vm4 = vcmask 48160   ;;  %vm123_vm5 = vcmask 31760  }
   0x8   :  { %11 = vst [vmem:[#allocation1 + $0x50] sm:$0x3] %v148_v6  ;;  %s109_s6 = smov 3  ;;  %s112_s7 = smov 12 }
   0x9   :  { %19 = vst [vmem:[#allocation1 + $0x40] sm:$0x3] %v150_v7  ;;  %s163_s8 = smov 6   ;;  %s117_s9 = smov 48 }
   0xa   :  { %27 = vst [vmem:[#allocation1 + $0x30] sm:$0x3] %v152_v8  ;;  %s50_s10 = smov 3  ;;  %s52_s11 = smov 12 }
   0xb   :  { %35 = vst [vmem:[#allocation1 + $0x20] sm:$0x3] %v154_v9  ;;  %s56_s12 = smov 48  ;;  %s164_s13 = smov 2  }
   0xc   :  { %43 = vst [vmem:[#allocation1 + $0x10] sm:$0x3] %v156_v10  ;;  %s165_s14 = smov 4  }
   0xd   :  { %49 = vst [vmem:[#allocation1] sm:$0x3] %v48_v11 }
   0xe   :  { %v68_v12 = vld [vmem:[#allocation1 + $0x9] ss:$16 sm:%s67_s28]   ;;  %v89_v17 = vld [vmem:[#allocation1 + $0x8] ss:$16 sm:%s88_s3]  }
   0xf   :  { %v71_v13 = vld [vmem:[#allocation1 + $0x9] ss:$16 sm:%s70_s0]   ;;  %v92_v18 = vld [vmem:[#allocation1 + $0x8] ss:$16 sm:%s91_s4]  }
  0x10   :  { %v76_v14 = vld [vmem:[#allocation1 + $0x9] ss:$16 sm:%s75_s2]   ;;  %v73_v15 = vsel %vm54_vm0, %v71_v13, %v68_v12  ;;  %v94_v19 = vsel %vm54_vm0, %v92_v18, %v89_v17  ;;  %v97_v20 = vld [vmem:[#allocation1 + $0x8] ss:$16 sm:%s96_s5]  }
  0x11   :  { %v78_v16 = vsel %vm58_vm1, %v76_v14, %v73_v15  ;;  %v99_v28 = vsel %vm58_vm1, %v97_v20, %v94_v19 }
  0x12   :  { %79 = vrot.lane.b32.xlu0 %v78_v16, %s163_s8 }
  0x14   :  { %v110_v21 = vld [vmem:[#allocation1 + $0x1] ss:$16 sm:%s109_s6]   ;;  %v51_v25 = vld [vmem:[#allocation1] ss:$16 sm:%s50_s10]  }
  0x15   :  { %v113_v22 = vld [vmem:[#allocation1 + $0x1] ss:$16 sm:%s112_s7]   ;;  %v53_v26 = vld [vmem:[#allocation1] ss:$16 sm:%s52_s11]  }
  0x16   :  { %v118_v23 = vld [vmem:[#allocation1 + $0x1] ss:$16 sm:%s117_s9]   ;;  %v115_v24 = vsel %vm54_vm0, %v113_v22, %v110_v21  ;;  %v57_v27 = vld [vmem:[#allocation1] ss:$16 sm:%s56_s12]   ;;  %v55_v30 = vsel %vm54_vm0, %v53_v26, %v51_v25 }
  0x17   :  { %v120_v29 = vsel %vm58_vm1, %v118_v23, %v115_v24  ;;  %v59_v31 = vsel %vm58_vm1, %v57_v27, %v55_v30 }
  0x18   :  { %121 = vrot.lane.b32.xlu1 %v120_v29, %s164_s13  ;;  %61 = vst.msk [vmem:[#allocation0] sm:$0x3] %vm60_vm2, %v59_v31  }
  0x19   :  { %63 = vst.msk [vmem:[#allocation0 + $0x6] sm:$0xc] %vm60_vm2, %v59_v31  }
  0x1a   :  { %100 = vrot.lane.b32.xlu0 %v99_v28, %s165_s14  ;;  %65 = vst.msk [vmem:[#allocation0 + $0xc] sm:$0x30] %vm60_vm2, %v59_v31  }
  0x84   :  { %v80_v32 = vpop.permute.xlu0 %79  }
  0x85   :  { %82 = vst.msk [vmem:[#allocation0] sm:$0x3] %vm81_vm3, %v80_v32  }
  0x86   :  { %84 = vst.msk [vmem:[#allocation0 + $0x6] sm:$0xc] %vm81_vm3, %v80_v32  }
  0x87   :  { %86 = vst.msk [vmem:[#allocation0 + $0xc] sm:$0x30] %vm81_vm3, %v80_v32  }
  0x8a   :  { %v122_v33 = vpop.permute.xlu1 %121  }
  0x8c   :  { %v101_v34 = vpop.permute.xlu0 %100  }
  0x8d   :  { %103 = vst.msk [vmem:[#allocation0] sm:$0x3] %vm102_vm4, %v101_v34  }
  0x8e   :  { %105 = vst.msk [vmem:[#allocation0 + $0x6] sm:$0xc] %vm102_vm4, %v101_v34  }
  0x8f   :  { %107 = vst.msk [vmem:[#allocation0 + $0xc] sm:$0x30] %vm102_vm4, %v101_v34  }
  0x90   :  { %124 = vst.msk [vmem:[#allocation0] sm:$0x3] %vm123_vm5, %v122_v33  }
  0x91   :  { %126 = vst.msk [vmem:[#allocation0 + $0x6] sm:$0xc] %vm123_vm5, %v122_v33  }
  0x92   :  { %128 = vst.msk [vmem:[#allocation0 + $0xc] sm:$0x30] %vm123_vm5, %v122_v33  }
  0x97   :  { %v131_v35 = vld [vmem:[#allocation0] sm:$0x3] }
  0x98   :  { %134 = vst [vmem:[%s233_s1] sm:$0x3] %v131_v35  ;;  %v136_v36 = vld [vmem:[#allocation0 + $0x8] sm:$0x3] }
  0x99   :  { %158 = vst [vmem:[%s233_s1 + $0x2] sm:$0x3] %v136_v36  ;;  %v142_v37 = vld [vmem:[#allocation0 + $0x10] sm:$0x3] }
  0x9a   :  { %159 = vst [vmem:[%s233_s1 + $0x4] sm:$0x3] %v142_v37 }

</bundles_post_ra>
